<compile_context>
chip_gen: v7x
topology: tpu7x:2x2x1
jax: 0.10.0
libtpu: 0.0.40
codegen_flags: <defaults>
</compile_context>

<pallas_src>
import functools

import jax
import jax.numpy as jnp
from jax.experimental import pallas as pl
from jax.experimental.pallas import tpu as pltpu

_LANE = 128   # TPU lane width; channel dims padded to a multiple of this.
_COL0 = 16    # bf16 packed-sublane aligned column where real data starts.
_RPAD = 8     # zero columns kept to the right of the data (right conv halo).


def _round_up(x, m):
    return (x + m - 1) // m * m


def _vmem_capacity_bytes():
    """Physical VMEM of the current chip (fallback: v7x-safe 64 MiB)."""
    try:
        info = pltpu.get_tpu_info()
        cap = getattr(info, "vmem_capacity_bytes", None)
        if cap:
            return int(cap)
    except Exception:
        pass
    return 64 * 1024 * 1024


def _conv_bn_relu(src_ref, w_ref, b_ref, h_out, W):
    """3x3 conv (padding pre-materialized in src_ref) => BN bias => ReLU.

    src_ref: (h_out + 2, Wp, Cin) bf16 VMEM scratch.  Real data at columns
             [_COL0, _COL0 + W); columns _COL0-1 and _COL0+W are zero; halo
             rows are the caller's responsibility.
    w_ref:   (9, Cin, Cout) bf16 folded weights, tap index = kh*3 + kw.
    b_ref:   (1, Cout) f32 folded bias.
    Returns  (h_out * W, Cout) f32, post-ReLU.

    Implemented as 9 accumulating MXU matmuls — no im2col materialization.
    """
    Cin = src_ref.shape[2]
    acc = None
    for kh in range(3):
        for kw in range(3):
            c = _COL0 - 1 + kw
            win = src_ref[kh:kh + h_out, c:c + W, :]          # (h_out, W, Cin)
            part = jnp.dot(win.reshape(h_out * W, Cin), w_ref[kh * 3 + kw],
                           preferred_element_type=jnp.float32)
            acc = part if acc is None else acc + part
    return jnp.maximum(acc + b_ref[...], 0.0)


def _double_conv_kernel(x_ref, xt2_ref, xt1_ref, xb1_ref, xb2_ref,
                        w1_ref, b1_ref, w2_ref, b2_ref, o_ref, xpad, ypad):
    # x_ref  : (1, TH, W, Cin_p)  bf16 main input tile (rows [r0, r0+TH))
    # x??_ref: (1, 1,  W, Cin_p)  bf16 halo rows r0-2, r0-1, r0+TH, r0+TH+1
    # w*_ref : (9, C, C)          bf16 folded weights; b*_ref: (1, C) f32 bias
    # o_ref  : (1, TH, W, Cout_p) bf16 output tile (lane-dense writeback)
    # xpad   : (TH+4, Wp, Cin_p)  bf16 scratch, x rows r0-2 .. r0+TH+1
    # ypad   : (TH+2, Wp, Cmid)   bf16 scratch, y1 rows r0-1 .. r0+TH
    h = pl.program_id(1)
    last_h = pl.num_programs(1) - 1
    TH = o_ref.shape[1]
    W = o_ref.shape[2]
    c0 = _COL0
    Cin = xpad.shape[2]
    Cmid = ypad.shape[2]
    xrows = xpad.shape[0]      # TH + 4
    yrows = ypad.shape[0]      # TH + 2

    # ---- halo-only zeroing: left/right pad column strips (8-wide, aligned).
    # The interior is fully overwritten below, so it is never memset.
    xpad[:, c0 - 8:c0, :] = jnp.zeros((xrows, 8, Cin), xpad.dtype)
    xpad[:, c0 + W:c0 + W + 8, :] = jnp.zeros((xrows, 8, Cin), xpad.dtype)
    ypad[:, c0 - 8:c0, :] = jnp.zeros((yrows, 8, Cmid), ypad.dtype)
    ypad[:, c0 + W:c0 + W + 8, :] = jnp.zeros((yrows, 8, Cmid), ypad.dtype)

    # ---- stage-1 input: main rows + 2-row top/bottom halos ----------------
    xpad[2:TH + 2, c0:c0 + W, :] = x_ref[0]
    xpad[0:1, c0:c0 + W, :] = xt2_ref[0]
    xpad[1:2, c0:c0 + W, :] = xt1_ref[0]
    xpad[TH + 2:TH + 3, c0:c0 + W, :] = xb1_ref[0]
    xpad[TH + 3:TH + 4, c0:c0 + W, :] = xb2_ref[0]

    # Image-boundary halo rows are zero (conv pad=1).  Every step re-zeros its
    # own halo (never gated on program_id==0: each core has its own scratch).
    @pl.when(h == 0)
    def _():
        xpad[0:2, c0:c0 + W, :] = jnp.zeros((2, W, Cin), xpad.dtype)

    @pl.when(h == last_h)
    def _():
        xpad[TH + 2:TH + 4, c0:c0 + W, :] = jnp.zeros((2, W, Cin), xpad.dtype)

    # ---- stage 1: conv3x3 + BN + ReLU over TH+2 rows (1-row y1 halo) ------
    y1 = _conv_bn_relu(xpad, w1_ref, b1_ref, TH + 2, W)       # ((TH+2)*W, Cmid)
    ypad[:, c0:c0 + W, :] = y1.reshape(TH + 2, W, Cmid).astype(ypad.dtype)

    # Stage-2 zero padding at the top/bottom image boundary (y1 row -1 / H).
    @pl.when(h == 0)
    def _():
        ypad[0:1, c0:c0 + W, :] = jnp.zeros((1, W, Cmid), ypad.dtype)

    @pl.when(h == last_h)
    def _():
        ypad[TH + 1:TH + 2, c0:c0 + W, :] = jnp.zeros((1, W, Cmid), ypad.dtype)

    # ---- stage 2: conv3x3 + BN + ReLU, bf16 lane-dense writeback ----------
    y2 = _conv_bn_relu(ypad, w2_ref, b2_ref, TH, W)           # (TH*W, Cout_p)
    o_ref[...] = y2.reshape(1, TH, W, -1).astype(o_ref.dtype)


def _fold_stage(p, c_in_pad, c_out_pad, eps):
    """Fold eval-mode BN (+conv bias) into bf16 weights and an f32 bias."""
    w, b = p["w"], p["b"]                                     # (Co,Ci,3,3), (Co,)
    cout, cin = w.shape[0], w.shape[1]
    scale = p["gamma"] / jnp.sqrt(p["var"] + eps)             # (Co,)
    bias = p["beta"] + (b - p["mean"]) * scale                # (Co,)
    w_hwio = jnp.transpose(w, (2, 3, 1, 0)) * scale           # (3,3,Ci,Co)
    w_p = jnp.zeros((3, 3, c_in_pad, c_out_pad), jnp.float32)
    w_p = w_p.at[:, :, :cin, :cout].set(w_hwio)
    w_p = w_p.reshape(9, c_in_pad, c_out_pad).astype(jnp.bfloat16)
    b_p = jnp.zeros((1, c_out_pad), jnp.float32).at[0, :cout].set(bias)
    return w_p, b_p


def _pick_tile_h(H, W, cin_p, cmid, cout_p, budget_bytes, max_tile_h=None):
    """Largest H tile (a divisor of H) whose per-step VMEM estimate fits."""
    wp = _COL0 + W + _RPAD

    def est(th):
        b = (th + 4) * wp * cin_p * 2                       # xpad scratch
        b += (th + 2) * wp * cmid * 2                       # ypad scratch
        b += 2 * th * W * cin_p * 2                         # input block x2
        b += 8 * W * cin_p * 2                              # 4 halo rows x2
        b += 2 * th * W * cout_p * 2                        # output block x2
        b += 2 * 9 * (cin_p * cmid + cmid * cout_p) * 2     # weights x2
        b += (th + 2) * W * max(cmid, cout_p) * 4           # f32 accumulator
        b += 2 * (th + 2) * W * max(cin_p, cmid) * 2        # tap-window temps
        return int(b * 1.25)                                # headroom

    cands = [d for d in range(2, H + 1) if H % d == 0]
    if not cands:                    # H == 1
        cands = [H]
    if max_tile_h is not None:
        limited = [d for d in cands if d <= max_tile_h]
        if limited:
            cands = limited
    fitting = [d for d in cands if est(d) <= budget_bytes]
    tile_h = max(fitting) if fitting else min(cands)
    return tile_h, est(tile_h)


def double_conv(x_nchw, params, eps=1e-5, max_tile_h=None):
    """Forward of double_conv: (conv3x3 => BN => ReLU) * 2.  NCHW in/out."""
    N, Cin, H, W = x_nchw.shape
    Cout = params["stage1"]["w"].shape[0]
    Cin_p = _round_up(Cin, _LANE)
    Cout_p = _round_up(Cout, _LANE)

    # NCHW -> NHWC, bf16 MXU operands, channels zero-padded to lane width.
    x = jnp.transpose(x_nchw, (0, 2, 3, 1)).astype(jnp.bfloat16)
    x_p = jnp.zeros((N, H, W, Cin_p), jnp.bfloat16).at[..., :Cin].set(x)

    w1, b1 = _fold_stage(params["stage1"], Cin_p, Cout_p, eps)
    w2, b2 = _fold_stage(params["stage2"], Cout_p, Cout_p, eps)

    cap = _vmem_capacity_bytes()
    tile_h, est = _pick_tile_h(H, W, Cin_p, Cout_p, Cout_p,
                               budget_bytes=int(cap * 0.5),
                               max_tile_h=max_tile_h)
    n_h = H // tile_h
    wp = _COL0 + W + _RPAD
    vmem_limit = int(min(cap * 0.85, max(2 * est, 64 * 1024 * 1024)))

    def x_map(n, h):
        return (n, h, 0, 0)

    # 1-row halo blocks (block size 1 on H => index_map returns the row).
    # Clamped at the image boundary; the kernel zeroes those rows.
    def top2_map(n, h):
        return (n, jnp.maximum(h * tile_h - 2, 0), 0, 0)

    def top1_map(n, h):
        return (n, jnp.maximum(h * tile_h - 1, 0), 0, 0)

    def bot1_map(n, h):
        return (n, jnp.minimum((h + 1) * tile_h, H - 1), 0, 0)

    def bot2_map(n, h):
        return (n, jnp.minimum((h + 1) * tile_h + 1, H - 1), 0, 0)

    def row_spec(index_map):
        return pl.BlockSpec((1, 1, W, Cin_p), index_map)

    out = pl.pallas_call(
        _double_conv_kernel,
        out_shape=jax.ShapeDtypeStruct((N, H, W, Cout_p), jnp.bfloat16),
        grid_spec=pltpu.PrefetchScalarGridSpec(
            num_scalar_prefetch=0,
            grid=(N, n_h),
            in_specs=[
                pl.BlockSpec((1, tile_h, W, Cin_p), x_map),
                row_spec(top2_map), row_spec(top1_map),
                row_spec(bot1_map), row_spec(bot2_map),
                pl.BlockSpec((9, Cin_p, Cout_p), lambda n, h: (0, 0, 0)),
                pl.BlockSpec((1, Cout_p), lambda n, h: (0, 0)),
                pl.BlockSpec((9, Cout_p, Cout_p), lambda n, h: (0, 0, 0)),
                pl.BlockSpec((1, Cout_p), lambda n, h: (0, 0)),
            ],
            out_specs=pl.BlockSpec((1, tile_h, W, Cout_p), x_map),
            scratch_shapes=[
                pltpu.VMEM((tile_h + 4, wp, Cin_p), jnp.bfloat16),
                pltpu.VMEM((tile_h + 2, wp, Cout_p), jnp.bfloat16),
            ],
        ),
        compiler_params=pltpu.CompilerParams(
            dimension_semantics=("parallel", "parallel"),
            vmem_limit_bytes=vmem_limit),
    )(x_p, x_p, x_p, x_p, x_p, w1, b1, w2, b2)

    # Drop channel padding, NHWC -> NCHW, back to f32 (module output dtype).
    out = out[..., :Cout].astype(jnp.float32)
    return jnp.transpose(out, (0, 3, 1, 2))


def _init_stage(key, in_ch, out_ch):
    k = jax.random.split(key, 6)
    bound = 1.0 / jnp.sqrt(in_ch * 9.0)
    return {
        "w": jax.random.uniform(k[0], (out_ch, in_ch, 3, 3), jnp.float32,
                                -bound, bound),
        "b": jax.random.uniform(k[1], (out_ch,), jnp.float32, -bound, bound),
        "gamma": 1.0 + 0.1 * jax.random.normal(k[2], (out_ch,), jnp.float32),
        "beta": 0.1 * jax.random.normal(k[3], (out_ch,), jnp.float32),
        "mean": 0.1 * jax.random.normal(k[4], (out_ch,), jnp.float32),
        "var": jnp.abs(1.0 + 0.1 * jax.random.normal(k[5], (out_ch,),
                                                     jnp.float32)),
    }


def _reference_double_conv(x_nchw, params, eps=1e-5, mirror_bf16=False):
    """Plain-JAX (lax conv) reference.  mirror_bf16=True reproduces the
    kernel's bf16 roundings (inputs, weights, stage-1 handoff, output)."""
    x = jnp.transpose(x_nchw, (0, 2, 3, 1))
    if mirror_bf16:
        x = x.astype(jnp.bfloat16)
    y = x
    for name in ("stage1", "stage2"):
        p = params[name]
        scale = p["gamma"] / jnp.sqrt(p["var"] + eps)
        bias = p["beta"] + (p["b"] - p["mean"]) * scale
        w = jnp.transpose(p["w"], (2, 3, 1, 0)) * scale       # HWIO, BN folded
        if mirror_bf16:
            w = w.astype(jnp.bfloat16)
        y = jax.lax.conv_general_dilated(
            x, w, window_strides=(1, 1), padding=((1, 1), (1, 1)),
            dimension_numbers=("NHWC", "HWIO", "NHWC"),
            preferred_element_type=jnp.float32)
        y = jnp.maximum(y + bias, 0.0)
        x = y.astype(jnp.bfloat16) if mirror_bf16 else y
    if mirror_bf16:
        y = y.astype(jnp.bfloat16).astype(jnp.float32)        # bf16 writeback
    return jnp.transpose(y, (0, 3, 1, 2))


if __name__ == "__main__":
    key = jax.random.PRNGKey(0)
    kx, k1, k2 = jax.random.split(key, 3)

    N, in_ch, out_ch, H, W = 2, 4, 8, 16, 16
    x = jax.random.normal(kx, (N, in_ch, H, W), jnp.float32)   # NCHW (PyTorch)

    params = {
        "stage1": _init_stage(k1, in_ch, out_ch),
        "stage2": _init_stage(k2, out_ch, out_ch),
    }

    ref_bf16 = _reference_double_conv(x, params, mirror_bf16=True)
    ref_f32 = _reference_double_conv(x, params, mirror_bf16=False)

    # (a) multi-tile path: max_tile_h=8 splits H=16 into 2 tiles -> exercises
    #     the 2-row halo and boundary-zeroing logic.
    run_tiled = jax.jit(functools.partial(double_conv, max_tile_h=8))
    out = jax.block_until_ready(run_tiled(x, params))
    assert out.shape == (N, out_ch, H, W), out.shape
    assert jnp.allclose(out, ref_bf16, atol=1e-2, rtol=1e-2), (
        float(jnp.max(jnp.abs(out - ref_bf16))))
    assert jnp.allclose(out, ref_f32, atol=6e-2, rtol=6e-2), (
        float(jnp.max(jnp.abs(out - ref_f32))))

    # (b) single-tile path (tile_h chosen automatically from VMEM budget).
    run_auto = jax.jit(double_conv)
    out2 = jax.block_until_ready(run_auto(x, params))
    assert out2.shape == (N, out_ch, H, W), out2.shape
    assert jnp.allclose(out2, ref_bf16, atol=1e-2, rtol=1e-2), (
        float(jnp.max(jnp.abs(out2 - ref_bf16))))

    print("KERNEL_OK")
</pallas_src>

<mosaic_0001>
module attributes {stable_mosaic.version = 11 : i64} {
  func.func @_double_conv_kernel(%arg0: i32, %arg1: i32, %arg2: memref<1x8x16x128xbf16, #tpu.memory_space<vmem>>, %arg3: memref<1x1x16x128xbf16, #tpu.memory_space<vmem>>, %arg4: memref<1x1x16x128xbf16, #tpu.memory_space<vmem>>, %arg5: memref<1x1x16x128xbf16, #tpu.memory_space<vmem>>, %arg6: memref<1x1x16x128xbf16, #tpu.memory_space<vmem>>, %arg7: memref<9x128x128xbf16, #tpu.memory_space<vmem>>, %arg8: memref<1x128xf32, #tpu.memory_space<vmem>>, %arg9: memref<9x128x128xbf16, #tpu.memory_space<vmem>>, %arg10: memref<1x128xf32, #tpu.memory_space<vmem>>, %arg11: memref<1x8x16x128xbf16, #tpu.memory_space<vmem>>, %arg12: memref<12x40x128xbf16, #tpu.memory_space<vmem>>, %arg13: memref<10x40x128xbf16, #tpu.memory_space<vmem>>) attributes {dimension_semantics = [#tpu.dimension_semantics<parallel>, #tpu.dimension_semantics<parallel>], iteration_bounds = array<i64: 2, 2>, scalar_prefetch = 0 : i64, scratch_operands = 2 : i64, tpu.core_type = #tpu.core_type<tc>, window_params = [{transform_indices = @transform_0, window_bounds = array<i64: 1, 8, 16, 128>}, {transform_indices = @transform_1, window_bounds = array<i64: 1, 1, 16, 128>}, {transform_indices = @transform_2, window_bounds = array<i64: 1, 1, 16, 128>}, {transform_indices = @transform_3, window_bounds = array<i64: 1, 1, 16, 128>}, {transform_indices = @transform_4, window_bounds = array<i64: 1, 1, 16, 128>}, {pipeline_mode = #tpu.pipeline_mode<synchronous>, transform_indices = @transform_5, window_bounds = array<i64: 9, 128, 128>}, {pipeline_mode = #tpu.pipeline_mode<synchronous>, transform_indices = @transform_6, window_bounds = array<i64: 1, 128>}, {pipeline_mode = #tpu.pipeline_mode<synchronous>, transform_indices = @transform_7, window_bounds = array<i64: 9, 128, 128>}, {pipeline_mode = #tpu.pipeline_mode<synchronous>, transform_indices = @transform_8, window_bounds = array<i64: 1, 128>}, {transform_indices = @transform_9, window_bounds = array<i64: 1, 8, 16, 128>}]} {
    %cst = arith.constant 0.000000e+00 : bf16
    %0 = vector.broadcast %cst : bf16 to vector<12x8x128xbf16>
    %c0 = arith.constant 0 : index
    %c8 = arith.constant 8 : index
    %c0_0 = arith.constant 0 : index
    %1 = vector.load %arg12[%c0, %c8, %c0_0] : memref<12x40x128xbf16, #tpu.memory_space<vmem>>, vector<12x8x128xbf16>
    tpu.vector_store %arg12[%c0, %c8, %c0_0], %0 {strides = array<i32>} : memref<12x40x128xbf16, #tpu.memory_space<vmem>>, vector<12x8x128xbf16>,
    %cst_1 = arith.constant 0.000000e+00 : bf16
    %2 = vector.broadcast %cst_1 : bf16 to vector<12x8x128xbf16>
    %c0_2 = arith.constant 0 : index
    %c32 = arith.constant 32 : index
    %c0_3 = arith.constant 0 : index
    %3 = vector.load %arg12[%c0_2, %c32, %c0_3] : memref<12x40x128xbf16, #tpu.memory_space<vmem>>, vector<12x8x128xbf16>
    tpu.vector_store %arg12[%c0_2, %c32, %c0_3], %2 {strides = array<i32>} : memref<12x40x128xbf16, #tpu.memory_space<vmem>>, vector<12x8x128xbf16>,
    %cst_4 = arith.constant 0.000000e+00 : bf16
    %4 = vector.broadcast %cst_4 : bf16 to vector<10x8x128xbf16>
    %c0_5 = arith.constant 0 : index
    %c8_6 = arith.constant 8 : index
    %c0_7 = arith.constant 0 : index
    %5 = vector.load %arg13[%c0_5, %c8_6, %c0_7] : memref<10x40x128xbf16, #tpu.memory_space<vmem>>, vector<10x8x128xbf16>
    tpu.vector_store %arg13[%c0_5, %c8_6, %c0_7], %4 {strides = array<i32>} : memref<10x40x128xbf16, #tpu.memory_space<vmem>>, vector<10x8x128xbf16>,
    %cst_8 = arith.constant 0.000000e+00 : bf16
    %6 = vector.broadcast %cst_8 : bf16 to vector<10x8x128xbf16>
    %c0_9 = arith.constant 0 : index
    %c32_10 = arith.constant 32 : index
    %c0_11 = arith.constant 0 : index
    %7 = vector.load %arg13[%c0_9, %c32_10, %c0_11] : memref<10x40x128xbf16, #tpu.memory_space<vmem>>, vector<10x8x128xbf16>
    tpu.vector_store %arg13[%c0_9, %c32_10, %c0_11], %6 {strides = array<i32>} : memref<10x40x128xbf16, #tpu.memory_space<vmem>>, vector<10x8x128xbf16>,
    %c0_12 = arith.constant 0 : index
    %c0_13 = arith.constant 0 : index
    %c0_14 = arith.constant 0 : index
    %c0_15 = arith.constant 0 : index
    %8 = vector.load %arg2[%c0_12, %c0_13, %c0_14, %c0_15] : memref<1x8x16x128xbf16, #tpu.memory_space<vmem>>, vector<1x8x16x128xbf16>
    %9 = vector.shape_cast %8 : vector<1x8x16x128xbf16> to vector<8x16x128xbf16>
    %c2 = arith.constant 2 : index
    %c16 = arith.constant 16 : index
    %c0_16 = arith.constant 0 : index
    %10 = vector.load %arg12[%c2, %c16, %c0_16] : memref<12x40x128xbf16, #tpu.memory_space<vmem>>, vector<8x16x128xbf16>
    tpu.vector_store %arg12[%c2, %c16, %c0_16], %9 {strides = array<i32>} : memref<12x40x128xbf16, #tpu.memory_space<vmem>>, vector<8x16x128xbf16>,
    %c0_17 = arith.constant 0 : index
    %c0_18 = arith.constant 0 : index
    %c0_19 = arith.constant 0 : index
    %c0_20 = arith.constant 0 : index
    %11 = vector.load %arg3[%c0_17, %c0_18, %c0_19, %c0_20] : memref<1x1x16x128xbf16, #tpu.memory_space<vmem>>, vector<1x1x16x128xbf16>
    %12 = vector.shape_cast %11 : vector<1x1x16x128xbf16> to vector<1x16x128xbf16>
    %c0_21 = arith.constant 0 : index
    %c16_22 = arith.constant 16 : index
    %c0_23 = arith.constant 0 : index
    %13 = vector.load %arg12[%c0_21, %c16_22, %c0_23] : memref<12x40x128xbf16, #tpu.memory_space<vmem>>, vector<1x16x128xbf16>
    tpu.vector_store %arg12[%c0_21, %c16_22, %c0_23], %12 {strides = array<i32>} : memref<12x40x128xbf16, #tpu.memory_space<vmem>>, vector<1x16x128xbf16>,
    %c0_24 = arith.constant 0 : index
    %c0_25 = arith.constant 0 : index
    %c0_26 = arith.constant 0 : index
    %c0_27 = arith.constant 0 : index
    %14 = vector.load %arg4[%c0_24, %c0_25, %c0_26, %c0_27] : memref<1x1x16x128xbf16, #tpu.memory_space<vmem>>, vector<1x1x16x128xbf16>
    %15 = vector.shape_cast %14 : vector<1x1x16x128xbf16> to vector<1x16x128xbf16>
    %c1 = arith.constant 1 : index
    %c16_28 = arith.constant 16 : index
    %c0_29 = arith.constant 0 : index
    %16 = vector.load %arg12[%c1, %c16_28, %c0_29] : memref<12x40x128xbf16, #tpu.memory_space<vmem>>, vector<1x16x128xbf16>
    tpu.vector_store %arg12[%c1, %c16_28, %c0_29], %15 {strides = array<i32>} : memref<12x40x128xbf16, #tpu.memory_space<vmem>>, vector<1x16x128xbf16>,
    %c0_30 = arith.constant 0 : index
    %c0_31 = arith.constant 0 : index
    %c0_32 = arith.constant 0 : index
    %c0_33 = arith.constant 0 : index
    %17 = vector.load %arg5[%c0_30, %c0_31, %c0_32, %c0_33] : memref<1x1x16x128xbf16, #tpu.memory_space<vmem>>, vector<1x1x16x128xbf16>
    %18 = vector.shape_cast %17 : vector<1x1x16x128xbf16> to vector<1x16x128xbf16>
    %c10 = arith.constant 10 : index
    %c16_34 = arith.constant 16 : index
    %c0_35 = arith.constant 0 : index
    %19 = vector.load %arg12[%c10, %c16_34, %c0_35] : memref<12x40x128xbf16, #tpu.memory_space<vmem>>, vector<1x16x128xbf16>
    tpu.vector_store %arg12[%c10, %c16_34, %c0_35], %18 {strides = array<i32>} : memref<12x40x128xbf16, #tpu.memory_space<vmem>>, vector<1x16x128xbf16>,
    %c0_36 = arith.constant 0 : index
    %c0_37 = arith.constant 0 : index
    %c0_38 = arith.constant 0 : index
    %c0_39 = arith.constant 0 : index
    %20 = vector.load %arg6[%c0_36, %c0_37, %c0_38, %c0_39] : memref<1x1x16x128xbf16, #tpu.memory_space<vmem>>, vector<1x1x16x128xbf16>
    %21 = vector.shape_cast %20 : vector<1x1x16x128xbf16> to vector<1x16x128xbf16>
    %c11 = arith.constant 11 : index
    %c16_40 = arith.constant 16 : index
    %c0_41 = arith.constant 0 : index
    %22 = vector.load %arg12[%c11, %c16_40, %c0_41] : memref<12x40x128xbf16, #tpu.memory_space<vmem>>, vector<1x16x128xbf16>
    tpu.vector_store %arg12[%c11, %c16_40, %c0_41], %21 {strides = array<i32>} : memref<12x40x128xbf16, #tpu.memory_space<vmem>>, vector<1x16x128xbf16>,
    %c0_i32 = arith.constant 0 : i32
    %23 = arith.cmpi eq, %arg1, %c0_i32 : i32
    %24 = arith.extui %23 : i1 to i32
    %c0_i32_42 = arith.constant 0 : i32
    %25 = arith.cmpi ne, %24, %c0_i32_42 : i32
    scf.if %25 {
      %cst_180 = arith.constant 0.000000e+00 : bf16
      %157 = vector.broadcast %cst_180 : bf16 to vector<2x16x128xbf16>
      %c0_181 = arith.constant 0 : index
      %c16_182 = arith.constant 16 : index
      %c0_183 = arith.constant 0 : index
      %158 = vector.load %arg12[%c0_181, %c16_182, %c0_183] : memref<12x40x128xbf16, #tpu.memory_space<vmem>>, vector<2x16x128xbf16>
      tpu.vector_store %arg12[%c0_181, %c16_182, %c0_183], %157 {strides = array<i32>} : memref<12x40x128xbf16, #tpu.memory_space<vmem>>, vector<2x16x128xbf16>,
    } else {
    }
    %c1_i32 = arith.constant 1 : i32
    %26 = arith.cmpi eq, %arg1, %c1_i32 : i32
    %27 = arith.extui %26 : i1 to i32
    %c0_i32_43 = arith.constant 0 : i32
    %28 = arith.cmpi ne, %27, %c0_i32_43 : i32
    scf.if %28 {
      %cst_180 = arith.constant 0.000000e+00 : bf16
      %157 = vector.broadcast %cst_180 : bf16 to vector<2x16x128xbf16>
      %c10_181 = arith.constant 10 : index
      %c16_182 = arith.constant 16 : index
      %c0_183 = arith.constant 0 : index
      %158 = vector.load %arg12[%c10_181, %c16_182, %c0_183] : memref<12x40x128xbf16, #tpu.memory_space<vmem>>, vector<2x16x128xbf16>
      tpu.vector_store %arg12[%c10_181, %c16_182, %c0_183], %157 {strides = array<i32>} : memref<12x40x128xbf16, #tpu.memory_space<vmem>>, vector<2x16x128xbf16>,
    } else {
    }
    %c0_44 = arith.constant 0 : index
    %c15 = arith.constant 15 : index
    %c0_45 = arith.constant 0 : index
    %29 = vector.load %arg12[%c0_44, %c15, %c0_45] : memref<12x40x128xbf16, #tpu.memory_space<vmem>>, vector<10x16x128xbf16>
    %30 = vector.shape_cast %29 : vector<10x16x128xbf16> to vector<160x128xbf16>
    %c0_46 = arith.constant 0 : index
    %c0_47 = arith.constant 0 : index
    %c0_48 = arith.constant 0 : index
    %31 = vector.load %arg7[%c0_46, %c0_47, %c0_48] : memref<9x128x128xbf16, #tpu.memory_space<vmem>>, vector<1x128x128xbf16>
    %32 = vector.shape_cast %31 : vector<1x128x128xbf16> to vector<128x128xbf16>
    %cst_49 = arith.constant dense<0.000000e+00> : vector<160x128xf32>
    %33 = tpu.matmul %30, %32, %cst_49 {dimension_numbers = #tpu.dot_dimension_numbers<[1], [0], [0], [1], [0, 0, 1, 1], [], []>} : vector<160x128xbf16>, vector<128x128xbf16>, vector<160x128xf32> -> vector<160x128xf32>
    %c0_50 = arith.constant 0 : index
    %c16_51 = arith.constant 16 : index
    %c0_52 = arith.constant 0 : index
    %34 = vector.load %arg12[%c0_50, %c16_51, %c0_52] : memref<12x40x128xbf16, #tpu.memory_space<vmem>>, vector<10x16x128xbf16>
    %35 = vector.shape_cast %34 : vector<10x16x128xbf16> to vector<160x128xbf16>
    %c1_53 = arith.constant 1 : index
    %c0_54 = arith.constant 0 : index
    %c0_55 = arith.constant 0 : index
    %36 = vector.load %arg7[%c1_53, %c0_54, %c0_55] : memref<9x128x128xbf16, #tpu.memory_space<vmem>>, vector<1x128x128xbf16>
    %37 = vector.shape_cast %36 : vector<1x128x128xbf16> to vector<128x128xbf16>
    %cst_56 = arith.constant dense<0.000000e+00> : vector<160x128xf32>
    %38 = tpu.matmul %35, %37, %cst_56 {dimension_numbers = #tpu.dot_dimension_numbers<[1], [0], [0], [1], [0, 0, 1, 1], [], []>} : vector<160x128xbf16>, vector<128x128xbf16>, vector<160x128xf32> -> vector<160x128xf32>
    %39 = arith.addf %33, %38 : vector<160x128xf32>
    %c0_57 = arith.constant 0 : index
    %c17 = arith.constant 17 : index
    %c0_58 = arith.constant 0 : index
    %40 = vector.load %arg12[%c0_57, %c17, %c0_58] : memref<12x40x128xbf16, #tpu.memory_space<vmem>>, vector<10x16x128xbf16>
    %41 = vector.shape_cast %40 : vector<10x16x128xbf16> to vector<160x128xbf16>
    %c2_59 = arith.constant 2 : index
    %c0_60 = arith.constant 0 : index
    %c0_61 = arith.constant 0 : index
    %42 = vector.load %arg7[%c2_59, %c0_60, %c0_61] : memref<9x128x128xbf16, #tpu.memory_space<vmem>>, vector<1x128x128xbf16>
    %43 = vector.shape_cast %42 : vector<1x128x128xbf16> to vector<128x128xbf16>
    %cst_62 = arith.constant dense<0.000000e+00> : vector<160x128xf32>
    %44 = tpu.matmul %41, %43, %cst_62 {dimension_numbers = #tpu.dot_dimension_numbers<[1], [0], [0], [1], [0, 0, 1, 1], [], []>} : vector<160x128xbf16>, vector<128x128xbf16>, vector<160x128xf32> -> vector<160x128xf32>
    %45 = arith.addf %39, %44 : vector<160x128xf32>
    %c1_63 = arith.constant 1 : index
    %c15_64 = arith.constant 15 : index
    %c0_65 = arith.constant 0 : index
    %46 = vector.load %arg12[%c1_63, %c15_64, %c0_65] : memref<12x40x128xbf16, #tpu.memory_space<vmem>>, vector<10x16x128xbf16>
    %47 = vector.shape_cast %46 : vector<10x16x128xbf16> to vector<160x128xbf16>
    %c3 = arith.constant 3 : index
    %c0_66 = arith.constant 0 : index
    %c0_67 = arith.constant 0 : index
    %48 = vector.load %arg7[%c3, %c0_66, %c0_67] : memref<9x128x128xbf16, #tpu.memory_space<vmem>>, vector<1x128x128xbf16>
    %49 = vector.shape_cast %48 : vector<1x128x128xbf16> to vector<128x128xbf16>
    %cst_68 = arith.constant dense<0.000000e+00> : vector<160x128xf32>
    %50 = tpu.matmul %47, %49, %cst_68 {dimension_numbers = #tpu.dot_dimension_numbers<[1], [0], [0], [1], [0, 0, 1, 1], [], []>} : vector<160x128xbf16>, vector<128x128xbf16>, vector<160x128xf32> -> vector<160x128xf32>
    %51 = arith.addf %45, %50 : vector<160x128xf32>
    %c1_69 = arith.constant 1 : index
    %c16_70 = arith.constant 16 : index
    %c0_71 = arith.constant 0 : index
    %52 = vector.load %arg12[%c1_69, %c16_70, %c0_71] : memref<12x40x128xbf16, #tpu.memory_space<vmem>>, vector<10x16x128xbf16>
    %53 = vector.shape_cast %52 : vector<10x16x128xbf16> to vector<160x128xbf16>
    %c4 = arith.constant 4 : index
    %c0_72 = arith.constant 0 : index
    %c0_73 = arith.constant 0 : index
    %54 = vector.load %arg7[%c4, %c0_72, %c0_73] : memref<9x128x128xbf16, #tpu.memory_space<vmem>>, vector<1x128x128xbf16>
    %55 = vector.shape_cast %54 : vector<1x128x128xbf16> to vector<128x128xbf16>
    %cst_74 = arith.constant dense<0.000000e+00> : vector<160x128xf32>
    %56 = tpu.matmul %53, %55, %cst_74 {dimension_numbers = #tpu.dot_dimension_numbers<[1], [0], [0], [1], [0, 0, 1, 1], [], []>} : vector<160x128xbf16>, vector<128x128xbf16>, vector<160x128xf32> -> vector<160x128xf32>
    %57 = arith.addf %51, %56 : vector<160x128xf32>
    %c1_75 = arith.constant 1 : index
    %c17_76 = arith.constant 17 : index
    %c0_77 = arith.constant 0 : index
    %58 = vector.load %arg12[%c1_75, %c17_76, %c0_77] : memref<12x40x128xbf16, #tpu.memory_space<vmem>>, vector<10x16x128xbf16>
    %59 = vector.shape_cast %58 : vector<10x16x128xbf16> to vector<160x128xbf16>
    %c5 = arith.constant 5 : index
    %c0_78 = arith.constant 0 : index
    %c0_79 = arith.constant 0 : index
    %60 = vector.load %arg7[%c5, %c0_78, %c0_79] : memref<9x128x128xbf16, #tpu.memory_space<vmem>>, vector<1x128x128xbf16>
    %61 = vector.shape_cast %60 : vector<1x128x128xbf16> to vector<128x128xbf16>
    %cst_80 = arith.constant dense<0.000000e+00> : vector<160x128xf32>
    %62 = tpu.matmul %59, %61, %cst_80 {dimension_numbers = #tpu.dot_dimension_numbers<[1], [0], [0], [1], [0, 0, 1, 1], [], []>} : vector<160x128xbf16>, vector<128x128xbf16>, vector<160x128xf32> -> vector<160x128xf32>
    %63 = arith.addf %57, %62 : vector<160x128xf32>
    %c2_81 = arith.constant 2 : index
    %c15_82 = arith.constant 15 : index
    %c0_83 = arith.constant 0 : index
    %64 = vector.load %arg12[%c2_81, %c15_82, %c0_83] : memref<12x40x128xbf16, #tpu.memory_space<vmem>>, vector<10x16x128xbf16>
    %65 = vector.shape_cast %64 : vector<10x16x128xbf16> to vector<160x128xbf16>
    %c6 = arith.constant 6 : index
    %c0_84 = arith.constant 0 : index
    %c0_85 = arith.constant 0 : index
    %66 = vector.load %arg7[%c6, %c0_84, %c0_85] : memref<9x128x128xbf16, #tpu.memory_space<vmem>>, vector<1x128x128xbf16>
    %67 = vector.shape_cast %66 : vector<1x128x128xbf16> to vector<128x128xbf16>
    %cst_86 = arith.constant dense<0.000000e+00> : vector<160x128xf32>
    %68 = tpu.matmul %65, %67, %cst_86 {dimension_numbers = #tpu.dot_dimension_numbers<[1], [0], [0], [1], [0, 0, 1, 1], [], []>} : vector<160x128xbf16>, vector<128x128xbf16>, vector<160x128xf32> -> vector<160x128xf32>
    %69 = arith.addf %63, %68 : vector<160x128xf32>
    %c2_87 = arith.constant 2 : index
    %c16_88 = arith.constant 16 : index
    %c0_89 = arith.constant 0 : index
    %70 = vector.load %arg12[%c2_87, %c16_88, %c0_89] : memref<12x40x128xbf16, #tpu.memory_space<vmem>>, vector<10x16x128xbf16>
    %71 = vector.shape_cast %70 : vector<10x16x128xbf16> to vector<160x128xbf16>
    %c7 = arith.constant 7 : index
    %c0_90 = arith.constant 0 : index
    %c0_91 = arith.constant 0 : index
    %72 = vector.load %arg7[%c7, %c0_90, %c0_91] : memref<9x128x128xbf16, #tpu.memory_space<vmem>>, vector<1x128x128xbf16>
    %73 = vector.shape_cast %72 : vector<1x128x128xbf16> to vector<128x128xbf16>
    %cst_92 = arith.constant dense<0.000000e+00> : vector<160x128xf32>
    %74 = tpu.matmul %71, %73, %cst_92 {dimension_numbers = #tpu.dot_dimension_numbers<[1], [0], [0], [1], [0, 0, 1, 1], [], []>} : vector<160x128xbf16>, vector<128x128xbf16>, vector<160x128xf32> -> vector<160x128xf32>
    %75 = arith.addf %69, %74 : vector<160x128xf32>
    %c2_93 = arith.constant 2 : index
    %c17_94 = arith.constant 17 : index
    %c0_95 = arith.constant 0 : index
    %76 = vector.load %arg12[%c2_93, %c17_94, %c0_95] : memref<12x40x128xbf16, #tpu.memory_space<vmem>>, vector<10x16x128xbf16>
    %77 = vector.shape_cast %76 : vector<10x16x128xbf16> to vector<160x128xbf16>
    %c8_96 = arith.constant 8 : index
    %c0_97 = arith.constant 0 : index
    %c0_98 = arith.constant 0 : index
    %78 = vector.load %arg7[%c8_96, %c0_97, %c0_98] : memref<9x128x128xbf16, #tpu.memory_space<vmem>>, vector<1x128x128xbf16>
    %79 = vector.shape_cast %78 : vector<1x128x128xbf16> to vector<128x128xbf16>
    %cst_99 = arith.constant dense<0.000000e+00> : vector<160x128xf32>
    %80 = tpu.matmul %77, %79, %cst_99 {dimension_numbers = #tpu.dot_dimension_numbers<[1], [0], [0], [1], [0, 0, 1, 1], [], []>} : vector<160x128xbf16>, vector<128x128xbf16>, vector<160x128xf32> -> vector<160x128xf32>
    %81 = arith.addf %75, %80 : vector<160x128xf32>
    %c0_100 = arith.constant 0 : index
    %c0_101 = arith.constant 0 : index
    %82 = vector.load %arg8[%c0_100, %c0_101] : memref<1x128xf32, #tpu.memory_space<vmem>>, vector<1x128xf32>
    %83 = vector.broadcast %82 : vector<1x128xf32> to vector<160x128xf32>
    %84 = arith.addf %81, %83 : vector<160x128xf32>
    %cst_102 = arith.constant 0.000000e+00 : f32
    %85 = vector.broadcast %cst_102 : f32 to vector<160x128xf32>
    %86 = arith.maximumf %84, %85 : vector<160x128xf32>
    %87 = vector.shape_cast %86 : vector<160x128xf32> to vector<10x16x128xf32>
    %88 = arith.truncf %87 : vector<10x16x128xf32> to vector<10x16x128xbf16>
    %c0_103 = arith.constant 0 : index
    %c16_104 = arith.constant 16 : index
    %c0_105 = arith.constant 0 : index
    %89 = vector.load %arg13[%c0_103, %c16_104, %c0_105] : memref<10x40x128xbf16, #tpu.memory_space<vmem>>, vector<10x16x128xbf16>
    tpu.vector_store %arg13[%c0_103, %c16_104, %c0_105], %88 {strides = array<i32>} : memref<10x40x128xbf16, #tpu.memory_space<vmem>>, vector<10x16x128xbf16>,
    %c0_i32_106 = arith.constant 0 : i32
    %90 = arith.cmpi eq, %arg1, %c0_i32_106 : i32
    %91 = arith.extui %90 : i1 to i32
    %c0_i32_107 = arith.constant 0 : i32
    %92 = arith.cmpi ne, %91, %c0_i32_107 : i32
    scf.if %92 {
      %cst_180 = arith.constant 0.000000e+00 : bf16
      %157 = vector.broadcast %cst_180 : bf16 to vector<1x16x128xbf16>
      %c0_181 = arith.constant 0 : index
      %c16_182 = arith.constant 16 : index
      %c0_183 = arith.constant 0 : index
      %158 = vector.load %arg13[%c0_181, %c16_182, %c0_183] : memref<10x40x128xbf16, #tpu.memory_space<vmem>>, vector<1x16x128xbf16>
      tpu.vector_store %arg13[%c0_181, %c16_182, %c0_183], %157 {strides = array<i32>} : memref<10x40x128xbf16, #tpu.memory_space<vmem>>, vector<1x16x128xbf16>,
    } else {
    }
    %c1_i32_108 = arith.constant 1 : i32
    %93 = arith.cmpi eq, %arg1, %c1_i32_108 : i32
    %94 = arith.extui %93 : i1 to i32
    %c0_i32_109 = arith.constant 0 : i32
    %95 = arith.cmpi ne, %94, %c0_i32_109 : i32
    scf.if %95 {
      %cst_180 = arith.constant 0.000000e+00 : bf16
      %157 = vector.broadcast %cst_180 : bf16 to vector<1x16x128xbf16>
      %c9 = arith.constant 9 : index
      %c16_181 = arith.constant 16 : index
      %c0_182 = arith.constant 0 : index
      %158 = vector.load %arg13[%c9, %c16_181, %c0_182] : memref<10x40x128xbf16, #tpu.memory_space<vmem>>, vector<1x16x128xbf16>
      tpu.vector_store %arg13[%c9, %c16_181, %c0_182], %157 {strides = array<i32>} : memref<10x40x128xbf16, #tpu.memory_space<vmem>>, vector<1x16x128xbf16>,
    } else {
    }
    %c0_110 = arith.constant 0 : index
    %c15_111 = arith.constant 15 : index
    %c0_112 = arith.constant 0 : index
    %96 = vector.load %arg13[%c0_110, %c15_111, %c0_112] : memref<10x40x128xbf16, #tpu.memory_space<vmem>>, vector<8x16x128xbf16>
    %97 = vector.shape_cast %96 : vector<8x16x128xbf16> to vector<128x128xbf16>
    %c0_113 = arith.constant 0 : index
    %c0_114 = arith.constant 0 : index
    %c0_115 = arith.constant 0 : index
    %98 = vector.load %arg9[%c0_113, %c0_114, %c0_115] : memref<9x128x128xbf16, #tpu.memory_space<vmem>>, vector<1x128x128xbf16>
    %99 = vector.shape_cast %98 : vector<1x128x128xbf16> to vector<128x128xbf16>
    %cst_116 = arith.constant dense<0.000000e+00> : vector<128x128xf32>
    %100 = tpu.matmul %97, %99, %cst_116 {dimension_numbers = #tpu.dot_dimension_numbers<[1], [0], [0], [1], [0, 0, 1, 1], [], []>} : vector<128x128xbf16>, vector<128x128xbf16>, vector<128x128xf32> -> vector<128x128xf32>
    %c0_117 = arith.constant 0 : index
    %c16_118 = arith.constant 16 : index
    %c0_119 = arith.constant 0 : index
    %101 = vector.load %arg13[%c0_117, %c16_118, %c0_119] : memref<10x40x128xbf16, #tpu.memory_space<vmem>>, vector<8x16x128xbf16>
    %102 = vector.shape_cast %101 : vector<8x16x128xbf16> to vector<128x128xbf16>
    %c1_120 = arith.constant 1 : index
    %c0_121 = arith.constant 0 : index
    %c0_122 = arith.constant 0 : index
    %103 = vector.load %arg9[%c1_120, %c0_121, %c0_122] : memref<9x128x128xbf16, #tpu.memory_space<vmem>>, vector<1x128x128xbf16>
    %104 = vector.shape_cast %103 : vector<1x128x128xbf16> to vector<128x128xbf16>
    %cst_123 = arith.constant dense<0.000000e+00> : vector<128x128xf32>
    %105 = tpu.matmul %102, %104, %cst_123 {dimension_numbers = #tpu.dot_dimension_numbers<[1], [0], [0], [1], [0, 0, 1, 1], [], []>} : vector<128x128xbf16>, vector<128x128xbf16>, vector<128x128xf32> -> vector<128x128xf32>
    %106 = arith.addf %100, %105 : vector<128x128xf32>
    %c0_124 = arith.constant 0 : index
    %c17_125 = arith.constant 17 : index
    %c0_126 = arith.constant 0 : index
    %107 = vector.load %arg13[%c0_124, %c17_125, %c0_126] : memref<10x40x128xbf16, #tpu.memory_space<vmem>>, vector<8x16x128xbf16>
    %108 = vector.shape_cast %107 : vector<8x16x128xbf16> to vector<128x128xbf16>
    %c2_127 = arith.constant 2 : index
    %c0_128 = arith.constant 0 : index
    %c0_129 = arith.constant 0 : index
    %109 = vector.load %arg9[%c2_127, %c0_128, %c0_129] : memref<9x128x128xbf16, #tpu.memory_space<vmem>>, vector<1x128x128xbf16>
    %110 = vector.shape_cast %109 : vector<1x128x128xbf16> to vector<128x128xbf16>
    %cst_130 = arith.constant dense<0.000000e+00> : vector<128x128xf32>
    %111 = tpu.matmul %108, %110, %cst_130 {dimension_numbers = #tpu.dot_dimension_numbers<[1], [0], [0], [1], [0, 0, 1, 1], [], []>} : vector<128x128xbf16>, vector<128x128xbf16>, vector<128x128xf32> -> vector<128x128xf32>
    %112 = arith.addf %106, %111 : vector<128x128xf32>
    %c1_131 = arith.constant 1 : index
    %c15_132 = arith.constant 15 : index
    %c0_133 = arith.constant 0 : index
    %113 = vector.load %arg13[%c1_131, %c15_132, %c0_133] : memref<10x40x128xbf16, #tpu.memory_space<vmem>>, vector<8x16x128xbf16>
    %114 = vector.shape_cast %113 : vector<8x16x128xbf16> to vector<128x128xbf16>
    %c3_134 = arith.constant 3 : index
    %c0_135 = arith.constant 0 : index
    %c0_136 = arith.constant 0 : index
    %115 = vector.load %arg9[%c3_134, %c0_135, %c0_136] : memref<9x128x128xbf16, #tpu.memory_space<vmem>>, vector<1x128x128xbf16>
    %116 = vector.shape_cast %115 : vector<1x128x128xbf16> to vector<128x128xbf16>
    %cst_137 = arith.constant dense<0.000000e+00> : vector<128x128xf32>
    %117 = tpu.matmul %114, %116, %cst_137 {dimension_numbers = #tpu.dot_dimension_numbers<[1], [0], [0], [1], [0, 0, 1, 1], [], []>} : vector<128x128xbf16>, vector<128x128xbf16>, vector<128x128xf32> -> vector<128x128xf32>
    %118 = arith.addf %112, %117 : vector<128x128xf32>
    %c1_138 = arith.constant 1 : index
    %c16_139 = arith.constant 16 : index
    %c0_140 = arith.constant 0 : index
    %119 = vector.load %arg13[%c1_138, %c16_139, %c0_140] : memref<10x40x128xbf16, #tpu.memory_space<vmem>>, vector<8x16x128xbf16>
    %120 = vector.shape_cast %119 : vector<8x16x128xbf16> to vector<128x128xbf16>
    %c4_141 = arith.constant 4 : index
    %c0_142 = arith.constant 0 : index
    %c0_143 = arith.constant 0 : index
    %121 = vector.load %arg9[%c4_141, %c0_142, %c0_143] : memref<9x128x128xbf16, #tpu.memory_space<vmem>>, vector<1x128x128xbf16>
    %122 = vector.shape_cast %121 : vector<1x128x128xbf16> to vector<128x128xbf16>
    %cst_144 = arith.constant dense<0.000000e+00> : vector<128x128xf32>
    %123 = tpu.matmul %120, %122, %cst_144 {dimension_numbers = #tpu.dot_dimension_numbers<[1], [0], [0], [1], [0, 0, 1, 1], [], []>} : vector<128x128xbf16>, vector<128x128xbf16>, vector<128x128xf32> -> vector<128x128xf32>
    %124 = arith.addf %118, %123 : vector<128x128xf32>
    %c1_145 = arith.constant 1 : index
    %c17_146 = arith.constant 17 : index
    %c0_147 = arith.constant 0 : index
    %125 = vector.load %arg13[%c1_145, %c17_146, %c0_147] : memref<10x40x128xbf16, #tpu.memory_space<vmem>>, vector<8x16x128xbf16>
    %126 = vector.shape_cast %125 : vector<8x16x128xbf16> to vector<128x128xbf16>
    %c5_148 = arith.constant 5 : index
    %c0_149 = arith.constant 0 : index
    %c0_150 = arith.constant 0 : index
    %127 = vector.load %arg9[%c5_148, %c0_149, %c0_150] : memref<9x128x128xbf16, #tpu.memory_space<vmem>>, vector<1x128x128xbf16>
    %128 = vector.shape_cast %127 : vector<1x128x128xbf16> to vector<128x128xbf16>
    %cst_151 = arith.constant dense<0.000000e+00> : vector<128x128xf32>
    %129 = tpu.matmul %126, %128, %cst_151 {dimension_numbers = #tpu.dot_dimension_numbers<[1], [0], [0], [1], [0, 0, 1, 1], [], []>} : vector<128x128xbf16>, vector<128x128xbf16>, vector<128x128xf32> -> vector<128x128xf32>
    %130 = arith.addf %124, %129 : vector<128x128xf32>
    %c2_152 = arith.constant 2 : index
    %c15_153 = arith.constant 15 : index
    %c0_154 = arith.constant 0 : index
    %131 = vector.load %arg13[%c2_152, %c15_153, %c0_154] : memref<10x40x128xbf16, #tpu.memory_space<vmem>>, vector<8x16x128xbf16>
    %132 = vector.shape_cast %131 : vector<8x16x128xbf16> to vector<128x128xbf16>
    %c6_155 = arith.constant 6 : index
    %c0_156 = arith.constant 0 : index
    %c0_157 = arith.constant 0 : index
    %133 = vector.load %arg9[%c6_155, %c0_156, %c0_157] : memref<9x128x128xbf16, #tpu.memory_space<vmem>>, vector<1x128x128xbf16>
    %134 = vector.shape_cast %133 : vector<1x128x128xbf16> to vector<128x128xbf16>
    %cst_158 = arith.constant dense<0.000000e+00> : vector<128x128xf32>
    %135 = tpu.matmul %132, %134, %cst_158 {dimension_numbers = #tpu.dot_dimension_numbers<[1], [0], [0], [1], [0, 0, 1, 1], [], []>} : vector<128x128xbf16>, vector<128x128xbf16>, vector<128x128xf32> -> vector<128x128xf32>
    %136 = arith.addf %130, %135 : vector<128x128xf32>
    %c2_159 = arith.constant 2 : index
    %c16_160 = arith.constant 16 : index
    %c0_161 = arith.constant 0 : index
    %137 = vector.load %arg13[%c2_159, %c16_160, %c0_161] : memref<10x40x128xbf16, #tpu.memory_space<vmem>>, vector<8x16x128xbf16>
    %138 = vector.shape_cast %137 : vector<8x16x128xbf16> to vector<128x128xbf16>
    %c7_162 = arith.constant 7 : index
    %c0_163 = arith.constant 0 : index
    %c0_164 = arith.constant 0 : index
    %139 = vector.load %arg9[%c7_162, %c0_163, %c0_164] : memref<9x128x128xbf16, #tpu.memory_space<vmem>>, vector<1x128x128xbf16>
    %140 = vector.shape_cast %139 : vector<1x128x128xbf16> to vector<128x128xbf16>
    %cst_165 = arith.constant dense<0.000000e+00> : vector<128x128xf32>
    %141 = tpu.matmul %138, %140, %cst_165 {dimension_numbers = #tpu.dot_dimension_numbers<[1], [0], [0], [1], [0, 0, 1, 1], [], []>} : vector<128x128xbf16>, vector<128x128xbf16>, vector<128x128xf32> -> vector<128x128xf32>
    %142 = arith.addf %136, %141 : vector<128x128xf32>
    %c2_166 = arith.constant 2 : index
    %c17_167 = arith.constant 17 : index
    %c0_168 = arith.constant 0 : index
    %143 = vector.load %arg13[%c2_166, %c17_167, %c0_168] : memref<10x40x128xbf16, #tpu.memory_space<vmem>>, vector<8x16x128xbf16>
    %144 = vector.shape_cast %143 : vector<8x16x128xbf16> to vector<128x128xbf16>
    %c8_169 = arith.constant 8 : index
    %c0_170 = arith.constant 0 : index
    %c0_171 = arith.constant 0 : index
    %145 = vector.load %arg9[%c8_169, %c0_170, %c0_171] : memref<9x128x128xbf16, #tpu.memory_space<vmem>>, vector<1x128x128xbf16>
    %146 = vector.shape_cast %145 : vector<1x128x128xbf16> to vector<128x128xbf16>
    %cst_172 = arith.constant dense<0.000000e+00> : vector<128x128xf32>
    %147 = tpu.matmul %144, %146, %cst_172 {dimension_numbers = #tpu.dot_dimension_numbers<[1], [0], [0], [1], [0, 0, 1, 1], [], []>} : vector<128x128xbf16>, vector<128x128xbf16>, vector<128x128xf32> -> vector<128x128xf32>
    %148 = arith.addf %142, %147 : vector<128x128xf32>
    %c0_173 = arith.constant 0 : index
    %c0_174 = arith.constant 0 : index
    %149 = vector.load %arg10[%c0_173, %c0_174] : memref<1x128xf32, #tpu.memory_space<vmem>>, vector<1x128xf32>
    %150 = vector.broadcast %149 : vector<1x128xf32> to vector<128x128xf32>
    %151 = arith.addf %148, %150 : vector<128x128xf32>
    %cst_175 = arith.constant 0.000000e+00 : f32
    %152 = vector.broadcast %cst_175 : f32 to vector<128x128xf32>
    %153 = arith.maximumf %151, %152 : vector<128x128xf32>
    %154 = vector.shape_cast %153 : vector<128x128xf32> to vector<1x8x16x128xf32>
    %155 = arith.truncf %154 : vector<1x8x16x128xf32> to vector<1x8x16x128xbf16>
    %c0_176 = arith.constant 0 : index
    %c0_177 = arith.constant 0 : index
    %c0_178 = arith.constant 0 : index
    %c0_179 = arith.constant 0 : index
    %156 = vector.load %arg11[%c0_176, %c0_177, %c0_178, %c0_179] : memref<1x8x16x128xbf16, #tpu.memory_space<vmem>>, vector<1x8x16x128xbf16>
    tpu.vector_store %arg11[%c0_176, %c0_177, %c0_178, %c0_179], %155 {strides = array<i32>} : memref<1x8x16x128xbf16, #tpu.memory_space<vmem>>, vector<1x8x16x128xbf16>,
    return
  }
  func.func @transform_0(%arg0: i32, %arg1: i32) -> (i32, i32, i32, i32) {
    %c0_i32 = arith.constant 0 : i32
    %c0_i32_0 = arith.constant 0 : i32
    %c0_i32_1 = arith.constant 0 : i32
    return %arg0, %arg1, %c0_i32, %c0_i32_0 : i32, i32, i32, i32
  }
  func.func @transform_1(%arg0: i32, %arg1: i32) -> (i32, i32, i32, i32) {
    %c8_i32 = arith.constant 8 : i32
    %0 = arith.muli %arg1, %c8_i32 : i32
    %c2_i32 = arith.constant 2 : i32
    %1 = arith.subi %0, %c2_i32 : i32
    %c0_i32 = arith.constant 0 : i32
    %2 = arith.maxsi %1, %c0_i32 : i32
    %c0_i32_0 = arith.constant 0 : i32
    %c0_i32_1 = arith.constant 0 : i32
    %c0_i32_2 = arith.constant 0 : i32
    return %arg0, %2, %c0_i32_0, %c0_i32_1 : i32, i32, i32, i32
  }
  func.func @transform_2(%arg0: i32, %arg1: i32) -> (i32, i32, i32, i32) {
    %c8_i32 = arith.constant 8 : i32
    %0 = arith.muli %arg1, %c8_i32 : i32
    %c1_i32 = arith.constant 1 : i32
    %1 = arith.subi %0, %c1_i32 : i32
    %c0_i32 = arith.constant 0 : i32
    %2 = arith.maxsi %1, %c0_i32 : i32
    %c0_i32_0 = arith.constant 0 : i32
    %c0_i32_1 = arith.constant 0 : i32
    %c0_i32_2 = arith.constant 0 : i32
    return %arg0, %2, %c0_i32_0, %c0_i32_1 : i32, i32, i32, i32
  }
  func.func @transform_3(%arg0: i32, %arg1: i32) -> (i32, i32, i32, i32) {
    %c1_i32 = arith.constant 1 : i32
    %0 = arith.addi %arg1, %c1_i32 : i32
    %c8_i32 = arith.constant 8 : i32
    %1 = arith.muli %0, %c8_i32 : i32
    %c15_i32 = arith.constant 15 : i32
    %2 = arith.minsi %1, %c15_i32 : i32
    %c0_i32 = arith.constant 0 : i32
    %c0_i32_0 = arith.constant 0 : i32
    %c0_i32_1 = arith.constant 0 : i32
    return %arg0, %2, %c0_i32, %c0_i32_0 : i32, i32, i32, i32
  }
  func.func @transform_4(%arg0: i32, %arg1: i32) -> (i32, i32, i32, i32) {
    %c1_i32 = arith.constant 1 : i32
    %0 = arith.addi %arg1, %c1_i32 : i32
    %c8_i32 = arith.constant 8 : i32
    %1 = arith.muli %0, %c8_i32 : i32
    %c1_i32_0 = arith.constant 1 : i32
    %2 = arith.addi %1, %c1_i32_0 : i32
    %c15_i32 = arith.constant 15 : i32
    %3 = arith.minsi %2, %c15_i32 : i32
    %c0_i32 = arith.constant 0 : i32
    %c0_i32_1 = arith.constant 0 : i32
    %c0_i32_2 = arith.constant 0 : i32
    return %arg0, %3, %c0_i32, %c0_i32_1 : i32, i32, i32, i32
  }
  func.func @transform_5(%arg0: i32, %arg1: i32) -> (i32, i32, i32) {
    %c0_i32 = arith.constant 0 : i32
    %c0_i32_0 = arith.constant 0 : i32
    %c0_i32_1 = arith.constant 0 : i32
    %c0_i32_2 = arith.constant 0 : i32
    return %c0_i32, %c0_i32_0, %c0_i32_1 : i32, i32, i32
  }
  func.func @transform_6(%arg0: i32, %arg1: i32) -> (i32, i32) {
    %c0_i32 = arith.constant 0 : i32
    %c0_i32_0 = arith.constant 0 : i32
    %c0_i32_1 = arith.constant 0 : i32
    return %c0_i32, %c0_i32_0 : i32, i32
  }
  func.func @transform_7(%arg0: i32, %arg1: i32) -> (i32, i32, i32) {
    %c0_i32 = arith.constant 0 : i32
    %c0_i32_0 = arith.constant 0 : i32
    %c0_i32_1 = arith.constant 0 : i32
    %c0_i32_2 = arith.constant 0 : i32
    return %c0_i32, %c0_i32_0, %c0_i32_1 : i32, i32, i32
  }
  func.func @transform_8(%arg0: i32, %arg1: i32) -> (i32, i32) {
    %c0_i32 = arith.constant 0 : i32
    %c0_i32_0 = arith.constant 0 : i32
    %c0_i32_1 = arith.constant 0 : i32
    return %c0_i32, %c0_i32_0 : i32, i32
  }
  func.func @transform_9(%arg0: i32, %arg1: i32) -> (i32, i32, i32, i32) {
    %c0_i32 = arith.constant 0 : i32
    %c0_i32_0 = arith.constant 0 : i32
    %c0_i32_1 = arith.constant 0 : i32
    return %arg0, %arg1, %c0_i32, %c0_i32_0 : i32, i32, i32, i32
  }
}

</mosaic_0001>

<bundles_post_ra>
// kernel: double_conv.1
= control target key start
LH: loop header
LB: loop body
LE: loop exit
PB: predicated region body
PF: predicated region fallthrough
CT: control target
= control target key end

     0   :  { %s10499_s30 = smov 0   ;;  %s10501_s10 = smov 0   ;;  %s12306_s0 = inlined_call_operand.vmem [shape: bf16[2,16,16,128], index: 0, kind: input, shape index: {}, may-alias: {0,1,2,3,4}]   ;;  %s12307_s1 = inlined_call_operand.vmem [shape: bf16[2,16,16,128], index: 1, kind: input, shape index: {}, may-alias: {0,1,2,3,4}]   ;;  %s12308_s2 = inlined_call_operand.vmem [shape: bf16[2,16,16,128], index: 2, kind: input, shape index: {}, may-alias: {0,1,2,3,4}]   ;;  %s12309_s3 = inlined_call_operand.vmem [shape: bf16[2,16,16,128], index: 3, kind: input, shape index: {}, may-alias: {0,1,2,3,4}]   ;;  %s12310_s4 = inlined_call_operand.vmem [shape: bf16[2,16,16,128], index: 4, kind: input, shape index: {}, may-alias: {0,1,2,3,4}]   ;;  %s12311_s5 = inlined_call_operand.vmem [shape: bf16[9,128,128], index: 5, kind: input, shape index: {}]   ;;  %s12312_s6 = inlined_call_operand.vmem [shape: f32[1,128], index: 6, kind: input, shape index: {}]   ;;  %s12313_s7 = inlined_call_operand.vmem [shape: bf16[9,128,128], index: 7, kind: input, shape index: {}]   ;;  %s12314_s8 = inlined_call_operand.vmem [shape: f32[1,128], index: 8, kind: input, shape index: {}]   ;;  %s12315_s9 = inlined_call_operand.vmem [shape: bf16[2,16,16,128], index: 9, kind: output, shape index: {}]  }
   0x1   :  { %12316 = sst [smem:[#allocation4_spill]] %s12306_s0  ;;  %s10503_s11 = smov 0  }
   0x2   :  { %12317 = sst [smem:[#allocation5_spill]] %s12315_s9  ;;  %s10505_s12 = smov 0  }
   0x3   :  { %s10507_s13 = smov 0  }
   0x4 LB: > { %s28_s14 = sadd.s32 1, %s10434_s11  ;;  %s31_s15 = sadd.s32 1, %s10438_s12  ;;  %s10442_s13 = sphi %s10507_s13, %s19_s13   ;;  %s10438_s12 = sphi %s10505_s12, %s12328_s12   ;;  %s10434_s11 = sphi %s10503_s11, %s12327_s11   ;;  %s10430_s10 = sphi %s10501_s10, %s12326_s10   ;;  %s10426_s30 = sphi %s10499_s30, %s12325_s30  }
   0x5   : > { %p29_p0 = scmp.ge.s32.totalorder %s28_s14, 2  ;;  %p8103_p1 = scmp.ge.s32.totalorder %s10442_s13, 1 }
   0x6   : > { %p441_p2 = scmp.lt.s32.totalorder %s10442_s13, 5 }
   0x7   : > { %s12330_s14 = smov (%p29_p0, %s28_s14), 0  ;;  %s12332_s15 = smov (!%p29_p0, %s31_s15), %s10438_s12 }
   0x8   : > { %p442_p3 = pnand %p8103_p1, %p441_p2  ;;  %p33_p4 = scmp.ge.s32.totalorder %s12332_s15, 2 }
   0x9   : > { %s10534_s16 = sshll.u32 (!%p442_p3), %s10426_s30, 3  ;;  %p541_p5 = scmp.lt.s32.totalorder (!%p442_p3), %s10430_s10, 1  ;;  %v10444_v0 = vmov (!%p442_p3), 0  }
   0xa   : > { %s12334_s15 = smov (%p33_p4, %s12332_s15), 0  ;;  %445 = sbr.rel (%p442_p3) target bundleno = 1168 (0x490), region = 56 }
   0xb   : > { %633 = vst [vmem:[#allocation2 + $0x4] sm:$0xf] (!%p442_p3), %v10444_v0  ;;  %634 = vst [vmem:[#allocation2 + $0x18] sm:$0xf] (!%p442_p3), %v10444_v0  ;;  %p543_p6 = scmp.lt.s32.totalorder (!%p442_p3), %s10534_s16, 15  ;;  %s10539_s17 = sadd.s32 (!%p442_p3), 4294967294, %s10534_s16 }
   0xc   : > { %635 = vst [vmem:[#allocation2 + $0x2c] sm:$0xf] (!%p442_p3), %v10444_v0  ;;  %636 = vst [vmem:[#allocation2 + $0x40] sm:$0xf] (!%p442_p3), %v10444_v0  ;;  %p553_p7 = scmp.gt.s32.totalorder (!%p442_p3), %s10539_s17, 0  ;;  %p8110_p8 = scmp.lt.s32.totalorder (!%p442_p3), %s10539_s17, 15 }
   0xd   : > { %637 = vst [vmem:[#allocation2 + $0x54] sm:$0xf] (!%p442_p3), %v10444_v0  ;;  %638 = vst [vmem:[#allocation2 + $0x68] sm:$0xf] (!%p442_p3), %v10444_v0  ;;  %s10551_s22 = sadd.s32 (!%p442_p3), 4294967295, %s10534_s16  ;;  %s12318_s0 = sld [smem:[#allocation4_spill]] (!%p442_p3) }
   0xe   : > { %639 = vst [vmem:[#allocation2 + $0x7c] sm:$0xf] (!%p442_p3), %v10444_v0  ;;  %640 = vst [vmem:[#allocation2 + $0x90] sm:$0xf] (!%p442_p3), %v10444_v0  ;;  %p570_p9 = scmp.gt.s32.totalorder (!%p442_p3), %s10551_s22, 0  ;;  %s12319_s9 = sld [smem:[#allocation5_spill]] (!%p442_p3) }
   0xf   : > { %641 = vst [vmem:[#allocation2 + $0xa4] sm:$0xf] (!%p442_p3), %v10444_v0  ;;  %642 = vst [vmem:[#allocation2 + $0xb8] sm:$0xf] (!%p442_p3), %v10444_v0  ;;  %p8120_p10 = scmp.lt.s32.totalorder (!%p442_p3), %s10551_s22, 15  ;;  %p8146_p13 = scmp.ne.s32.totalorder (!%p442_p3), %s10426_s30, 0 }
  0x10   : > { %643 = vst [vmem:[#allocation2 + $0xcc] sm:$0xf] (!%p442_p3), %v10444_v0  ;;  %644 = vst [vmem:[#allocation2 + $0xe0] sm:$0xf] (!%p442_p3), %v10444_v0 }
  0x11   : > { %645 = vst [vmem:[#allocation2 + $0x10] sm:$0xf] %v10444_v0  ;;  %646 = vst [vmem:[#allocation2 + $0x24] sm:$0xf] %v10444_v0  ;;  %s12336_s10 = smov (!%p541_p5, %s10430_s10), 1  ;;  %v10445_v13 = vmov (!%p8146_p13), 0  }
  0x12   : > { %647 = vst [vmem:[#allocation2 + $0x38] sm:$0xf] %v10444_v0  ;;  %648 = vst [vmem:[#allocation2 + $0x4c] sm:$0xf] %v10444_v0  ;;  %s544_s18 = scalar_select %p543_p6, %s10534_s16, 15 }
  0x13   : > { %649 = vst [vmem:[#allocation2 + $0x60] sm:$0xf] %v10444_v0  ;;  %650 = vst [vmem:[#allocation2 + $0x74] sm:$0xf] %v10444_v0  ;;  %s10545_s19 = sshll.u32 %s12336_s10, 5 }
  0x14   : > { %651 = vst [vmem:[#allocation2 + $0x88] sm:$0xf] %v10444_v0  ;;  %652 = vst [vmem:[#allocation2 + $0x9c] sm:$0xf] %v10444_v0  ;;  %s8105_s20 = sshll.u32 %s544_s18, 1 }
  0x15   : > { %653 = vst [vmem:[#allocation2 + $0xb0] sm:$0xf] %v10444_v0  ;;  %654 = vst [vmem:[#allocation2 + $0xc4] sm:$0xf] %v10444_v0  ;;  %s547_s21 = sadd.s32 %s10545_s19, %s8105_s20  ;;  %s8819_s20 = sadd.s32 8, %s10534_s16 }
  0x16   : > { %655 = vst [vmem:[#allocation2 + $0xd8] sm:$0xf] %v10444_v0  ;;  %656 = vst [vmem:[#allocation2 + $0xec] sm:$0xf] %v10444_v0  ;;  %s8107_s23 = sshll.u32 %s547_s21, 2  ;;  %p587_p11 = scmp.lt.s32.totalorder %s8819_s20, 15 }
  0x17   : > { %657 = vst [vmem:[#allocation3 + $0x4] sm:$0xf] %v10444_v0  ;;  %658 = vst [vmem:[#allocation3 + $0x18] sm:$0xf] %v10444_v0  ;;  %s549_s26 = scalar_lea.vmem %s12318_s0, %s8107_s23  ;;  %s10560_s29 = scalar_lea.vmem %s12319_s9, %s8107_s23 }
  0x18   : > { %659 = vst [vmem:[#allocation3 + $0x2c] sm:$0xf] %v10444_v0  ;;  %660 = vst [vmem:[#allocation3 + $0x40] sm:$0xf] %v10444_v0  ;;  %v677_v1 = vld [vmem:[%s549_s26] sm:$0xff]   ;;  %v679_v2 = vld [vmem:[%s549_s26 + $0x8] sm:$0xff]  }
  0x19   : > { %661 = vst [vmem:[#allocation3 + $0x54] sm:$0xf] %v10444_v0  ;;  %662 = vst [vmem:[#allocation3 + $0x68] sm:$0xf] %v10444_v0  ;;  %v681_v3 = vld [vmem:[%s549_s26 + $0x10] sm:$0xff]   ;;  %s554_s10 = scalar_select %p553_p7, %s10539_s17, 0 }
  0x1a   : > { %663 = vst [vmem:[#allocation3 + $0x7c] sm:$0xf] %v10444_v0  ;;  %664 = vst [vmem:[#allocation3 + $0x90] sm:$0xf] %v10444_v0  ;;  %v683_v4 = vld [vmem:[%s549_s26 + $0x18] sm:$0xff]   ;;  %v685_v5 = vld [vmem:[%s549_s26 + $0x20] sm:$0xff]  }
  0x1b   : > { %665 = vst [vmem:[#allocation3 + $0xa4] sm:$0xf] %v10444_v0  ;;  %666 = vst [vmem:[#allocation3 + $0xb8] sm:$0xf] %v10444_v0  ;;  %v687_v6 = vld [vmem:[%s549_s26 + $0x28] sm:$0xff]   ;;  %s571_s18 = scalar_select %p570_p9, %s10551_s22, 0 }
  0x1c   : > { %667 = vst [vmem:[#allocation3 + $0x10] sm:$0xf] %v10444_v0  ;;  %668 = vst [vmem:[#allocation3 + $0x24] sm:$0xf] %v10444_v0  ;;  %v689_v7 = vld [vmem:[%s549_s26 + $0x30] sm:$0xff]   ;;  %v691_v8 = vld [vmem:[%s549_s26 + $0x38] sm:$0xff]  }
  0x1d   : > { %669 = vst [vmem:[#allocation3 + $0x38] sm:$0xf] %v10444_v0  ;;  %670 = vst [vmem:[#allocation3 + $0x4c] sm:$0xf] %v10444_v0  ;;  %s12338_s10 = smov (!%p8110_p8, %s554_s10), 15  ;;  %s604_s0 = sadd.s32 1, %s8819_s20 }
  0x1e   : > { %671 = vst [vmem:[#allocation3 + $0x60] sm:$0xf] %v10444_v0  ;;  %672 = vst [vmem:[#allocation3 + $0x74] sm:$0xf] %v10444_v0  ;;  %s8115_s21 = sshll.u32 %s12338_s10, 1  ;;  %s12340_s18 = smov (!%p8120_p10, %s571_s18), 15 }
  0x1f   : > { %673 = vst [vmem:[#allocation3 + $0x88] sm:$0xf] %v10444_v0  ;;  %674 = vst [vmem:[#allocation3 + $0x9c] sm:$0xf] %v10444_v0  ;;  %s561_s23 = sadd.s32 %s8115_s21, %s10545_s19  ;;  %s8125_s26 = sshll.u32 %s12340_s18, 1 }
  0x20   : > { %675 = vst [vmem:[#allocation3 + $0xb0] sm:$0xf] %v10444_v0  ;;  %676 = vst [vmem:[#allocation3 + $0xc4] sm:$0xf] %v10444_v0  ;;  %s8117_s24 = sshll.u32 %s561_s23, 2  ;;  %s578_s9 = sadd.s32 %s8125_s26, %s10545_s19 }
  0x21   : > { %694 = vst [vmem:[#allocation2 + $0x30] sm:$0xff] %v677_v1   ;;  %696 = vst [vmem:[#allocation2 + $0x44] sm:$0xff] %v679_v2   ;;  %s563_s28 = scalar_lea.vmem %s12307_s1, %s8117_s24  ;;  %p10574_p12 = scmp.lt.s32.totalorder %s604_s0, 15 }
  0x22   : > { %698 = vst [vmem:[#allocation2 + $0x58] sm:$0xff] %v681_v3   ;;  %700 = vst [vmem:[#allocation2 + $0x6c] sm:$0xff] %v683_v4   ;;  %v710_v9 = vld [vmem:[%s563_s28] sm:$0xff]   ;;  %s588_s17 = scalar_select %p587_p11, %s8819_s20, 15 }
  0x23   : > { %702 = vst [vmem:[#allocation2 + $0x80] sm:$0xff] %v685_v5   ;;  %704 = vst [vmem:[#allocation2 + $0x94] sm:$0xff] %v687_v6   ;;  %s8127_s22 = sshll.u32 %s578_s9, 2  ;;  %s12344_s0 = smov (!%p10574_p12, %s604_s0), 15 }
  0x24   : > { %706 = vst [vmem:[#allocation2 + $0xa8] sm:$0xff] %v689_v7   ;;  %708 = vst [vmem:[#allocation2 + $0xbc] sm:$0xff] %v691_v8   ;;  %s580_s23 = scalar_lea.vmem %s12308_s2, %s8127_s22  ;;  %s12342_s17 = smov (!%p587_p11, %s588_s17), 15 }
  0x25   : > { %712 = vst [vmem:[#allocation2 + $0x8] sm:$0xff] %v710_v9   ;;  %v714_v10 = vld [vmem:[%s580_s23] sm:$0xff]   ;;  %s8132_s18 = sshll.u32 %s12342_s17, 1  ;;  %s12346_s0 = smov (!%p10574_p12, %s12344_s0), 15 }
  0x26   : > { %717 = vst [vmem:[#allocation2 + $0x1c] sm:$0xff] %v714_v10   ;;  %s595_s24 = sadd.s32 %s8132_s18, %s10545_s19  ;;  %s8139_s9 = sshll.u32 %s12346_s0, 1  ;;  %733 = vst [vmem:[#allocation2 + $0x8] sm:$0xf] (!%p8146_p13), %v10445_v13 }
  0x27   : > { %s8134_s25 = sshll.u32 %s595_s24, 2  ;;  %s613_s10 = sadd.s32 %s8139_s9, %s10545_s19  ;;  %734 = vst [vmem:[#allocation2 + $0xc] sm:$0xf] (!%p8146_p13), %v10445_v13  ;;  %735 = vst [vmem:[#allocation2 + $0x1c] sm:$0xf] (!%p8146_p13), %v10445_v13 }
  0x28   : > { %s597_s26 = scalar_lea.vmem %s12309_s3, %s8134_s25  ;;  %s8141_s22 = sshll.u32 %s613_s10, 2  ;;  %736 = vst [vmem:[#allocation2 + $0x20] sm:$0xf] (!%p8146_p13), %v10445_v13 }
  0x29   : > { %v719_v11 = vld [vmem:[%s597_s26] sm:$0xff]   ;;  %s615_s23 = scalar_lea.vmem %s12310_s4, %s8141_s22  ;;  %732 = sbr.rel (%p8146_p13) target bundleno = 48 (0x30), region = 60 }
  0x2a   : > { %722 = vst [vmem:[#allocation2 + $0xd0] sm:$0xff] %v719_v11   ;;  %v724_v12 = vld [vmem:[%s615_s23] sm:$0xff]  }
  0x2b   : > { %727 = vst [vmem:[#allocation2 + $0xe4] sm:$0xff] %v724_v12  }
  0x30 PF: > { %p8147_p0 = scmp.ne.s32.totalorder %s10426_s30, 1 }
  0x31   : > { %v10446_v14 = vmov (!%p8147_p0), 0  }
  0x32   : > { %740 = sbr.rel (%p8147_p0) target bundleno = 57 (0x39), region = 64  ;;  %741 = vst [vmem:[#allocation2 + $0xd0] sm:$0xf] (!%p8147_p0), %v10446_v14  ;;  %742 = vst [vmem:[#allocation2 + $0xd4] sm:$0xf] (!%p8147_p0), %v10446_v14 }
  0x33   : > { %743 = vst [vmem:[#allocation2 + $0xe4] sm:$0xf] (!%p8147_p0), %v10446_v14  ;;  %744 = vst [vmem:[#allocation2 + $0xe8] sm:$0xf] (!%p8147_p0), %v10446_v14 }
  0x39 PF: > { %v10186_v15 = vld [vmem:[%s12311_s5] sm:$0xff]   ;;  %v10187_v16 = vld [vmem:[%s12311_s5 + $0x8] sm:$0xff]   ;;  %v10188_v17 = vld [vmem:[%s12311_s5 + $0x10] sm:$0xff]   ;;  %vm775_vm0 = vsmask.f32 256 }
  0x3a   : > { %9277 = vmatprep.subr.bf16.mxu0 %v10186_v15  ;;  %v10189_v18 = vld [vmem:[%s12311_s5 + $0x18] sm:$0xff]   ;;  %v745_v19 = vld [vmem:[#allocation2 + $0x4] sm:$0x8]  ;;  %v746_v20 = vld [vmem:[#allocation2 + $0x8] sm:$0xf] }
  0x3b   : > { %9278 = vmatpush3.bf16.msra.mxu0 %v10186_v15  ;;  %v747_v21 = vld [vmem:[#allocation2 + $0xc] sm:$0xf]  ;;  %vm776_vm1 = vsmask.f32 4368  ;;  %v779_v22 = vshrl.u32 %v745_v19, 16  ;;  %v784_v23 = vshrl.u32 %v746_v20, 16 }
  0x3c   : > { %9279 = vmatprep.subr.bf16.mxu0 %v10187_v16  ;;  %v10190_v24 = vld [vmem:[%s12311_s5 + $0x20] sm:$0xff]   ;;  %v787_v25 = vshll.u32 %v746_v20, 16  ;;  %v793_v26 = vshrl.u32 %v747_v21, 16  ;;  %v796_v27 = vshll.u32 %v747_v21, 16  ;;  %v748_v28 = vld [vmem:[#allocation2 + $0x18] sm:$0x8]  ;;  %vm10616_vm2 = vmor %vm775_vm0, %vm776_vm1 }
  0x3d   : > { %v8148_v29 = vrot.slane %v779_v22, 11  ;;  %v786_v30 = vrot.slane %v784_v23, 7  ;;  %v749_v31 = vld [vmem:[#allocation2 + $0x1c] sm:$0xf]  ;;  %v750_v32 = vld [vmem:[#allocation2 + $0x20] sm:$0xf] }
  0x3e   : > { %v795_v34 = vrot.slane %v793_v26, 7  ;;  %v801_v35 = vshrl.u32 %v748_v28, 16  ;;  %v806_v36 = vshrl.u32 %v749_v31, 16  ;;  %v809_v37 = vshll.u32 %v749_v31, 16  ;;  %v10191_v45 = vld [vmem:[%s12311_s5 + $0x28] sm:$0xff]   ;;  %v10192_v5 = vld [vmem:[%s12311_s5 + $0x30] sm:$0xff]  }
  0x3f   : > { %9280 = vmatpush3.bf16.msra.mxu0 %v10187_v16  ;;  %v789_v38 = vor.u32 %v787_v25, %v786_v30  ;;  %v791_v39 = vrot.slane %v786_v30, 4  ;;  %v815_v40 = vshrl.u32 %v750_v32, 16  ;;  %v818_v41 = vshll.u32 %v750_v32, 16  ;;  %v751_v48 = vld [vmem:[#allocation2 + $0x2c] sm:$0x8] }
  0x40   : > { %9281 = vmatprep.subr.bf16.mxu0 %v10188_v17  ;;  %v798_v42 = vor.u32 %v796_v27, %v795_v34  ;;  %v8149_v43 = vrot.slane %v801_v35, 11  ;;  %v808_v44 = vrot.slane %v806_v36, 7  ;;  %v752_v49 = vld [vmem:[#allocation2 + $0x30] sm:$0xf]  ;;  %v753_v53 = vld [vmem:[#allocation2 + $0x34] sm:$0xf] }
  0x41   : > { %v790_v46 = vsel %vm10616_vm2, %v8148_v29, %v789_v38  ;;  %v817_v47 = vrot.slane %v815_v40, 7  ;;  %v823_v54 = vshrl.u32 %v751_v48, 16  ;;  %v754_v55 = vld [vmem:[#allocation2 + $0x40] sm:$0x8]  ;;  %v828_v58 = vshrl.u32 %v752_v49, 16 }
  0x42   : > { %v799_v50 = vsel %vm10616_vm2, %v791_v39, %v798_v42  ;;  %v811_v51 = vor.u32 %v809_v37, %v808_v44  ;;  %v813_v52 = vrot.slane %v808_v44, 4  ;;  %v831_v59 = vshll.u32 %v752_v49, 16  ;;  %v755_v60 = vld [vmem:[#allocation2 + $0x44] sm:$0xf]  ;;  %v756_v61 = vld [vmem:[#allocation2 + $0x48] sm:$0xf] }
  0x43   : > { %9282 = vmatpush3.bf16.msra.mxu0 %v10188_v17  ;;  %v8192_v56 = vcombine.low %v790_v46, %v799_v50  ;;  %v820_v57 = vor.u32 %v818_v41, %v817_v47  ;;  %v837_v63 = vshrl.u32 %v753_v53, 16  ;;  %v840_v0 = vshll.u32 %v753_v53, 16  ;;  %v757_v10 = vld [vmem:[#allocation2 + $0x54] sm:$0x8]  ;;  %v758_v15 = vld [vmem:[#allocation2 + $0x58] sm:$0xf] }
  0x44   : > { %9283 = vmatprep.subr.bf16.mxu0 %v10189_v18  ;;  %v812_v62 = vsel %vm10616_vm2, %v8149_v43, %v811_v51  ;;  %v10629_v1 = vrot.slane %v823_v54, 11  ;;  %v830_v2 = vrot.slane %v828_v58, 7  ;;  %v845_v3 = vshrl.u32 %v754_v55, 16  ;;  %v759_v19 = vld [vmem:[#allocation2 + $0x5c] sm:$0xf]  ;;  %v10194_v40 = vld [vmem:[%s12311_s5 + $0x80] sm:$0xff]  }
  0x45   : > { %9293 = vmatprep.mubr.bf16.mxu0 %v8192_v56  ;;  %v850_v4 = vshrl.u32 %v755_v60, 16  ;;  %v821_v6 = vsel %vm10616_vm2, %v813_v52, %v820_v57  ;;  %v839_v7 = vrot.slane %v837_v63, 7  ;;  %v853_v8 = vshll.u32 %v755_v60, 16  ;;  %v760_v28 = vld [vmem:[#allocation2 + $0x68] sm:$0x8] }
  0x46   : > { %v859_v9 = vshrl.u32 %v756_v61, 16  ;;  %v833_v11 = vor.u32 %v831_v59, %v830_v2  ;;  %v835_v12 = vrot.slane %v830_v2, 4  ;;  %v8151_v13 = vrot.slane %v845_v3, 11  ;;  %v761_v29 = vld [vmem:[#allocation2 + $0x6c] sm:$0xf] }
  0x47   : > { %9284 = vmatpush3.bf16.msra.mxu0 %v10189_v18  ;;  %v852_v14 = vrot.slane %v850_v4, 7  ;;  %v842_v16 = vor.u32 %v840_v0, %v839_v7  ;;  %v862_v18 = vshll.u32 %v756_v61, 16  ;;  %v867_v20 = vshrl.u32 %v757_v10, 16  ;;  %v762_v35 = vld [vmem:[#allocation2 + $0x70] sm:$0xf]  ;;  %v10195_v3 = vld [vmem:[%s12311_s5 + $0x88] sm:$0xff]  }
  0x48   : > { %9285 = vmatprep.subr.bf16.mxu0 %v10190_v24  ;;  %v861_v17 = vrot.slane %v859_v9, 7  ;;  %v872_v23 = vshrl.u32 %v758_v15, 16  ;;  %v8193_v25 = vcombine.low %v812_v62, %v821_v6  ;;  %v875_v27 = vshll.u32 %v758_v15, 16  ;;  %v764_v46 = vld [vmem:[#allocation2 + $0x80] sm:$0xf] }
  0x49   : > { %v855_v21 = vor.u32 %v853_v8, %v852_v14  ;;  %v857_v22 = vrot.slane %v852_v14, 4  ;;  %v834_v30 = vsel %vm10616_vm2, %v10629_v1, %v833_v11  ;;  %v843_v31 = vsel %vm10616_vm2, %v835_v12, %v842_v16  ;;  %v765_v51 = vld [vmem:[#allocation2 + $0x84] sm:$0xf]  ;;  %v766_v56 = vld [vmem:[#allocation2 + $0x90] sm:$0x8] }
  0x4a   : > { %v864_v26 = vor.u32 %v862_v18, %v861_v17  ;;  %v874_v32 = vrot.slane %v872_v23, 7  ;;  %v881_v34 = vshrl.u32 %v759_v19, 16  ;;  %v10644_v36 = vrot.slane %v867_v20, 11  ;;  %v767_v61 = vld [vmem:[#allocation2 + $0x94] sm:$0xf] }
  0x4b   : > { %9286 = vmatpush3.bf16.msra.mxu0 %v10190_v24  ;;  %v10193_v24 = vld [vmem:[%s12311_s5 + $0x38] sm:$0xff]   ;;  %v884_v37 = vshll.u32 %v759_v19, 16  ;;  %v889_v38 = vshrl.u32 %v760_v28, 16  ;;  %v894_v39 = vshrl.u32 %v761_v29, 16  ;;  %v856_v41 = vsel %vm10616_vm2, %v8151_v13, %v855_v21  ;;  %v769_v16 = vld [vmem:[#allocation2 + $0xa4] sm:$0x8] }
  0x4c   : > { %9287 = vmatprep.subr.bf16.mxu0 %v10191_v45  ;;  %v865_v42 = vsel %vm10616_vm2, %v857_v22, %v864_v26  ;;  %v877_v43 = vor.u32 %v875_v27, %v874_v32  ;;  %v883_v44 = vrot.slane %v881_v34, 7  ;;  %v879_v47 = vrot.slane %v874_v32, 4  ;;  %v768_v2 = vld [vmem:[#allocation2 + $0x98] sm:$0xf]  ;;  %v770_v17 = vld [vmem:[#allocation2 + $0xa8] sm:$0xf] }
  0x4d   : > { %v896_v48 = vrot.slane %v894_v39, 7  ;;  %v897_v49 = vshll.u32 %v761_v29, 16  ;;  %v903_v50 = vshrl.u32 %v762_v35, 16  ;;  %v8153_v53 = vrot.slane %v889_v38, 11  ;;  %v10196_v18 = vld [vmem:[%s12311_s5 + $0x90] sm:$0xff]  }
  0x4e   : > { %v886_v52 = vor.u32 %v884_v37, %v883_v44  ;;  %v906_v54 = vshll.u32 %v762_v35, 16  ;;  %v916_v60 = vshrl.u32 %v764_v46, 16  ;;  %v8194_v62 = vcombine.low %v834_v30, %v843_v31  ;;  %v771_v23 = vld [vmem:[#allocation2 + $0xac] sm:$0xf]  ;;  %v772_v28 = vld [vmem:[#allocation2 + $0xb8] sm:$0x8] }
  0x4f   : > { %9288 = vmatpush3.bf16.msra.mxu0 %v10191_v45  ;;  %v763_v45 = vld [vmem:[#allocation2 + $0x7c] sm:$0x8]  ;;  %v899_v57 = vor.u32 %v897_v49, %v896_v48  ;;  %v901_v58 = vrot.slane %v896_v48, 4  ;;  %v905_v59 = vrot.slane %v903_v50, 7  ;;  %v8195_v63 = vcombine.low %v856_v41, %v865_v42  ;;  %v774_v39 = vld [vmem:[#allocation2 + $0xc0] sm:$0xf] }
  0x50   : > { %9289 = vmatprep.subr.bf16.mxu0 %v10192_v5  ;;  %v911_v55 = vshrl.u32 %v763_v45, 16  ;;  %v919_v0 = vshll.u32 %v764_v46, 16  ;;  %v925_v1 = vshrl.u32 %v765_v51, 16  ;;  %v878_v4 = vsel %vm10616_vm2, %v10644_v36, %v877_v43  ;;  %v773_v34 = vld [vmem:[#allocation2 + $0xbc] sm:$0xf] }
  0x51   : > { %v908_v6 = vor.u32 %v906_v54, %v905_v59  ;;  %v918_v7 = vrot.slane %v916_v60, 7  ;;  %v928_v9 = vshll.u32 %v765_v51, 16  ;;  %v933_v10 = vshrl.u32 %v766_v56, 16  ;;  %v10197_v44 = vld [vmem:[%s12311_s5 + $0x98] sm:$0xff]   ;;  %v1455_v59 = vld [vmem:[#allocation2 + $0x10] sm:$0x1] }
  0x52   : > { %v927_v8 = vrot.slane %v925_v1, 7  ;;  %v938_v11 = vshrl.u32 %v767_v61, 16  ;;  %v900_v12 = vsel %vm10616_vm2, %v8153_v53, %v899_v57  ;;  %v10663_v13 = vrot.slane %v911_v55, 11  ;;  %v1453_v53 = vld [vmem:[#allocation2 + $0x8] sm:$0xf] }
  0x53   : > { %9290 = vmatpush3.bf16.msra.mxu0 %v10192_v5  ;;  %v887_v5 = vsel %vm10616_vm2, %v879_v47, %v886_v52  ;;  %v10665_v14 = vor.u32 %v919_v0, %v918_v7  ;;  %v941_v15 = vshll.u32 %v767_v61, 16  ;;  %v909_v19 = vsel %vm10616_vm2, %v901_v58, %v908_v6  ;;  %v1454_v58 = vld [vmem:[#allocation2 + $0xc] sm:$0xf]  ;;  %v1456_v1 = vld [vmem:[#allocation2 + $0x1c] sm:$0xf] }
  0x54   : > { %9291 = vmatprep.subr.bf16.mxu0 %v10193_v24  ;;  %v923_v20 = vrot.slane %v918_v7, 4  ;;  %v930_v21 = vor.u32 %v928_v9, %v927_v8  ;;  %v940_v22 = vrot.slane %v938_v11, 7  ;;  %v950_v26 = vshll.u32 %v768_v2, 16 }
  0x55   : > { %v955_v27 = vshrl.u32 %v769_v16, 16  ;;  %v8196_v29 = vcombine.low %v878_v4, %v887_v5  ;;  %v960_v32 = vshrl.u32 %v770_v17, 16  ;;  %v10672_v35 = vcombine.low %v900_v12, %v909_v19  ;;  %v1457_v4 = vld [vmem:[#allocation2 + $0x20] sm:$0xf] }
  0x56   : > { %v943_v30 = vor.u32 %v941_v15, %v940_v22  ;;  %v945_v31 = vrot.slane %v940_v22, 4  ;;  %v922_v36 = vsel %vm10616_vm2, %v10663_v13, %v10665_v14  ;;  %v963_v38 = vshll.u32 %v770_v17, 16  ;;  %v1458_v17 = vld [vmem:[#allocation2 + $0x24] sm:$0x1] }
  0x57   : > { %9292 = vmatpush3.bf16.msra.mxu0 %v10193_v24  ;;  %v8155_v24 = vrot.slane %v933_v10, 11  ;;  %v962_v41 = vrot.slane %v960_v32, 7  ;;  %v969_v42 = vshrl.u32 %v771_v23, 16  ;;  %v972_v43 = vshll.u32 %v771_v23, 16  ;;  %v1459_v23 = vld [vmem:[#allocation2 + $0x30] sm:$0xf] }
  0x58   : > { %9313 = vmatprep.subr.bf16.mxu0 %v10194_v40  ;;  %v977_v46 = vshrl.u32 %v772_v28, 16  ;;  %v982_v47 = vshrl.u32 %v773_v34, 16  ;;  %v985_v48 = vshll.u32 %v773_v34, 16  ;;  %v10685_v50 = vrot.slane %v955_v27, 11  ;;  %v1460_v34 = vld [vmem:[#allocation2 + $0x34] sm:$0xf] }
  0x59   : > { %v944_v49 = vsel %vm10616_vm2, %v8155_v24, %v943_v30  ;;  %v971_v51 = vrot.slane %v969_v42, 7  ;;  %v991_v52 = vshrl.u32 %v774_v39, 16  ;;  %v10689_v55 = vor.u32 %v963_v38, %v962_v41 }
  0x5a   : > { %9294 = vmatmul.mubr.bf16.vlgmr.msra.gmra.mrb[0].mxu0 %v8193_v25  ;;  %v947_v25 = vshrl.u32 %v768_v2, 16  ;;  %v967_v56 = vrot.slane %v962_v41, 4  ;;  %v984_v57 = vrot.slane %v982_v47, 7  ;;  %v10691_v61 = vrot.slane %v977_v46, 11 }
  0x5b   : > { %9314 = vmatpush3.bf16.msra.mxu0 %v10194_v40  ;;  %9297 = vmatprep.mubr.bf16.mxu0 %v8194_v62  ;;  %v931_v40 = vsel %vm10616_vm2, %v923_v20, %v930_v21  ;;  %v974_v60 = vor.u32 %v972_v43, %v971_v51  ;;  %v993_v62 = vrot.slane %v991_v52, 7  ;;  %v994_v0 = vshll.u32 %v774_v39, 16  ;;  %v1461_v39 = vld [vmem:[#allocation2 + $0x38] sm:$0x1] }
  0x5c   : > { %9315 = vmatprep.subr.bf16.mxu0 %v10195_v3  ;;  %v949_v37 = vrot.slane %v947_v25, 7  ;;  %v10696_v2 = vor.u32 %v985_v48, %v984_v57  ;;  %vm1483_vm3 = vsmask.f32 3328  ;;  %vm1484_vm4 = vsmask.f32 7440 }
  0x5d   : > { %v8198_v5 = vcombine.low %v922_v36, %v931_v40  ;;  %v1487_v7 = vshrl.u32 %v1453_v53, 16  ;;  %v1490_v8 = vshll.u32 %v1453_v53, 16  ;;  %v966_v9 = vsel %vm10616_vm2, %v10685_v50, %v10689_v55  ;;  %vm10716_vm5 = vmor %vm1483_vm3, %vm1484_vm4 }
  0x5e   : > { %v952_v45 = vor.u32 %v950_v26, %v949_v37  ;;  %v975_v10 = vsel %vm10616_vm2, %v967_v56, %v974_v60  ;;  %v1496_v11 = vshll.u32 %v1454_v58, 16  ;;  %v1500_v12 = vshrl.u32 %v1454_v58, 16  ;;  %v1464_v58 = vld [vmem:[#allocation2 + $0x4c] sm:$0x1] }
  0x5f   : > { %9316 = vmatpush3.bf16.msra.mxu0 %v10195_v3  ;;  %v989_v3 = vrot.slane %v984_v57, 4  ;;  %v996_v13 = vor.u32 %v994_v0, %v993_v62  ;;  %v1489_v14 = vrot.slane %v1487_v7, 4  ;;  %v1492_v15 = vrot.slane %v1490_v8, 5  ;;  %v10743_v8 = vld [vmem:[%s12311_s5 + $0xc0] sm:$0xff]  }
  0x60   : > { %9317 = vmatprep.subr.bf16.mxu0 %v10196_v18  ;;  %v953_v54 = vsel %vm10616_vm2, %v945_v31, %v952_v45  ;;  %v1506_v16 = vshll.u32 %v1455_v59, 16  ;;  %v988_v19 = vsel %vm10616_vm2, %v10691_v61, %v10696_v2  ;;  %v1498_v20 = vrot.slane %v1496_v11, 5  ;;  %v1462_v45 = vld [vmem:[#allocation2 + $0x44] sm:$0xf]  ;;  %v10201_v59 = vld [vmem:[%s12311_s5 + $0xb8] sm:$0xff]  }
  0x61   : > { %v10698_v6 = vcombine.low %v944_v49, %v953_v54  ;;  %v1502_v21 = vrot.slane %v1500_v12, 4  ;;  %v1511_v22 = vshrl.u32 %v1456_v1, 16  ;;  %v1493_v24 = vor.u32 %v1492_v15, %v1489_v14  ;;  %v1463_v54 = vld [vmem:[#allocation2 + $0x48] sm:$0xf]  ;;  %v1466_v11 = vld [vmem:[#allocation2 + $0x5c] sm:$0xf] }
  0x62   : > { %9298 = vmatmul.mubr.bf16.gmra.mrb[4].mxu0 %v8195_v63  ;;  %v10198_v63 = vld [vmem:[%s12311_s5 + $0xa0] sm:$0xff]   ;;  %v1508_v25 = vrot.slane %v1506_v16, 5  ;;  %v1514_v26 = vshll.u32 %v1456_v1, 16  ;;  %v1520_v27 = vshll.u32 %v1457_v4, 16  ;;  %v1524_v31 = vshrl.u32 %v1457_v4, 16 }
  0x63   : > { %9318 = vmatpush3.bf16.msra.mxu0 %v10196_v18  ;;  %9301 = vmatprep.mubr.bf16.mxu0 %v8196_v29  ;;  %v10199_v18 = vld [vmem:[%s12311_s5 + $0xa8] sm:$0xff]   ;;  %v1503_v29 = vor.u32 %v1502_v21, %v1498_v20  ;;  %v1513_v30 = vrot.slane %v1511_v22, 4  ;;  %v1530_v32 = vshll.u32 %v1458_v17, 16  ;;  %v1494_v36 = vrot.slane %v1493_v24, 4  ;;  %v1465_v4 = vld [vmem:[#allocation2 + $0x58] sm:$0xf] }
  0x64   : > { %9319 = vmatprep.subr.bf16.mxu0 %v10197_v44  ;;  %v1516_v37 = vrot.slane %v1514_v26, 5  ;;  %v10720_v38 = vrot.slane %v1520_v27, 5  ;;  %v1535_v40 = vshrl.u32 %v1459_v23, 16  ;;  %v997_v41 = vsel %vm10616_vm2, %v989_v3, %v996_v13  ;;  %v1467_v16 = vld [vmem:[#allocation2 + $0x60] sm:$0x1] }
  0x65   : > { %v1504_v42 = vrot.slane %v1503_v29, 4  ;;  %v1526_v43 = vrot.slane %v1524_v31, 4  ;;  %v1499_v46 = vsel %vm10716_vm5, %v1494_v36, %v1498_v20  ;;  %v1544_v49 = vshll.u32 %v1460_v34, 16  ;;  %v1469_v36 = vld [vmem:[#allocation2 + $0x70] sm:$0xf] }
  0x66   : > { %v1517_v47 = vor.u32 %v1516_v37, %v1513_v30  ;;  %v1537_v48 = vrot.slane %v1535_v40, 4  ;;  %v1548_v53 = vshrl.u32 %v1460_v34, 16  ;;  %v8200_v55 = vcombine.low %v966_v9, %v975_v10  ;;  %v1470_v40 = vld [vmem:[#allocation2 + $0x74] sm:$0x1] }
  0x67   : > { %9320 = vmatpush3.bf16.msra.mxu0 %v10197_v44  ;;  %v1538_v44 = vshll.u32 %v1459_v23, 16  ;;  %v1509_v50 = vsel %vm10716_vm5, %v1504_v42, %v1508_v25  ;;  %v1527_v51 = vor.u32 %v1526_v43, %v10720_v38  ;;  %v10732_v56 = vrot.slane %v1530_v32, 5 }
  0x68   : > { %9321 = vmatprep.subr.bf16.mxu0 %v10198_v63  ;;  %v10734_v57 = vrot.slane %v1544_v49, 5  ;;  %v1550_v61 = vrot.slane %v1548_v53, 4  ;;  %v1554_v62 = vshll.u32 %v1461_v39, 16  ;;  %v1559_v0 = vshrl.u32 %v1462_v45, 16 }
  0x69   : > { %v1540_v52 = vrot.slane %v1538_v44, 5  ;;  %v8201_v1 = vcombine.low %v988_v19, %v997_v41  ;;  %v1562_v2 = vshll.u32 %v1462_v45, 16  ;;  %v1568_v3 = vshll.u32 %v1463_v54, 16  ;;  %v1471_v45 = vld [vmem:[#allocation2 + $0x80] sm:$0xf] }
  0x6a   : > { %9302 = vmatmul.mubr.bf16.gmra.mrb[8].mxu0 %v10672_v35  ;;  %v10200_v35 = vld [vmem:[%s12311_s5 + $0xb0] sm:$0xff]   ;;  %v1528_v7 = vrot.slane %v1527_v51, 4  ;;  %v1551_v9 = vor.u32 %v1550_v61, %v10734_v57  ;;  %v1561_v10 = vrot.slane %v1559_v0, 4  ;;  %v1572_v15 = vshrl.u32 %v1463_v54, 16 }
  0x6b   : > { %9322 = vmatpush3.bf16.msra.mxu0 %v10198_v63  ;;  %9305 = vmatprep.mubr.bf16.mxu0 %v8198_v5  ;;  %v1541_v60 = vor.u32 %v1540_v52, %v1537_v48  ;;  %v8226_v63 = vcombine.low %v1499_v46, %v1509_v50  ;;  %v1518_v5 = vrot.slane %v1517_v47, 4  ;;  %v1564_v13 = vrot.slane %v1562_v2, 5  ;;  %v1472_v46 = vld [vmem:[#allocation2 + $0x84] sm:$0xf] }
  0x6c   : > { %9323 = vmatprep.subr.bf16.mxu0 %v10199_v18  ;;  %v10746_v14 = vrot.slane %v1568_v3, 5  ;;  %v1552_v17 = vrot.slane %v1551_v9, 4  ;;  %v1578_v19 = vshll.u32 %v1464_v58, 16  ;;  %v1583_v20 = vshrl.u32 %v1465_v4, 16 }
  0x6d   : > { %v1542_v12 = vrot.slane %v1541_v60, 4  ;;  %v1565_v21 = vor.u32 %v1564_v13, %v1561_v10  ;;  %v1574_v22 = vrot.slane %v1572_v15, 4  ;;  %v1586_v23 = vshll.u32 %v1465_v4, 16  ;;  %v1474_v4 = vld [vmem:[#allocation2 + $0x94] sm:$0xf] }
  0x6e   : > { %v1592_v24 = vshll.u32 %v1466_v11, 16  ;;  %v1523_v25 = vsel %vm10716_vm5, %v1518_v5, %v10720_v38  ;;  %v1533_v26 = vsel %vm10716_vm5, %v1528_v7, %v10732_v56  ;;  %v1585_v27 = vrot.slane %v1583_v20, 4  ;;  %v10203_v5 = vld [vmem:[%s12311_s5 + $0xc8] sm:$0xff]  }
  0x6f   : > { %9324 = vmatpush3.bf16.msra.mxu0 %v10199_v18  ;;  %v1556_v18 = vrot.slane %v1554_v62, 5  ;;  %v1596_v29 = vshrl.u32 %v1466_v11, 16  ;;  %v1547_v30 = vsel %vm10716_vm5, %v1542_v12, %v10734_v57  ;;  %v1575_v31 = vor.u32 %v1574_v22, %v10746_v14  ;;  %v1475_v12 = vld [vmem:[#allocation2 + $0x98] sm:$0xf] }
  0x70   : > { %9325 = vmatprep.subr.bf16.mxu0 %v10200_v35  ;;  %v10758_v32 = vrot.slane %v1578_v19, 5  ;;  %v1588_v34 = vrot.slane %v1586_v23, 5  ;;  %v10761_v37 = vrot.slane %v1592_v24, 5  ;;  %v1602_v39 = vshll.u32 %v1467_v16, 16 }
  0x71   : > { %v1598_v38 = vrot.slane %v1596_v29, 4  ;;  %v1557_v41 = vsel %vm10716_vm5, %v1552_v17, %v1556_v18  ;;  %v1566_v42 = vrot.slane %v1565_v21, 4  ;;  %v1576_v47 = vrot.slane %v1575_v31, 4  ;;  %v1478_v21 = vld [vmem:[#allocation2 + $0xac] sm:$0xf]  ;;  %v10204_v31 = vld [vmem:[%s12311_s5 + $0xd0] sm:$0xff]  }
  0x72   : > { %9306 = vmatmul.mubr.bf16.gmra.mrb[12].mxu0 %v10698_v6  ;;  %v1468_v6 = vld [vmem:[#allocation2 + $0x6c] sm:$0xf]  ;;  %v1589_v43 = vor.u32 %v1588_v34, %v1585_v27  ;;  %v1616_v50 = vshll.u32 %v1469_v36, 16  ;;  %v1604_v52 = vrot.slane %v1602_v39, 5  ;;  %v1620_v54 = vshrl.u32 %v1469_v36, 16 }
  0x73   : > { %9309 = vmatprep.mubr.bf16.mxu0 %v8200_v55  ;;  %9326 = vmatpush3.bf16.msra.mxu0 %v10200_v35  ;;  %v1607_v35 = vshrl.u32 %v1468_v6, 16  ;;  %v1610_v44 = vshll.u32 %v1468_v6, 16  ;;  %v1599_v48 = vor.u32 %v1598_v38, %v10761_v37  ;;  %v8227_v55 = vcombine.low %v1523_v25, %v1533_v26  ;;  %v1477_v6 = vld [vmem:[#allocation2 + $0xa8] sm:$0xf]  ;;  %v1476_v36 = vld [vmem:[#allocation2 + $0x9c] sm:$0x1] }
  0x74   : > { %9327 = vmatprep.subr.bf16.mxu0 %v10201_v59  ;;  %v1590_v51 = vrot.slane %v1589_v43, 4  ;;  %v10766_v57 = vrot.slane %v1616_v50, 5  ;;  %v1626_v58 = vshll.u32 %v1470_v40, 16  ;;  %v1622_v61 = vrot.slane %v1620_v54, 4  ;;  %v10205_v50 = vld [vmem:[%s12311_s5 + $0xd8] sm:$0xff]  }
  0x75   : > { %v1609_v49 = vrot.slane %v1607_v35, 4  ;;  %v1612_v53 = vrot.slane %v1610_v44, 5  ;;  %v1600_v56 = vrot.slane %v1599_v48, 4  ;;  %v1631_v62 = vshrl.u32 %v1471_v45, 16 }
  0x76   : > { %v1571_v0 = vsel %vm10716_vm5, %v1566_v42, %v10746_v14  ;;  %v1634_v2 = vshll.u32 %v1471_v45, 16  ;;  %v1640_v3 = vshll.u32 %v1472_v46, 16  ;;  %v1595_v7 = vsel %vm10716_vm5, %v1590_v51, %v10761_v37  ;;  %v1479_v42 = vld [vmem:[#allocation2 + $0xb0] sm:$0x1] }
  0x77   : > { %9328 = vmatpush3.bf16.msra.mxu0 %v10201_v59  ;;  %v8228_v59 = vcombine.low %v1547_v30, %v1557_v41  ;;  %v1613_v60 = vor.u32 %v1612_v53, %v1609_v49  ;;  %v1605_v9 = vsel %vm10716_vm5, %v1600_v56, %v1604_v52  ;;  %v1623_v10 = vor.u32 %v1622_v61, %v10766_v57  ;;  %v1480_v49 = vld [vmem:[#allocation2 + $0xbc] sm:$0xf] }
  0x78   : > { %9349 = vmatprep.subr.bf16.mxu0 %v10743_v8  ;;  %v1633_v11 = vrot.slane %v1631_v62, 4  ;;  %v1628_v13 = vrot.slane %v1626_v58, 5  ;;  %v1636_v14 = vrot.slane %v1634_v2, 5  ;;  %v10783_v15 = vrot.slane %v1640_v3, 5  ;;  %v10803_v58 = vld [vmem:[#allocation2 + $0x1c] sm:$0xf] }
  0x79   : > { %v1644_v16 = vshrl.u32 %v1472_v46, 16  ;;  %v1614_v17 = vrot.slane %v1613_v60, 4  ;;  %v1655_v19 = vshrl.u32 %v1474_v4, 16  ;;  %v1658_v20 = vshll.u32 %v1474_v4, 16  ;;  %v10206_v3 = vld [vmem:[%s12311_s5 + $0xe0] sm:$0xff]  }
  0x7a   : > { %9310 = vmatmul.mubr.bf16.gmra.mrb[16].mxu0 %v8201_v1  ;;  %v1581_v1 = vsel %vm10716_vm5, %v1576_v47, %v10758_v32  ;;  %v1624_v22 = vrot.slane %v1623_v10, 4  ;;  %v1637_v23 = vor.u32 %v1636_v14, %v1633_v11  ;;  %v1664_v25 = vshll.u32 %v1475_v12, 16  ;;  %v1482_v10 = vld [vmem:[#allocation2 + $0xc4] sm:$0x1] }
  0x7b   : > { %9329 = vmatprep.mubr.bf16.mxu0 %v8226_v63  ;;  %v1473_v63 = vld [vmem:[#allocation2 + $0x88] sm:$0x1]  ;;  %v1646_v24 = vrot.slane %v1644_v16, 4  ;;  %v1657_v26 = vrot.slane %v1655_v19, 4  ;;  %v1660_v27 = vrot.slane %v1658_v20, 5  ;;  %v1668_v29 = vshrl.u32 %v1475_v12, 16 }
  0x7c   : > { %v1650_v18 = vshll.u32 %v1473_v63, 16  ;;  %v8229_v30 = vcombine.low %v1571_v0, %v1581_v1  ;;  %v8230_v32 = vcombine.low %v1595_v7, %v1605_v9  ;;  %v10790_v37 = vrot.slane %v1664_v25, 5  ;;  %v10826_v25 = vld [vmem:[#allocation2 + $0x30] sm:$0xf] }
  0x7d   : > { %v1647_v34 = vor.u32 %v1646_v24, %v10783_v15  ;;  %v1670_v39 = vrot.slane %v1668_v29, 4  ;;  %v1679_v40 = vshrl.u32 %v1477_v6, 16  ;;  %v1629_v35 = vsel %vm10716_vm5, %v1624_v22, %v1628_v13 }
  0x7e   : > { %v1652_v38 = vrot.slane %v1650_v18, 5  ;;  %v1638_v41 = vrot.slane %v1637_v23, 4  ;;  %v1682_v43 = vshll.u32 %v1477_v6, 16  ;;  %v1688_v44 = vshll.u32 %v1478_v21, 16  ;;  %v1964_v18 = vld [vmem:[#allocation2 + $0x18] sm:$0x8] }
  0x7f   : > { %v1648_v45 = vrot.slane %v1647_v34, 4  ;;  %v1661_v46 = vor.u32 %v1660_v27, %v1657_v26  ;;  %v1674_v47 = vshll.u32 %v1476_v36, 16  ;;  %v1681_v48 = vrot.slane %v1679_v40, 4 }
  0x80   : > { %v1671_v51 = vor.u32 %v1670_v39, %v10790_v37  ;;  %v1684_v52 = vrot.slane %v1682_v43, 5  ;;  %v10801_v53 = vrot.slane %v1688_v44, 5  ;;  %v1692_v54 = vshrl.u32 %v1478_v21, 16  ;;  %v10207_v21 = vld [vmem:[%s12311_s5 + $0xe8] sm:$0xff]  }
  0x81   : > { %v1703_v61 = vshrl.u32 %v1480_v49, 16  ;;  %v1706_v62 = vshll.u32 %v1480_v49, 16  ;;  %v1643_v0 = vsel %vm10716_vm5, %v1638_v41, %v10783_v15  ;;  %v1662_v1 = vrot.slane %v1661_v46, 4  ;;  %v10814_v15 = vld [vmem:[#allocation2 + $0x20] sm:$0xf] }
  0x82   : > { %9330 = vmatmul.mubr.bf16.vlgmr.msra.gmra.mrb[0].mxu0 %v8227_v55  ;;  %v1481_v55 = vld [vmem:[#allocation2 + $0xc0] sm:$0xf]  ;;  %v1694_v60 = vrot.slane %v1692_v54, 4  ;;  %v1653_v4 = vsel %vm10716_vm5, %v1648_v45, %v1652_v38  ;;  %v1676_v7 = vrot.slane %v1674_v47, 5  ;;  %v2000_v19 = vshrl.u32 %v10803_v58, 16 }
  0x83   : > { %9350 = vmatpush3.bf16.msra.mxu0 %v10743_v8  ;;  %9333 = vmatprep.mubr.bf16.mxu0 %v8228_v59  ;;  %v1619_v8 = vsel %vm10716_vm5, %v1614_v17, %v10766_v57  ;;  %v1698_v57 = vshll.u32 %v1479_v42, 16  ;;  %v1685_v59 = vor.u32 %v1684_v52, %v1681_v48  ;;  %v1712_v63 = vshll.u32 %v1481_v55, 16  ;;  %v10208_v42 = vld [vmem:[%s12311_s5 + $0xf0] sm:$0xff]   ;;  %v10847_v48 = vld [vmem:[#allocation2 + $0x48] sm:$0xf] }
  0x84   : > { %9351 = vmatprep.subr.bf16.mxu0 %v10203_v5  ;;  %v8231_v56 = vcombine.low %v1619_v8, %v1629_v35  ;;  %v1716_v2 = vshrl.u32 %v1481_v55, 16  ;;  %v1695_v9 = vor.u32 %v1694_v60, %v10801_v53  ;;  %v1705_v13 = vrot.slane %v1703_v61, 4  ;;  %v10837_v8 = vld [vmem:[#allocation2 + $0x34] sm:$0xf]  ;;  %v10841_v35 = vld [vmem:[#allocation2 + $0x44] sm:$0xf] }
  0x85   : > { %v1686_v11 = vrot.slane %v1685_v59, 4  ;;  %v1700_v12 = vrot.slane %v1698_v57, 5  ;;  %v1708_v14 = vrot.slane %v1706_v62, 5  ;;  %v10816_v6 = vrot.slane %v1712_v63, 5  ;;  %v10209_v59 = vld [vmem:[%s12311_s5 + $0xf8] sm:$0xff]  }
  0x86   : > { %v1696_v16 = vrot.slane %v1695_v9, 4  ;;  %v1718_v17 = vrot.slane %v1716_v2, 4  ;;  %v8232_v20 = vcombine.low %v1643_v0, %v1653_v4  ;;  %v1667_v22 = vsel %vm10716_vm5, %v1662_v1, %v10790_v37  ;;  %v1967_v37 = vld [vmem:[#allocation2 + $0x2c] sm:$0x8]  ;;  %v10859_v1 = vld [vmem:[#allocation2 + $0x58] sm:$0xf] }
  0x87   : > { %9352 = vmatpush3.bf16.msra.mxu0 %v10203_v5  ;;  %v1672_v5 = vrot.slane %v1671_v51, 4  ;;  %v1722_v23 = vshll.u32 %v1482_v10, 16  ;;  %v2009_v24 = vshrl.u32 %v10814_v15, 16  ;;  %v1691_v27 = vsel %vm10716_vm5, %v1686_v11, %v10801_v53  ;;  %v1970_v53 = vld [vmem:[#allocation2 + $0x40] sm:$0x8] }
  0x88   : > { %9353 = vmatprep.subr.bf16.mxu0 %v10204_v31  ;;  %v1709_v29 = vor.u32 %v1708_v14, %v1705_v13  ;;  %v2002_v34 = vrot.slane %v2000_v19, 7  ;;  %v2003_v36 = vshll.u32 %v10803_v58, 16  ;;  %v2012_v39 = vshll.u32 %v10814_v15, 16  ;;  %v10870_v13 = vld [vmem:[#allocation2 + $0x6c] sm:$0xf] }
  0x89   : > { %v1677_v26 = vsel %vm10716_vm5, %v1672_v5, %v1676_v7  ;;  %v2011_v38 = vrot.slane %v2009_v24, 7  ;;  %v2022_v40 = vshrl.u32 %v10826_v25, 16  ;;  %v1724_v43 = vrot.slane %v1722_v23, 5  ;;  %v1973_v5 = vld [vmem:[#allocation2 + $0x54] sm:$0x8] }
  0x8a   : > { %9334 = vmatmul.mubr.bf16.gmra.mrb[4].mxu0 %v8229_v30  ;;  %v1995_v30 = vshrl.u32 %v1964_v18, 16  ;;  %v8233_v41 = vcombine.low %v1667_v22, %v1677_v26  ;;  %v1710_v45 = vrot.slane %v1709_v29, 4  ;;  %v2031_v47 = vshrl.u32 %v10837_v8, 16  ;;  %v10865_v7 = vld [vmem:[#allocation2 + $0x5c] sm:$0xf] }
  0x8b   : > { %9354 = vmatpush3.bf16.msra.mxu0 %v10204_v31  ;;  %9337 = vmatprep.mubr.bf16.mxu0 %v8230_v32  ;;  %v1701_v31 = vsel %vm10716_vm5, %v1696_v16, %v1700_v12  ;;  %v1719_v32 = vor.u32 %v1718_v17, %v10816_v6  ;;  %v2007_v51 = vrot.slane %v2002_v34, 4  ;;  %v2017_v52 = vshrl.u32 %v1967_v37, 16  ;;  %v10872_v14 = vld [vmem:[#allocation2 + $0x70] sm:$0xf]  ;;  %v10877_v16 = vld [vmem:[%s12311_s5 + $0x100] sm:$0xff]  }
  0x8c   : > { %9355 = vmatprep.subr.bf16.mxu0 %v10205_v50  ;;  %v8234_v44 = vcombine.low %v1691_v27, %v1701_v31  ;;  %v8244_v46 = vrot.slane %v1995_v30, 11  ;;  %v2014_v54 = vor.u32 %v2012_v39, %v2011_v38  ;;  %v2024_v55 = vrot.slane %v2022_v40, 7  ;;  %v1976_v24 = vld [vmem:[#allocation2 + $0x68] sm:$0x8]  ;;  %v10888_v39 = vld [vmem:[#allocation2 + $0x80] sm:$0xf] }
  0x8d   : > { %v1720_v49 = vrot.slane %v1719_v32, 4  ;;  %v2044_v57 = vshrl.u32 %v10841_v35, 16  ;;  %v2053_v60 = vshrl.u32 %v10847_v48, 16  ;;  %v1715_v61 = vsel %vm10716_vm5, %v1710_v45, %v10816_v6 }
  0x8e   : > { %v2033_v62 = vrot.slane %v2031_v47, 7  ;;  %v2034_v0 = vshll.u32 %v10837_v8, 16  ;;  %v2039_v4 = vshrl.u32 %v1970_v53, 16  ;;  %v2015_v9 = vsel %vm10616_vm2, %v2007_v51, %v2014_v54  ;;  %v10899_v53 = vld [vmem:[#allocation2 + $0x98] sm:$0xf] }
  0x8f   : > { %9356 = vmatpush3.bf16.msra.mxu0 %v10205_v50  ;;  %v2005_v50 = vor.u32 %v2003_v36, %v2002_v34  ;;  %v1725_v63 = vsel %vm10716_vm5, %v1720_v49, %v1724_v43  ;;  %v2046_v11 = vrot.slane %v2044_v57, 7  ;;  %v2047_v12 = vshll.u32 %v10841_v35, 16 }
  0x90   : > { %9357 = vmatprep.subr.bf16.mxu0 %v10206_v3  ;;  %v2055_v6 = vrot.slane %v2053_v60, 7  ;;  %v2056_v17 = vshll.u32 %v10847_v48, 16  ;;  %v2066_v18 = vshrl.u32 %v10859_v1, 16  ;;  %v2029_v19 = vrot.slane %v2024_v55, 4 }
  0x91   : > { %v2006_v2 = vsel %vm10616_vm2, %v8244_v46, %v2005_v50  ;;  %v8235_v22 = vcombine.low %v1715_v61, %v1725_v63  ;;  %v2088_v26 = vshrl.u32 %v10870_v13, 16  ;;  %v2097_v27 = vshrl.u32 %v10872_v14, 16  ;;  %v10897_v50 = vld [vmem:[#allocation2 + $0x94] sm:$0xf] }
  0x92   : > { %9338 = vmatmul.mubr.bf16.gmra.mrb[8].mxu0 %v8231_v56  ;;  %v2025_v56 = vshll.u32 %v10826_v25, 16  ;;  %v8270_v23 = vcombine.low %v2006_v2, %v2015_v9  ;;  %v8246_v30 = vrot.slane %v2039_v4, 11  ;;  %v2049_v31 = vor.u32 %v2047_v12, %v2046_v11  ;;  %v1982_v4 = vld [vmem:[#allocation2 + $0x90] sm:$0x8] }
  0x93   : > { %9358 = vmatpush3.bf16.msra.mxu0 %v10206_v3  ;;  %9341 = vmatprep.mubr.bf16.mxu0 %v8232_v20  ;;  %v8245_v3 = vrot.slane %v2017_v52, 11  ;;  %v2036_v20 = vor.u32 %v2034_v0, %v2033_v62  ;;  %v2061_v32 = vshrl.u32 %v1973_v5, 16  ;;  %v2051_v34 = vrot.slane %v2046_v11, 4  ;;  %v1979_v52 = vld [vmem:[#allocation2 + $0x7c] sm:$0x8]  ;;  %v10211_v11 = vld [vmem:[%s12311_s5 + $0x108] sm:$0xff]  }
  0x94   : > { %9359 = vmatprep.subr.bf16.mxu0 %v10207_v21  ;;  %v2027_v10 = vor.u32 %v2025_v56, %v2024_v55  ;;  %v2058_v36 = vor.u32 %v2056_v17, %v2055_v6  ;;  %v2068_v37 = vrot.slane %v2066_v18, 7  ;;  %v2069_v38 = vshll.u32 %v10859_v1, 16  ;;  %v10914_v17 = vld [vmem:[#allocation2 + $0xa8] sm:$0xf] }
  0x95   : > { %v2037_v40 = vsel %vm10616_vm2, %v2029_v19, %v2036_v20  ;;  %v2083_v43 = vshrl.u32 %v1976_v24, 16  ;;  %v2090_v45 = vrot.slane %v2088_v26, 7  ;;  %v2091_v46 = vshll.u32 %v10870_v13, 16 }
  0x96   : > { %v2028_v29 = vsel %vm10616_vm2, %v8245_v3, %v2027_v10  ;;  %v2099_v47 = vrot.slane %v2097_v27, 7  ;;  %v2100_v49 = vshll.u32 %v10872_v14, 16  ;;  %v8247_v51 = vrot.slane %v2061_v32, 11 }
  0x97   : > { %9360 = vmatpush3.bf16.msra.mxu0 %v10207_v21  ;;  %v2075_v21 = vshrl.u32 %v10865_v7, 16  ;;  %v2050_v54 = vsel %vm10616_vm2, %v8246_v30, %v2049_v31  ;;  %v2059_v55 = vsel %vm10616_vm2, %v2051_v34, %v2058_v36  ;;  %v2071_v56 = vor.u32 %v2069_v38, %v2068_v37  ;;  %v10932_v36 = vld [vmem:[#allocation2 + $0xbc] sm:$0xf] }
  0x98   : > { %9361 = vmatprep.subr.bf16.mxu0 %v10208_v42  ;;  %v2073_v57 = vrot.slane %v2068_v37, 4  ;;  %v2110_v61 = vshrl.u32 %v10888_v39, 16  ;;  %v8248_v0 = vrot.slane %v2083_v43, 11  ;;  %v2093_v63 = vor.u32 %v2091_v46, %v2090_v45  ;;  %v10934_v37 = vld [vmem:[#allocation2 + $0xc0] sm:$0xf] }
  0x99   : > { %v2095_v2 = vrot.slane %v2090_v45, 4  ;;  %v2102_v3 = vor.u32 %v2100_v49, %v2099_v47  ;;  %v8272_v5 = vcombine.low %v2050_v54, %v2059_v55  ;;  %v2132_v9 = vshrl.u32 %v10897_v50, 16  ;;  %v1985_v47 = vld [vmem:[#allocation2 + $0xa4] sm:$0x8]  ;;  %v10213_v55 = vld [vmem:[%s12311_s5 + $0x118] sm:$0xff]  }
  0x9a   : > { %9342 = vmatmul.mubr.bf16.gmra.mrb[12].mxu0 %v8233_v41  ;;  %v2077_v41 = vrot.slane %v2075_v21, 7  ;;  %v2141_v10 = vshrl.u32 %v10899_v53, 16  ;;  %v2072_v12 = vsel %vm10616_vm2, %v8247_v51, %v2071_v56  ;;  %v2105_v6 = vshrl.u32 %v1979_v52, 16  ;;  %v1988_v56 = vld [vmem:[#allocation2 + $0xb8] sm:$0x8] }
  0x9b   : > { %9345 = vmatprep.mubr.bf16.mxu0 %v8234_v44  ;;  %9362 = vmatpush3.bf16.msra.mxu0 %v10208_v42  ;;  %v2078_v42 = vshll.u32 %v10865_v7, 16  ;;  %v10893_v44 = vld [vmem:[#allocation2 + $0x84] sm:$0xf]  ;;  %v2112_v19 = vrot.slane %v2110_v61, 7  ;;  %v2113_v20 = vshll.u32 %v10888_v39, 16  ;;  %v2103_v24 = vsel %vm10616_vm2, %v2095_v2, %v2102_v3 }
  0x9c   : > { %9363 = vmatprep.subr.bf16.mxu0 %v10209_v59  ;;  %v2119_v62 = vshrl.u32 %v10893_v44, 16  ;;  %v2122_v26 = vshll.u32 %v10893_v44, 16  ;;  %v2127_v27 = vshrl.u32 %v1982_v4, 16  ;;  %v2134_v30 = vrot.slane %v2132_v9, 7  ;;  %v10214_v2 = vld [vmem:[%s12311_s5 + $0x120] sm:$0xff]  }
  0x9d   : > { %v2080_v60 = vor.u32 %v2078_v42, %v2077_v41  ;;  %v2135_v31 = vshll.u32 %v10897_v50, 16  ;;  %v2143_v32 = vrot.slane %v2141_v10, 7  ;;  %v2144_v34 = vshll.u32 %v10899_v53, 16 }
  0x9e   : > { %v2121_v21 = vrot.slane %v2119_v62, 7  ;;  %v8249_v41 = vrot.slane %v2105_v6, 11  ;;  %v2154_v42 = vshrl.u32 %v10914_v17, 16  ;;  %v2115_v43 = vor.u32 %v2113_v20, %v2112_v19  ;;  %v10943_v62 = vld [vmem:[#allocation2 + $0xd0] sm:$0xf] }
  0x9f   : > { %9364 = vmatpush3.bf16.msra.mxu0 %v10209_v59  ;;  %v8271_v59 = vcombine.low %v2028_v29, %v2037_v40  ;;  %v2081_v18 = vsel %vm10616_vm2, %v2073_v57, %v2080_v60  ;;  %v10927_v29 = vld [vmem:[#allocation2 + $0xac] sm:$0xf]  ;;  %v2117_v45 = vrot.slane %v2112_v19, 4  ;;  %v8250_v46 = vrot.slane %v2127_v27, 11  ;;  %v10960_v20 = vld [vmem:[#allocation2 + $0xd4] sm:$0xf] }
  0xa0   : > { %9385 = vmatprep.subr.bf16.mxu0 %v10877_v16  ;;  %v8273_v38 = vcombine.low %v2072_v12, %v2081_v18  ;;  %v2137_v49 = vor.u32 %v2135_v31, %v2134_v30  ;;  %v2139_v51 = vrot.slane %v2134_v30, 4  ;;  %v2146_v52 = vor.u32 %v2144_v34, %v2143_v32  ;;  %v1991_v31 = vld [vmem:[#allocation2 + $0xcc] sm:$0x8] }
  0xa1   : > { %v2163_v54 = vshrl.u32 %v10927_v29, 16  ;;  %v2176_v57 = vshrl.u32 %v10932_v36, 16  ;;  %v2149_v60 = vshrl.u32 %v1985_v47, 16  ;;  %v2156_v61 = vrot.slane %v2154_v42, 7  ;;  %v10215_v34 = vld [vmem:[%s12311_s5 + $0x128] sm:$0xff]  }
  0xa2   : > { %9346 = vmatmul.mubr.bf16.gmra.mrb[16].mxu0 %v8235_v22  ;;  %v10212_v22 = vld [vmem:[%s12311_s5 + $0x110] sm:$0xff]   ;;  %v2157_v3 = vshll.u32 %v10914_v17, 16  ;;  %v2166_v4 = vshll.u32 %v10927_v29, 16  ;;  %v2147_v9 = vsel %vm10616_vm2, %v2139_v51, %v2146_v52  ;;  %v2179_v6 = vshll.u32 %v10932_v36, 16 }
  0xa3   : > { %9365 = vmatprep.mubr.bf16.mxu0 %v8270_v23  ;;  %v2094_v23 = vsel %vm10616_vm2, %v8248_v0, %v2093_v63  ;;  %v2116_v0 = vsel %vm10616_vm2, %v8249_v41, %v2115_v43  ;;  %v2165_v10 = vrot.slane %v2163_v54, 7  ;;  %v2178_v12 = vrot.slane %v2176_v57, 7  ;;  %v10216_v52 = vld [vmem:[%s12311_s5 + $0x130] sm:$0xff]  }
  0xa4   : > { %v8274_v40 = vcombine.low %v2094_v23, %v2103_v24  ;;  %v2188_v19 = vshll.u32 %v10934_v37, 16  ;;  %v2159_v23 = vor.u32 %v2157_v3, %v2156_v61  ;;  %v2198_v24 = vshrl.u32 %v10943_v62, 16 }
  0xa5   : > { %v2161_v27 = vrot.slane %v2156_v61, 4  ;;  %v2168_v30 = vor.u32 %v2166_v4, %v2165_v10  ;;  %v2207_v32 = vshrl.u32 %v10960_v20, 16  ;;  %v2183_v41 = vrot.slane %v2178_v12, 4  ;;  %v10220_v4 = vld [vmem:[%s12311_s5 + $0x140] sm:$0xff]  }
  0xa6   : > { %v2193_v43 = vshrl.u32 %v1991_v31, 16  ;;  %v2210_v51 = vshll.u32 %v10960_v20, 16  ;;  %v8305_v10 = vcombine.low %v10826_v25, %v10837_v8  ;;  %v2711_v25 = vld [vmem:[#allocation2 + $0x20] sm:$0xf]  ;;  %v10259_v8 = vld [vmem:[%s12311_s5 + $0x48] sm:$0xff]  }
  0xa7   : > { %v2169_v47 = vsel %vm10616_vm2, %v2161_v27, %v2168_v30 }
  0xa8   : > { %v8253_v57 = vrot.slane %v2193_v43, 11  ;;  %v2716_v43 = vld [vmem:[#allocation2 + $0x44] sm:$0xf] }
  0xaa   : > { %9366 = vmatmul.mubr.bf16.vlgmr.msra.gmra.mrb[0].mxu0 %v8271_v59  ;;  %v2185_v59 = vshrl.u32 %v10934_v37, 16 }
  0xab   : > { %9386 = vmatpush3.bf16.msra.mxu0 %v10877_v16  ;;  %9369 = vmatprep.mubr.bf16.mxu0 %v8272_v5  ;;  %v2124_v16 = vor.u32 %v2122_v26, %v2121_v21  ;;  %v2138_v5 = vsel %vm10616_vm2, %v8250_v46, %v2137_v49  ;;  %v2209_v49 = vrot.slane %v2207_v32, 7 }
  0xac   : > { %9387 = vmatprep.subr.bf16.mxu0 %v10211_v11  ;;  %v2187_v18 = vrot.slane %v2185_v59, 7  ;;  %v8276_v26 = vcombine.low %v2138_v5, %v2147_v9  ;;  %v8304_v9 = vcombine.low %v10803_v58, %v10814_v15  ;;  %v10224_v58 = vld [vmem:[%s12311_s5 + $0x150] sm:$0xff]   ;;  %v2710_v15 = vld [vmem:[#allocation2 + $0x1c] sm:$0xf] }
  0xad   : > { %v2125_v63 = vsel %vm10616_vm2, %v2117_v45, %v2124_v16  ;;  %v2200_v45 = vrot.slane %v2198_v24, 7  ;;  %v2201_v16 = vshll.u32 %v10943_v62, 16  ;;  %v2754_v24 = vshrl.u32 %v2711_v25, 16 }
  0xae   : > { %v8275_v21 = vcombine.low %v2116_v0, %v2125_v63  ;;  %v2190_v42 = vor.u32 %v2188_v19, %v2187_v18  ;;  %v2212_v0 = vor.u32 %v2210_v51, %v2209_v49  ;;  %v10217_v63 = vld [vmem:[%s12311_s5 + $0x138] sm:$0xff]   ;;  %v2741_v18 = vshrl.u32 %v2710_v15, 16  ;;  %v10231_v49 = vld [vmem:[%s12311_s5 + $0x168] sm:$0xff]  }
  0xaf   : > { %9388 = vmatpush3.bf16.msra.mxu0 %v10211_v11  ;;  %v2171_v11 = vshrl.u32 %v1988_v56, 16  ;;  %v2205_v61 = vrot.slane %v2200_v45, 4  ;;  %v2744_v19 = vshll.u32 %v2710_v15, 16  ;;  %v2723_v15 = vld [vmem:[#allocation2 + $0x70] sm:$0xf] }
  0xb0   : > { %9389 = vmatprep.subr.bf16.mxu0 %v10212_v22  ;;  %v2743_v27 = vrot.slane %v2741_v18, 4 }
  0xb1   : > { %v2213_v3 = vsel %vm10616_vm2, %v2205_v61, %v2212_v0  ;;  %v2746_v30 = vrot.slane %v2744_v19, 5  ;;  %v10271_v61 = vld [vmem:[%s12311_s5 + $0x68] sm:$0xff]   ;;  %v8311_v0 = vcombine.low %v10914_v17, %v10927_v29  ;;  %v10272_v19 = vld [vmem:[%s12311_s5 + $0x70] sm:$0xff]  }
  0xb2   : > { %9370 = vmatmul.mubr.bf16.gmra.mrb[4].mxu0 %v8273_v38  ;;  %v8252_v38 = vrot.slane %v2171_v11, 11  ;;  %v8306_v11 = vcombine.low %v10841_v35, %v10847_v48  ;;  %v8307_v35 = vcombine.low %v10859_v1, %v10865_v7  ;;  %v8308_v48 = vcombine.low %v10870_v13, %v10872_v14  ;;  %v10261_v1 = vld [vmem:[%s12311_s5 + $0x50] sm:$0xff]   ;;  %v2712_v7 = vld [vmem:[#allocation2 + $0x24] sm:$0x1]  ;;  %v2715_v13 = vld [vmem:[#allocation2 + $0x38] sm:$0x1] }
  0xb3   : > { %9390 = vmatpush3.bf16.msra.mxu0 %v10212_v22  ;;  %9373 = vmatprep.mubr.bf16.mxu0 %v8274_v40  ;;  %v8251_v22 = vrot.slane %v2149_v60, 11  ;;  %v2181_v40 = vor.u32 %v2179_v6, %v2178_v12  ;;  %v2203_v60 = vor.u32 %v2201_v16, %v2200_v45  ;;  %v10256_v12 = vld [vmem:[%s12311_s5 + $0x40] sm:$0xff]   ;;  %v10221_v6 = vld [vmem:[%s12311_s5 + $0x148] sm:$0xff]   ;;  %v8309_v16 = vcombine.low %v10888_v39, %v10893_v44 }
  0xb4   : > { %9391 = vmatprep.subr.bf16.mxu0 %v10213_v55  ;;  %9241 = vmatprep.subr.bf16.mxu1 %v10256_v12  ;;  %v10228_v14 = vld [vmem:[%s12311_s5 + $0x160] sm:$0xff]   ;;  %v2717_v45 = vld [vmem:[#allocation2 + $0x48] sm:$0xf]  ;;  %v2747_v51 = vor.u32 %v2746_v30, %v2743_v27 }
  0xb5   : > { %v2160_v46 = vsel %vm10616_vm2, %v8251_v22, %v2159_v23  ;;  %v2182_v54 = vsel %vm10616_vm2, %v8252_v38, %v2181_v40  ;;  %9242 = vmatpush3.bf16.msra.mxu1 %v10256_v12  ;;  %v10226_v22 = vld [vmem:[%s12311_s5 + $0x158] sm:$0xff]   ;;  %v2750_v23 = vshll.u32 %v2711_v25, 16  ;;  %v2756_v40 = vrot.slane %v2754_v24, 4  ;;  %v10267_v39 = vld [vmem:[%s12311_s5 + $0x60] sm:$0xff]  }
  0xb6   : > { %v8277_v56 = vcombine.low %v2160_v46, %v2169_v47  ;;  %9243 = vmatprep.subr.bf16.mxu1 %v10259_v8  ;;  %v8310_v46 = vcombine.low %v10897_v50, %v10899_v53  ;;  %v2760_v47 = vshll.u32 %v2712_v7, 16  ;;  %v2802_v53 = vshrl.u32 %v2717_v45, 16 }
  0xb7   : > { %9392 = vmatpush3.bf16.msra.mxu0 %v10213_v55  ;;  %v2191_v55 = vsel %vm10616_vm2, %v2183_v41, %v2190_v42  ;;  %v11024_v38 = vrot.slane %v2750_v23, 5  ;;  %v2846_v7 = vshll.u32 %v2723_v15, 16 }
  0xb8   : > { %9393 = vmatprep.subr.bf16.mxu0 %v10214_v2  ;;  %v8278_v59 = vcombine.low %v2182_v54, %v2191_v55  ;;  %v2784_v55 = vshll.u32 %v2715_v13, 16  ;;  %v10235_v13 = vld [vmem:[%s12311_s5 + $0x178] sm:$0xff]  }
  0xb9   : > { %9244 = vmatpush3.bf16.msra.mxu1 %v10259_v8  ;;  %v2804_v8 = vrot.slane %v2802_v53, 4 }
  0xba   : > { %9374 = vmatmul.mubr.bf16.gmra.mrb[8].mxu0 %v8275_v21  ;;  %v2713_v21 = vld [vmem:[#allocation2 + $0x30] sm:$0xf]  ;;  %9245 = vmatprep.subr.bf16.mxu1 %v10261_v1 }
  0xbb   : > { %9394 = vmatpush3.bf16.msra.mxu0 %v10214_v2  ;;  %9377 = vmatprep.mubr.bf16.mxu0 %v8276_v26  ;;  %v2204_v2 = vsel %vm10616_vm2, %v8253_v57, %v2203_v60  ;;  %v2714_v26 = vld [vmem:[#allocation2 + $0x34] sm:$0xf]  ;;  %v2765_v31 = vshrl.u32 %v2713_v21, 16  ;;  %v2768_v32 = vshll.u32 %v2713_v21, 16  ;;  %v2789_v57 = vshrl.u32 %v2716_v43, 16 }
  0xbc   : > { %9395 = vmatprep.subr.bf16.mxu0 %v10215_v34  ;;  %v8279_v5 = vcombine.low %v2204_v2, %v2213_v3  ;;  %v2774_v41 = vshll.u32 %v2714_v26, 16  ;;  %v2778_v42 = vshrl.u32 %v2714_v26, 16  ;;  %v2798_v60 = vshll.u32 %v2717_v45, 16  ;;  %v2720_v2 = vld [vmem:[#allocation2 + $0x5c] sm:$0xf]  ;;  %v10232_v3 = vld [vmem:[%s12311_s5 + $0x170] sm:$0xff]  }
  0xbd   : > { %9246 = vmatpush3.bf16.msra.mxu1 %v10261_v1  ;;  %v2770_v54 = vrot.slane %v2768_v32, 5  ;;  %v2791_v17 = vrot.slane %v2789_v57, 4  ;;  %v2822_v21 = vshll.u32 %v2720_v2, 16  ;;  %v8312_v1 = vcombine.low %v10932_v36, %v10934_v37  ;;  %v2724_v45 = vld [vmem:[#allocation2 + $0x74] sm:$0x1] }
  0xbe   : > { %v11037_v44 = vrot.slane %v2774_v41, 5  ;;  %v2780_v50 = vrot.slane %v2778_v42, 4  ;;  %v2850_v26 = vshrl.u32 %v2723_v15, 16 }
  0xbf   : > { %9396 = vmatpush3.bf16.msra.mxu0 %v10215_v34  ;;  %v10265_v34 = vld [vmem:[%s12311_s5 + $0x58] sm:$0xff]   ;;  %v11074_v42 = vrot.slane %v2822_v21, 5 }
  0xc0   : > { %9397 = vmatprep.subr.bf16.mxu0 %v10216_v52  ;;  %9247 = vmatprep.subr.bf16.mxu1 %v10265_v34  ;;  %v2781_v25 = vor.u32 %v2780_v50, %v11037_v44 }
  0xc1   : > { %9248 = vmatpush3.bf16.msra.mxu1 %v10265_v34 }
  0xc2   : > { %9378 = vmatmul.mubr.bf16.gmra.mrb[12].mxu0 %v8277_v56  ;;  %v2757_v56 = vor.u32 %v2756_v40, %v11024_v38  ;;  %9249 = vmatprep.subr.bf16.mxu1 %v10267_v39  ;;  %v2782_v32 = vrot.slane %v2781_v25, 4  ;;  %v2725_v40 = vld [vmem:[#allocation2 + $0x80] sm:$0xf]  ;;  %v2731_v25 = vld [vmem:[#allocation2 + $0xa8] sm:$0xf] }
  0xc3   : > { %9381 = vmatprep.mubr.bf16.mxu0 %v8278_v59  ;;  %9398 = vmatpush3.bf16.msra.mxu0 %v10216_v52  ;;  %v2767_v52 = vrot.slane %v2765_v31, 4  ;;  %v2792_v59 = vshll.u32 %v2716_v43, 16  ;;  %v2861_v57 = vshrl.u32 %v2725_v40, 16 }
  0xc4   : > { %9399 = vmatprep.subr.bf16.mxu0 %v10217_v63  ;;  %v2758_v12 = vrot.slane %v2757_v56, 4  ;;  %v8313_v56 = vcombine.low %v10943_v62, %v10960_v20 }
  0xc5   : > { %v2794_v29 = vrot.slane %v2792_v59, 5  ;;  %9250 = vmatpush3.bf16.msra.mxu1 %v10267_v39  ;;  %v2864_v59 = vshll.u32 %v2725_v40, 16  ;;  %v2734_v40 = vld [vmem:[#allocation2 + $0xbc] sm:$0xf] }
  0xc6   : > { %9251 = vmatprep.subr.bf16.mxu1 %v10271_v61 }
  0xc7   : > { %9400 = vmatpush3.bf16.msra.mxu0 %v10217_v63  ;;  %v2719_v63 = vld [vmem:[#allocation2 + $0x58] sm:$0xf]  ;;  %v2795_v31 = vor.u32 %v2794_v29, %v2791_v17  ;;  %v2866_v17 = vrot.slane %v2864_v59, 5 }
  0xc8   : > { %9421 = vmatprep.subr.bf16.mxu0 %v10220_v4  ;;  %v2816_v18 = vshll.u32 %v2719_v63, 16 }
  0xc9   : > { %9252 = vmatpush3.bf16.msra.mxu1 %v10271_v61  ;;  %v2729_v61 = vld [vmem:[#allocation2 + $0x98] sm:$0xf] }
  0xca   : > { %9382 = vmatmul.mubr.bf16.gmra.mrb[16].mxu0 %v8279_v5  ;;  %v2762_v5 = vrot.slane %v2760_v47, 5  ;;  %9253 = vmatprep.subr.bf16.mxu1 %v10272_v19  ;;  %v2818_v41 = vrot.slane %v2816_v18, 5  ;;  %v2732_v18 = vld [vmem:[#allocation2 + $0xac] sm:$0xf] }
  0xcb   : > { %9401 = vmatprep.mubr.bf16.mxu0 %v8304_v9  ;;  %v2771_v9 = vor.u32 %v2770_v54, %v2767_v52  ;;  %v2852_v52 = vrot.slane %v2850_v26, 4  ;;  %v2728_v54 = vld [vmem:[#allocation2 + $0x94] sm:$0xf] }
  0xcc   : > { %v2763_v27 = vsel %vm10716_vm5, %v2758_v12, %v2762_v5  ;;  %v2856_v5 = vshll.u32 %v2724_v45, 16  ;;  %v2885_v12 = vshrl.u32 %v2728_v54, 16  ;;  %v10237_v45 = vld [vmem:[%s12311_s5 + $0x188] sm:$0xff]  }
  0xcd   : > { %v2772_v30 = vrot.slane %v2771_v9, 4  ;;  %9254 = vmatpush3.bf16.msra.mxu1 %v10272_v19 }
  0xce   : > { %v2887_v26 = vrot.slane %v2885_v12, 4 }
  0xcf   : > { %v2777_v39 = vsel %vm10716_vm5, %v2772_v30, %v11037_v44 }
  0xd2   : > { %9402 = vmatmul.mubr.bf16.vlgmr.msra.gmra.mrb[0].mxu0 %v8305_v10  ;;  %v11049_v10 = vrot.slane %v2784_v55, 5  ;;  %v10276_v55 = vld [vmem:[%s12311_s5 + $0x78] sm:$0xff]  }
  0xd3   : > { %9422 = vmatpush3.bf16.msra.mxu0 %v10220_v4  ;;  %9405 = vmatprep.mubr.bf16.mxu0 %v8306_v11  ;;  %v11047_v4 = vrot.slane %v2747_v51, 4  ;;  %v2722_v11 = vld [vmem:[#allocation2 + $0x6c] sm:$0xf]  ;;  %v11082_v51 = vrot.slane %v2846_v7, 5 }
  0xd4   : > { %9423 = vmatprep.subr.bf16.mxu0 %v10221_v6  ;;  %v2837_v23 = vshrl.u32 %v2722_v11, 16  ;;  %v2840_v24 = vshll.u32 %v2722_v11, 16  ;;  %9255 = vmatprep.subr.bf16.mxu1 %v10276_v55  ;;  %v2727_v11 = vld [vmem:[#allocation2 + $0x88] sm:$0x1] }
  0xd5   : > { %v2853_v9 = vor.u32 %v2852_v52, %v11082_v51  ;;  %9256 = vmatpush3.bf16.msra.mxu1 %v10276_v55 }
  0xd6   : > { %v2839_v47 = vrot.slane %v2837_v23, 4  ;;  %v2858_v23 = vrot.slane %v2856_v5, 5 }
  0xd7   : > { %9424 = vmatpush3.bf16.msra.mxu0 %v10221_v6  ;;  %v11051_v6 = vld [vmem:[#allocation2 + $0x4c] sm:$0x1] }
  0xd8   : > { %9425 = vmatprep.subr.bf16.mxu0 %v10224_v58  ;;  %v2808_v37 = vshll.u32 %v11051_v6, 16  ;;  %v2888_v6 = vshll.u32 %v2728_v54, 16  ;;  %v2737_v54 = vld [vmem:[#allocation2 + $0xd0] sm:$0xf] }
  0xd9   : > { %v2960_v12 = vshll.u32 %v2737_v54, 16 }
  0xda   : > { %9406 = vmatmul.mubr.bf16.gmra.mrb[4].mxu0 %v8307_v35  ;;  %v11056_v35 = vld [vmem:[#allocation2 + $0x60] sm:$0x1]  ;;  %v2810_v62 = vrot.slane %v2808_v37, 5  ;;  %v2909_v37 = vshrl.u32 %v2731_v25, 16 }
  0xdb   : > { %9426 = vmatpush3.bf16.msra.mxu0 %v10224_v58  ;;  %9409 = vmatprep.mubr.bf16.mxu0 %v8308_v48  ;;  %v11053_v58 = vrot.slane %v2798_v60, 5  ;;  %v2813_v48 = vshrl.u32 %v2719_v63, 16  ;;  %v2796_v63 = vrot.slane %v2795_v31, 4  ;;  %v2880_v31 = vshll.u32 %v2727_v11, 16 }
  0xdc   : > { %9427 = vmatprep.subr.bf16.mxu0 %v10226_v22  ;;  %v2957_v11 = vshrl.u32 %v2737_v54, 16  ;;  %v10288_v54 = vld [vmem:[#allocation2 + $0x8] sm:$0xf] }
  0xdd   : > { %v2805_v36 = vor.u32 %v2804_v8, %v11053_v58  ;;  %v2815_v34 = vrot.slane %v2813_v48, 4  ;;  %v2898_v48 = vshrl.u32 %v2729_v61, 16  ;;  %v2882_v59 = vrot.slane %v2880_v31, 5 }
  0xdf   : > { %9428 = vmatpush3.bf16.msra.mxu0 %v10226_v22  ;;  %v2826_v22 = vshrl.u32 %v2720_v2, 16  ;;  %v2806_v2 = vrot.slane %v2805_v36, 4  ;;  %v2819_v20 = vor.u32 %v2818_v41, %v2815_v34  ;;  %v2900_v36 = vrot.slane %v2898_v48, 4 }
  0xe0   : > { %9429 = vmatprep.subr.bf16.mxu0 %v10228_v14  ;;  %v2912_v34 = vshll.u32 %v2731_v25, 16 }
  0xe1   : > { %v2828_v43 = vrot.slane %v2826_v22, 4  ;;  %v2820_v19 = vrot.slane %v2819_v20, 4  ;;  %v2811_v7 = vsel %vm10716_vm5, %v2806_v2, %v2810_v62  ;;  %v2933_v2 = vshrl.u32 %v2734_v40, 16 }
  0xe2   : > { %9410 = vmatmul.mubr.bf16.gmra.mrb[8].mxu0 %v8309_v16  ;;  %v2726_v16 = vld [vmem:[#allocation2 + $0x84] sm:$0xf]  ;;  %v2936_v62 = vshll.u32 %v2734_v40, 16 }
  0xe3   : > { %9430 = vmatpush3.bf16.msra.mxu0 %v10228_v14  ;;  %9413 = vmatprep.mubr.bf16.mxu0 %v8310_v46  ;;  %v2753_v14 = vsel %vm10716_vm5, %v11047_v4, %v11024_v38  ;;  %v2832_v38 = vshll.u32 %v11056_v35, 16  ;;  %v11080_v46 = vld [vmem:[%s12311_s5 + $0x180] sm:$0xff]   ;;  %v2870_v50 = vshll.u32 %v2726_v16, 16  ;;  %v2874_v53 = vshrl.u32 %v2726_v16, 16 }
  0xe4   : > { %9431 = vmatprep.subr.bf16.mxu0 %v10231_v49  ;;  %v8338_v60 = vcombine.low %v2753_v14, %v2763_v27  ;;  %v2894_v35 = vshll.u32 %v2729_v61, 16  ;;  %v2854_v14 = vrot.slane %v2853_v9, 4  ;;  %v2825_v16 = vsel %vm10716_vm5, %v2820_v19, %v11074_v42  ;;  %v10240_v40 = vld [vmem:[%s12311_s5 + $0x1a0] sm:$0xff]  }
  0xe5   : > { %v11097_v44 = vrot.slane %v2832_v38, 5  ;;  %v11100_v29 = vrot.slane %v2870_v50, 5  ;;  %v2876_v15 = vrot.slane %v2874_v53, 4  ;;  %v2922_v38 = vshrl.u32 %v2732_v18, 16 }
  0xe6   : > { %v2859_v50 = vsel %vm10716_vm5, %v2854_v14, %v2858_v23  ;;  %v2911_v61 = vrot.slane %v2909_v37, 4  ;;  %v2935_v48 = vrot.slane %v2933_v2, 4  ;;  %v2739_v14 = vld [vmem:[#allocation2 + $0xd8] sm:$0x1] }
  0xe7   : > { %9432 = vmatpush3.bf16.msra.mxu0 %v10231_v49  ;;  %v2842_v49 = vrot.slane %v2840_v24, 5  ;;  %v2730_v24 = vld [vmem:[#allocation2 + $0x9c] sm:$0x1]  ;;  %v2877_v30 = vor.u32 %v2876_v15, %v11100_v29 }
  0xe8   : > { %9433 = vmatprep.subr.bf16.mxu0 %v10232_v3  ;;  %v2904_v52 = vshll.u32 %v2730_v24, 16 }
  0xe9   : > { %v2843_v4 = vor.u32 %v2842_v49, %v2839_v47 }
  0xea   : > { %9414 = vmatmul.mubr.bf16.gmra.mrb[12].mxu0 %v8311_v0  ;;  %v2787_v0 = vsel %vm10716_vm5, %v2782_v32, %v11049_v10  ;;  %v2863_v10 = vrot.slane %v2861_v57, 4  ;;  %v11108_v32 = vrot.slane %v2894_v35, 5  ;;  %v11124_v57 = vrot.slane %v2877_v30, 4 }
  0xeb   : > { %9417 = vmatprep.mubr.bf16.mxu0 %v8312_v1  ;;  %9434 = vmatpush3.bf16.msra.mxu0 %v10232_v3  ;;  %v2829_v3 = vor.u32 %v2828_v43, %v11074_v42  ;;  %v8339_v8 = vcombine.low %v2777_v39, %v2787_v0  ;;  %v2844_v22 = vrot.slane %v2843_v4, 4  ;;  %v2801_v1 = vsel %vm10716_vm5, %v2796_v63, %v11053_v58  ;;  %v2735_v58 = vld [vmem:[#allocation2 + $0xc0] sm:$0xf]  ;;  %v2738_v39 = vld [vmem:[#allocation2 + $0xd4] sm:$0xf] }
  0xec   : > { %9435 = vmatprep.subr.bf16.mxu0 %v10235_v13  ;;  %v2867_v27 = vor.u32 %v2866_v17, %v2863_v10  ;;  %v8340_v41 = vcombine.low %v2801_v1, %v2811_v7  ;;  %v2918_v43 = vshll.u32 %v2732_v18, 16  ;;  %v10238_v42 = vld [vmem:[%s12311_s5 + $0x190] sm:$0xff]   ;;  %v2901_v53 = vor.u32 %v2900_v36, %v11108_v32  ;;  %v2736_v17 = vld [vmem:[#allocation2 + $0xc4] sm:$0x1] }
  0xed   : > { %v2830_v21 = vrot.slane %v2829_v3, 4  ;;  %v2849_v55 = vsel %vm10716_vm5, %v2844_v22, %v11082_v51  ;;  %v2914_v0 = vrot.slane %v2912_v34, 5  ;;  %v2924_v63 = vrot.slane %v2922_v38, 4 }
  0xee   : > { %v11133_v51 = vrot.slane %v2918_v43, 5  ;;  %v2906_v3 = vrot.slane %v2904_v52, 5  ;;  %v2942_v4 = vshll.u32 %v2735_v58, 16  ;;  %v2946_v5 = vshrl.u32 %v2735_v58, 16 }
  0xef   : > { %9436 = vmatpush3.bf16.msra.mxu0 %v10235_v13  ;;  %v2890_v13 = vrot.slane %v2888_v6, 5  ;;  %v2835_v47 = vsel %vm10716_vm5, %v2830_v21, %v11097_v44  ;;  %v8342_v9 = vcombine.low %v2849_v55, %v2859_v50  ;;  %v10239_v6 = vld [vmem:[%s12311_s5 + $0x198] sm:$0xff]   ;;  %v2966_v15 = vshll.u32 %v2738_v39, 16  ;;  %v10289_v55 = vld [vmem:[#allocation2 + $0xc] sm:$0xf] }
  0xf0   : > { %9457 = vmatprep.subr.bf16.mxu0 %v11080_v46  ;;  %v8341_v44 = vcombine.low %v2825_v16, %v2835_v47  ;;  %v2970_v25 = vshrl.u32 %v2738_v39, 16  ;;  %v2925_v35 = vor.u32 %v2924_v63, %v11133_v51  ;;  %v2938_v18 = vrot.slane %v2936_v62, 5  ;;  %v3218_v47 = vld [vmem:[#allocation2 + $0x2c] sm:$0x8] }
  0xf1   : > { %v2891_v49 = vor.u32 %v2890_v13, %v2887_v26  ;;  %v11143_v21 = vrot.slane %v2942_v4, 5  ;;  %v2948_v22 = vrot.slane %v2946_v5, 4  ;;  %v2883_v23 = vsel %vm10716_vm5, %v11124_v57, %v2882_v59  ;;  %v11151_v26 = vld [vmem:[#allocation2 + $0x30] sm:$0xf]  ;;  %v10290_v57 = vld [vmem:[#allocation2 + $0x1c] sm:$0xf] }
  0xf2   : > { %9418 = vmatmul.mubr.bf16.gmra.mrb[16].mxu0 %v8313_v56  ;;  %v11122_v56 = vrot.slane %v2867_v27, 4  ;;  %v2959_v1 = vrot.slane %v2957_v11, 4  ;;  %v2962_v7 = vrot.slane %v2960_v12, 5  ;;  %v11155_v27 = vrot.slane %v2966_v15, 5  ;;  %v10291_v59 = vld [vmem:[#allocation2 + $0x20] sm:$0xf] }
  0xf3   : > { %9437 = vmatprep.mubr.bf16.mxu0 %v8338_v60  ;;  %v2733_v60 = vld [vmem:[#allocation2 + $0xb0] sm:$0x1]  ;;  %v2892_v20 = vrot.slane %v2891_v49, 4  ;;  %v2972_v30 = vrot.slane %v2970_v25, 4  ;;  %v2926_v36 = vrot.slane %v2925_v35, 4  ;;  %v2939_v37 = vor.u32 %v2938_v18, %v2935_v48 }
  0xf4   : > { %v2928_v10 = vshll.u32 %v2733_v60, 16  ;;  %v2873_v19 = vsel %vm10716_vm5, %v11122_v56, %v11100_v29  ;;  %v2952_v34 = vshll.u32 %v2736_v17, 16  ;;  %v3254_v43 = vshrl.u32 %v11151_v26, 16  ;;  %v11177_v4 = vld [vmem:[#allocation2 + $0x48] sm:$0xf] }
  0xf5   : > { %v2897_v24 = vsel %vm10716_vm5, %v2892_v20, %v11108_v32  ;;  %v11157_v32 = vld [vmem:[#allocation2 + $0x34] sm:$0xf]  ;;  %v8343_v38 = vcombine.low %v2873_v19, %v2883_v23  ;;  %v2976_v16 = vshll.u32 %v2739_v14, 16  ;;  %v2973_v49 = vor.u32 %v2972_v30, %v11155_v27  ;;  %v3221_v11 = vld [vmem:[#allocation2 + $0x40] sm:$0x8] }
  0xf6   : > { %v2930_v29 = vrot.slane %v2928_v10, 5  ;;  %v3263_v52 = vshrl.u32 %v11157_v32, 16  ;;  %v8174_v56 = vcombine.low %v10288_v54, %v10289_v55  ;;  %v8175_v60 = vcombine.low %v10290_v57, %v10291_v59  ;;  %v10292_v17 = vld [vmem:[#allocation2 + $0x30] sm:$0xf]  ;;  %v10293_v15 = vld [vmem:[#allocation2 + $0x34] sm:$0xf] }
  0xf7   : > { %v2940_v50 = vrot.slane %v2939_v37, 4  ;;  %v3249_v2 = vshrl.u32 %v3218_v47, 16  ;;  %v3256_v62 = vrot.slane %v3254_v43, 7  ;;  %v3257_v20 = vshll.u32 %v11151_v26, 16  ;;  %v11190_v19 = vld [vmem:[#allocation2 + $0x58] sm:$0xf] }
  0xf8   : > { %9257 = vmatprep.mubr.bf16.mxu1 %v8174_v56  ;;  %v2974_v5 = vrot.slane %v2973_v49, 4  ;;  %v8176_v25 = vcombine.low %v10292_v17, %v10293_v15  ;;  %v3285_v18 = vshrl.u32 %v11177_v4, 16  ;;  %v3224_v37 = vld [vmem:[#allocation2 + $0x54] sm:$0x8]  ;;  %v3288_v43 = vshll.u32 %v11177_v4, 16 }
  0xf9   : > { %9258 = vmatmul.mubr.bf16.vlgmr.msra.gmra.mrb[0].mxu1 %v8175_v60  ;;  %v2945_v10 = vsel %vm10716_vm5, %v2940_v50, %v11143_v21  ;;  %v8356_v35 = vrot.slane %v3249_v2, 11  ;;  %v3259_v48 = vor.u32 %v3257_v20, %v3256_v62  ;;  %v3293_v54 = vshrl.u32 %v3224_v37, 16  ;;  %v3227_v55 = vld [vmem:[#allocation2 + $0x68] sm:$0x8]  ;;  %v11214_v56 = vld [vmem:[#allocation2 + $0x80] sm:$0xf] }
  0xfa   : > { %9438 = vmatmul.mubr.bf16.vlgmr.msra.gmra.mrb[0].mxu0 %v8339_v8  ;;  %v2915_v8 = vor.u32 %v2914_v0, %v2911_v61  ;;  %v11171_v61 = vld [vmem:[#allocation2 + $0x44] sm:$0xf]  ;;  %v10241_v0 = vld [vmem:[%s12311_s5 + $0x1a8] sm:$0xff]   ;;  %9261 = vmatprep.mubr.bf16.mxu1 %v8176_v25  ;;  %v3301_v59 = vshll.u32 %v11190_v19, 16  ;;  %v3342_v20 = vshrl.u32 %v11214_v56, 16 }
  0xfb   : > { %9458 = vmatpush3.bf16.msra.mxu0 %v11080_v46  ;;  %9441 = vmatprep.mubr.bf16.mxu0 %v8340_v41  ;;  %v2902_v46 = vrot.slane %v2901_v53, 4  ;;  %v2949_v41 = vor.u32 %v2948_v22, %v11143_v21  ;;  %v2954_v53 = vrot.slane %v2952_v34, 5  ;;  %v3276_v12 = vshrl.u32 %v11171_v61, 16  ;;  %v11192_v22 = vld [vmem:[#allocation2 + $0x5c] sm:$0xf] }
  0xfc   : > { %9459 = vmatprep.subr.bf16.mxu0 %v10237_v45  ;;  %v2916_v31 = vrot.slane %v2915_v8, 4  ;;  %v3261_v21 = vrot.slane %v3256_v62, 4  ;;  %v3298_v34 = vshrl.u32 %v11190_v19, 16 }
  0xfd   : > { %v2907_v13 = vsel %vm10716_vm5, %v2902_v46, %v2906_v3  ;;  %v2950_v63 = vrot.slane %v2949_v41, 4  ;;  %v10242_v46 = vld [vmem:[%s12311_s5 + $0x1b0] sm:$0xff]   ;;  %v3278_v30 = vrot.slane %v3276_v12, 7  ;;  %v3287_v41 = vrot.slane %v3285_v18, 7 }
  0xfe   : > { %v8344_v58 = vcombine.low %v2897_v24, %v2907_v13  ;;  %v2921_v39 = vsel %vm10716_vm5, %v2916_v31, %v11133_v51  ;;  %v2978_v51 = vrot.slane %v2976_v16, 5  ;;  %v3271_v24 = vshrl.u32 %v3221_v11, 16  ;;  %v11210_v16 = vld [vmem:[#allocation2 + $0x70] sm:$0xf] }
  0xff   : > { %9460 = vmatpush3.bf16.msra.mxu0 %v10237_v45  ;;  %v2963_v45 = vor.u32 %v2962_v7, %v2959_v1  ;;  %v2955_v8 = vsel %vm10716_vm5, %v2950_v63, %v2954_v53  ;;  %v10294_v1 = vld [vmem:[#allocation2 + $0x44] sm:$0xf]  ;;  %v10295_v7 = vld [vmem:[#allocation2 + $0x48] sm:$0xf]  ;;  %v3279_v31 = vshll.u32 %v11171_v61, 16  ;;  %v3300_v57 = vrot.slane %v3298_v34, 7 }
 0x100   : > { %9461 = vmatprep.subr.bf16.mxu0 %v10238_v42  ;;  %v8177_v13 = vcombine.low %v10294_v1, %v10295_v7  ;;  %v8357_v49 = vrot.slane %v3271_v24, 11  ;;  %v3283_v50 = vrot.slane %v3278_v30, 4  ;;  %v3290_v53 = vor.u32 %v3288_v43, %v3287_v41  ;;  %v11244_v34 = vld [vmem:[#allocation2 + $0xa8] sm:$0xf] }
 0x101   : > { %v2964_v3 = vrot.slane %v2963_v45, 4  ;;  %v11208_v45 = vld [vmem:[#allocation2 + $0x6c] sm:$0xf]  ;;  %v3329_v2 = vshrl.u32 %v11210_v16, 16  ;;  %v3303_v15 = vor.u32 %v3301_v59, %v3300_v57  ;;  %v3305_v25 = vrot.slane %v3300_v57, 4 }
 0x102   : > { %9442 = vmatmul.mubr.bf16.gmra.mrb[4].mxu0 %v8341_v44  ;;  %v3265_v44 = vrot.slane %v3263_v52, 7  ;;  %9262 = vmatmul.mubr.bf16.gmra.mrb[4].mxu1 %v8177_v13  ;;  %v3281_v52 = vor.u32 %v3279_v31, %v3278_v30  ;;  %v3320_v63 = vshrl.u32 %v11208_v45, 16  ;;  %v3344_v1 = vrot.slane %v3342_v20, 7  ;;  %v11240_v30 = vld [vmem:[#allocation2 + $0x98] sm:$0xf] }
 0x103   : > { %9462 = vmatpush3.bf16.msra.mxu0 %v10238_v42  ;;  %9445 = vmatprep.mubr.bf16.mxu0 %v8342_v9  ;;  %v2931_v42 = vsel %vm10716_vm5, %v2926_v36, %v2930_v29  ;;  %v3266_v9 = vshll.u32 %v11157_v32, 16  ;;  %v2969_v23 = vsel %vm10716_vm5, %v2964_v3, %v11155_v27  ;;  %v2979_v29 = vsel %vm10716_vm5, %v2974_v5, %v2978_v51  ;;  %v10296_v3 = vld [vmem:[#allocation2 + $0x58] sm:$0xf]  ;;  %v10297_v51 = vld [vmem:[#allocation2 + $0x5c] sm:$0xf] }
 0x104   : > { %9463 = vmatprep.subr.bf16.mxu0 %v10239_v6  ;;  %v8346_v36 = vcombine.low %v2945_v10, %v2955_v8  ;;  %v3307_v27 = vshrl.u32 %v11192_v22, 16  ;;  %v8178_v5 = vcombine.low %v10296_v3, %v10297_v51  ;;  %v3282_v12 = vsel %vm10616_vm2, %v8357_v49, %v3281_v52  ;;  %v3230_v10 = vld [vmem:[#allocation2 + $0x7c] sm:$0x8]  ;;  %v3233_v49 = vld [vmem:[#allocation2 + $0x90] sm:$0x8]  ;;  %v10245_v51 = vld [vmem:[%s12311_s5 + $0x1c8] sm:$0xff]  }
 0x105   : > { %v3268_v14 = vor.u32 %v3266_v9, %v3265_v44  ;;  %v10298_v44 = vld [vmem:[#allocation2 + $0x6c] sm:$0xf]  ;;  %v10299_v9 = vld [vmem:[#allocation2 + $0x70] sm:$0xf]  ;;  %v3322_v18 = vrot.slane %v3320_v63, 7  ;;  %v3337_v24 = vshrl.u32 %v3230_v10, 16 }
 0x106   : > { %v3309_v60 = vrot.slane %v3307_v27, 7  ;;  %v8179_v11 = vcombine.low %v10298_v44, %v10299_v9  ;;  %9265 = vmatprep.mubr.bf16.mxu1 %v8178_v5  ;;  %v3345_v7 = vshll.u32 %v11214_v56, 16  ;;  %v3236_v59 = vld [vmem:[#allocation2 + $0xa4] sm:$0x8]  ;;  %v10303_v20 = vld [vmem:[#allocation2 + $0x98] sm:$0xf] }
 0x107   : > { %9464 = vmatpush3.bf16.msra.mxu0 %v10239_v6  ;;  %v8345_v6 = vcombine.low %v2921_v39, %v2931_v42  ;;  %v3269_v47 = vsel %vm10616_vm2, %v3261_v21, %v3268_v14  ;;  %v3310_v39 = vshll.u32 %v11192_v22, 16  ;;  %v11218_v42 = vld [vmem:[#allocation2 + $0x84] sm:$0xf]  ;;  %v3332_v21 = vshll.u32 %v11210_v16, 16  ;;  %v11238_v14 = vld [vmem:[#allocation2 + $0x94] sm:$0xf] }
 0x108   : > { %9465 = vmatprep.subr.bf16.mxu0 %v10240_v40  ;;  %v3351_v17 = vshrl.u32 %v11218_v42, 16  ;;  %v3327_v41 = vrot.slane %v3322_v18, 4  ;;  %v3364_v52 = vshrl.u32 %v11238_v14, 16  ;;  %v3359_v9 = vshrl.u32 %v3233_v49, 16  ;;  %v10304_v49 = vld [vmem:[#allocation2 + $0xa8] sm:$0xf] }
 0x109   : > { %v3312_v8 = vor.u32 %v3310_v39, %v3309_v60  ;;  %v3386_v60 = vshrl.u32 %v11244_v34, 16  ;;  %v10300_v39 = vld [vmem:[#allocation2 + $0x80] sm:$0xf]  ;;  %v3381_v10 = vshrl.u32 %v3236_v59, 16 }
 0x10a   : > { %9446 = vmatmul.mubr.bf16.gmra.mrb[8].mxu0 %v8343_v38  ;;  %v8347_v38 = vcombine.low %v2969_v23, %v2979_v29  ;;  %v3331_v23 = vrot.slane %v3329_v2, 7  ;;  %9266 = vmatmul.mubr.bf16.gmra.mrb[8].mxu1 %v8179_v11  ;;  %v3353_v13 = vrot.slane %v3351_v17, 7  ;;  %v3354_v29 = vshll.u32 %v11218_v42, 16 }
 0x10b   : > { %9466 = vmatpush3.bf16.msra.mxu0 %v10240_v40  ;;  %9449 = vmatprep.mubr.bf16.mxu0 %v8344_v58  ;;  %v10243_v40 = vld [vmem:[%s12311_s5 + $0x1b8] sm:$0xff]   ;;  %v3260_v58 = vsel %vm10616_vm2, %v8356_v35, %v3259_v48  ;;  %v3323_v35 = vshll.u32 %v11208_v45, 16  ;;  %v3291_v48 = vsel %vm10616_vm2, %v3283_v50, %v3290_v53  ;;  %v3313_v27 = vsel %vm10616_vm2, %v3305_v25, %v3312_v8  ;;  %v10301_v50 = vld [vmem:[#allocation2 + $0x84] sm:$0xf] }
 0x10c   : > { %9467 = vmatprep.subr.bf16.mxu0 %v10241_v0  ;;  %v8382_v62 = vcombine.low %v3260_v58, %v3269_v47  ;;  %v8383_v31 = vcombine.low %v3282_v12, %v3291_v48  ;;  %v3334_v43 = vor.u32 %v3332_v21, %v3331_v23  ;;  %v8360_v58 = vrot.slane %v3337_v24, 11  ;;  %v11272_v23 = vld [vmem:[#allocation2 + $0xc0] sm:$0xf]  ;;  %v10246_v24 = vld [vmem:[%s12311_s5 + $0x1d0] sm:$0xff]  }
 0x10d   : > { %v3347_v47 = vor.u32 %v3345_v7, %v3344_v1  ;;  %v3356_v57 = vor.u32 %v3354_v29, %v3353_v13  ;;  %v8180_v53 = vcombine.low %v10300_v39, %v10301_v50  ;;  %v3367_v11 = vshll.u32 %v11238_v14, 16  ;;  %v3242_v39 = vld [vmem:[#allocation2 + $0xcc] sm:$0x8] }
 0x10e   : > { %v3335_v44 = vsel %vm10616_vm2, %v3327_v41, %v3334_v43  ;;  %v3366_v12 = vrot.slane %v3364_v52, 7  ;;  %v3388_v25 = vrot.slane %v3386_v60, 7  ;;  %v3389_v8 = vshll.u32 %v11244_v34, 16  ;;  %v10305_v52 = vld [vmem:[#allocation2 + $0xac] sm:$0xf]  ;;  %v10247_v60 = vld [vmem:[%s12311_s5 + $0x1d8] sm:$0xff]  }
 0x10f   : > { %9468 = vmatpush3.bf16.msra.mxu0 %v10241_v0  ;;  %v11223_v0 = vld [vmem:[%s12311_s5 + $0x1c0] sm:$0xff]   ;;  %9269 = vmatprep.mubr.bf16.mxu1 %v8180_v53  ;;  %v3348_v17 = vsel %vm10616_vm2, %v8360_v58, %v3347_v47  ;;  %v3417_v43 = vshrl.u32 %v11272_v23, 16 }
 0x110   : > { %9469 = vmatprep.subr.bf16.mxu0 %v10242_v46  ;;  %v3369_v13 = vor.u32 %v3367_v11, %v3366_v12  ;;  %v3371_v29 = vrot.slane %v3366_v12, 4  ;;  %v3393_v58 = vrot.slane %v3388_v25, 4  ;;  %v3425_v12 = vshrl.u32 %v3242_v39, 16 }
 0x112   : > { %9450 = vmatmul.mubr.bf16.gmra.mrb[12].mxu0 %v8345_v6  ;;  %v8358_v6 = vrot.slane %v3293_v54, 11  ;;  %v3373_v54 = vshrl.u32 %v11240_v30, 16 }
 0x113   : > { %9453 = vmatprep.mubr.bf16.mxu0 %v8346_v36  ;;  %9470 = vmatpush3.bf16.msra.mxu0 %v10242_v46  ;;  %v3315_v46 = vshrl.u32 %v3227_v55, 16  ;;  %v3349_v55 = vrot.slane %v3344_v1, 4  ;;  %v8361_v1 = vrot.slane %v3359_v9, 11 }
 0x114   : > { %9471 = vmatprep.subr.bf16.mxu0 %v10243_v40  ;;  %v3304_v36 = vsel %vm10616_vm2, %v8358_v6, %v3303_v15  ;;  %v3375_v6 = vrot.slane %v3373_v54, 7  ;;  %v8182_v54 = vcombine.low %v10304_v49, %v10305_v52 }
 0x115   : > { %v8359_v37 = vrot.slane %v3315_v46, 11  ;;  %v8384_v63 = vcombine.low %v3304_v36, %v3313_v27  ;;  %v3376_v46 = vshll.u32 %v11240_v30, 16  ;;  %v3357_v15 = vsel %vm10616_vm2, %v3349_v55, %v3356_v57  ;;  %v11279_v36 = vld [vmem:[#allocation2 + $0xd4] sm:$0xf]  ;;  %v10306_v55 = vld [vmem:[#allocation2 + $0xbc] sm:$0xf] }
 0x116   : > { %v8386_v7 = vcombine.low %v3348_v17, %v3357_v15  ;;  %v3391_v27 = vor.u32 %v3389_v8, %v3388_v25  ;;  %v10307_v57 = vld [vmem:[#allocation2 + $0xc0] sm:$0xf]  ;;  %v3439_v53 = vshrl.u32 %v11279_v36, 16  ;;  %v3442_v15 = vshll.u32 %v11279_v36, 16  ;;  %v11305_v25 = vld [vmem:[#allocation2 + $0xe8] sm:$0xf] }
 0x117   : > { %9472 = vmatpush3.bf16.msra.mxu0 %v10243_v40  ;;  %v3325_v40 = vor.u32 %v3323_v35, %v3322_v18  ;;  %v11270_v18 = vld [vmem:[#allocation2 + $0xbc] sm:$0xf]  ;;  %v8183_v59 = vcombine.low %v10306_v55, %v10307_v57  ;;  %v3464_v55 = vshll.u32 %v11305_v25, 16  ;;  %v10250_v57 = vld [vmem:[%s12311_s5 + $0x1f0] sm:$0xff]  }
 0x118   : > { %9493 = vmatprep.subr.bf16.mxu0 %v11223_v0  ;;  %v3408_v41 = vshrl.u32 %v11270_v18, 16  ;;  %v3441_v17 = vrot.slane %v3439_v53, 7 }
 0x119   : > { %v3326_v5 = vsel %vm10616_vm2, %v8359_v37, %v3325_v40  ;;  %v8362_v37 = vrot.slane %v3381_v10, 11  ;;  %v3239_v40 = vld [vmem:[#allocation2 + $0xb8] sm:$0x8] }
 0x11a   : > { %9454 = vmatmul.mubr.bf16.gmra.mrb[16].mxu0 %v8347_v38  ;;  %v11248_v38 = vld [vmem:[#allocation2 + $0xac] sm:$0xf]  ;;  %v8385_v21 = vcombine.low %v3326_v5, %v3335_v44  ;;  %v3420_v5 = vshll.u32 %v11272_v23, 16  ;;  %v10248_v44 = vld [vmem:[%s12311_s5 + $0x1e0] sm:$0xff]  }
 0x11b   : > { %9473 = vmatprep.mubr.bf16.mxu0 %v8382_v62  ;;  %v3395_v2 = vshrl.u32 %v11248_v38, 16  ;;  %v10302_v62 = vld [vmem:[#allocation2 + $0x94] sm:$0xf]  ;;  %v3398_v48 = vshll.u32 %v11248_v38, 16  ;;  %v3392_v9 = vsel %vm10616_vm2, %v8362_v37, %v3391_v27  ;;  %v8364_v37 = vrot.slane %v3425_v12, 11 }
 0x11c   : > { %v8181_v3 = vcombine.low %v10302_v62, %v10303_v20  ;;  %v3403_v62 = vshrl.u32 %v3239_v40, 16  ;;  %v3410_v20 = vrot.slane %v3408_v41, 7  ;;  %v3444_v41 = vor.u32 %v3442_v15, %v3441_v17 }
 0x11d   : > { %v3397_v35 = vrot.slane %v3395_v2, 7  ;;  %v8418_v12 = vcombine.low %v11190_v19, %v11192_v22  ;;  %v10263_v19 = vld [vmem:[%s12311_s5 + $0x218] sm:$0xff]  }
 0x11e   : > { %9270 = vmatmul.mubr.bf16.gmra.mrb[12].mxu1 %v8181_v3  ;;  %v3411_v3 = vshll.u32 %v11270_v18, 16 }
 0x11f   : > { %v3400_v47 = vor.u32 %v3398_v48, %v3397_v35  ;;  %9273 = vmatprep.mubr.bf16.mxu1 %v8182_v54  ;;  %v8363_v35 = vrot.slane %v3403_v62, 11 }
 0x120   : > { %v3413_v48 = vor.u32 %v3411_v3, %v3410_v20 }
 0x121   : > { %v3401_v11 = vsel %vm10616_vm2, %v3393_v58, %v3400_v47 }
 0x122   : > { %9474 = vmatmul.mubr.bf16.vlgmr.msra.gmra.mrb[0].mxu0 %v8383_v31  ;;  %v3378_v31 = vor.u32 %v3376_v46, %v3375_v6  ;;  %v11301_v6 = vld [vmem:[#allocation2 + $0xe4] sm:$0xf] }
 0x123   : > { %9494 = vmatpush3.bf16.msra.mxu0 %v11223_v0  ;;  %9477 = vmatprep.mubr.bf16.mxu0 %v8384_v63  ;;  %v11277_v0 = vld [vmem:[#allocation2 + $0xd0] sm:$0xf]  ;;  %v3370_v63 = vsel %vm10616_vm2, %v8361_v1, %v3369_v13  ;;  %v8388_v1 = vcombine.low %v3392_v9, %v3401_v11  ;;  %v3452_v13 = vshrl.u32 %v11301_v6, 16  ;;  %v3455_v52 = vshll.u32 %v11301_v6, 16 }
 0x124   : > { %9495 = vmatprep.subr.bf16.mxu0 %v10245_v51  ;;  %v3430_v50 = vshrl.u32 %v11277_v0, 16  ;;  %v3379_v2 = vsel %vm10616_vm2, %v3371_v29, %v3378_v31  ;;  %v3433_v10 = vshll.u32 %v11277_v0, 16  ;;  %v3461_v29 = vshrl.u32 %v11305_v25, 16  ;;  %v10249_v31 = vld [vmem:[%s12311_s5 + $0x1e8] sm:$0xff]  }
 0x125   : > { %v8387_v8 = vcombine.low %v3370_v63, %v3379_v2  ;;  %v3454_v49 = vrot.slane %v3452_v13, 7  ;;  %v8416_v9 = vcombine.low %v11151_v26, %v11157_v32  ;;  %v8417_v11 = vcombine.low %v11171_v61, %v11177_v4  ;;  %v10260_v26 = vld [vmem:[%s12311_s5 + $0x210] sm:$0xff]  }
 0x126   : > { %9274 = vmatmul.mubr.bf16.gmra.mrb[16].mxu1 %v8183_v59  ;;  %v3432_v46 = vrot.slane %v3430_v50, 7  ;;  %v3463_v54 = vrot.slane %v3461_v29, 7  ;;  %v3964_v32 = vld [vmem:[#allocation2 + $0x30] sm:$0xf]  ;;  %v8419_v61 = vcombine.low %v11208_v45, %v11210_v16  ;;  %v8420_v4 = vcombine.low %v11214_v56, %v11218_v42  ;;  %v10266_v45 = vld [vmem:[%s12311_s5 + $0x220] sm:$0xff]  }
 0x127   : > { %9496 = vmatpush3.bf16.msra.mxu0 %v10245_v51  ;;  %v3419_v51 = vrot.slane %v3417_v43, 7  ;;  %v3414_v43 = vsel %vm10616_vm2, %v8363_v35, %v3413_v48  ;;  %v3457_v63 = vor.u32 %v3455_v52, %v3454_v49  ;;  %v3459_v2 = vrot.slane %v3454_v49, 4  ;;  %v3967_v35 = vld [vmem:[#allocation2 + $0x44] sm:$0xf]  ;;  %v3968_v48 = vld [vmem:[#allocation2 + $0x48] sm:$0xf] }
 0x128   : > { %9497 = vmatprep.subr.bf16.mxu0 %v10246_v24  ;;  %v3435_v27 = vor.u32 %v3433_v10, %v3432_v46  ;;  %v3437_v40 = vrot.slane %v3432_v46, 4  ;;  %v3466_v62 = vor.u32 %v3464_v55, %v3463_v54  ;;  %v10255_v46 = vld [vmem:[%s12311_s5 + $0x208] sm:$0xff]   ;;  %v3965_v10 = vld [vmem:[#allocation2 + $0x34] sm:$0xf]  ;;  %v3995_v22 = vshrl.u32 %v3964_v32, 16 }
 0x129   : > { %v3998_v17 = vshll.u32 %v3964_v32, 16  ;;  %v4004_v15 = vshll.u32 %v3965_v10, 16  ;;  %v3966_v16 = vld [vmem:[#allocation2 + $0x38] sm:$0x1]  ;;  %v4022_v13 = vshll.u32 %v3967_v35, 16  ;;  %v4028_v29 = vshll.u32 %v3968_v48, 16 }
 0x12a   : > { %9478 = vmatmul.mubr.bf16.gmra.mrb[4].mxu0 %v8385_v21  ;;  %v3415_v21 = vrot.slane %v3410_v20, 4  ;;  %v3436_v59 = vsel %vm10616_vm2, %v8364_v37, %v3435_v27  ;;  %v10251_v20 = vld [vmem:[%s12311_s5 + $0x1f8] sm:$0xff]   ;;  %v3997_v56 = vrot.slane %v3995_v22, 4  ;;  %v8421_v37 = vcombine.low %v11238_v14, %v11240_v30  ;;  %v3969_v52 = vld [vmem:[#allocation2 + $0x4c] sm:$0x1] }
 0x12b   : > { %9498 = vmatpush3.bf16.msra.mxu0 %v10246_v24  ;;  %9481 = vmatprep.mubr.bf16.mxu0 %v8386_v7  ;;  %v3422_v24 = vor.u32 %v3420_v5, %v3419_v51  ;;  %v3245_v7 = vld [vmem:[#allocation2 + $0xe0] sm:$0x8]  ;;  %v3467_v51 = vsel %vm10616_vm2, %v3459_v2, %v3466_v62  ;;  %v4000_v42 = vrot.slane %v3998_v17, 5  ;;  %v8422_v27 = vcombine.low %v11244_v34, %v11248_v38  ;;  %v3973_v55 = vld [vmem:[#allocation2 + $0x6c] sm:$0xf]  ;;  %v10273_v2 = vld [vmem:[%s12311_s5 + $0x230] sm:$0xff]  }
 0x12c   : > { %9499 = vmatprep.subr.bf16.mxu0 %v10247_v60  ;;  %v3447_v47 = vshrl.u32 %v3245_v7, 16  ;;  %v10254_v5 = vld [vmem:[%s12311_s5 + $0x200] sm:$0xff]   ;;  %v4024_v14 = vrot.slane %v4022_v13, 5  ;;  %v11367_v30 = vrot.slane %v4028_v29, 5  ;;  %v3974_v34 = vld [vmem:[#allocation2 + $0x70] sm:$0xf]  ;;  %v8424_v32 = vcombine.low %v11277_v0, %v11279_v36 }
 0x12d   : > { %v3423_v58 = vsel %vm10616_vm2, %v3415_v21, %v3422_v24  ;;  %v11357_v21 = vrot.slane %v4004_v15, 5  ;;  %v4019_v24 = vshrl.u32 %v3967_v35, 16  ;;  %v4001_v49 = vor.u32 %v4000_v42, %v3997_v56  ;;  %v3976_v22 = vld [vmem:[#allocation2 + $0x80] sm:$0xf] }
 0x12e   : > { %v8389_v39 = vcombine.low %v3414_v43, %v3423_v58  ;;  %v8365_v50 = vrot.slane %v3447_v47, 11  ;;  %v10270_v47 = vld [vmem:[%s12311_s5 + $0x228] sm:$0xff]   ;;  %v4067_v62 = vshrl.u32 %v3973_v55, 16  ;;  %v4091_v42 = vshrl.u32 %v3976_v22, 16 }
 0x12f   : > { %9500 = vmatpush3.bf16.msra.mxu0 %v10247_v60  ;;  %v3445_v60 = vsel %vm10616_vm2, %v3437_v40, %v3444_v41  ;;  %v4014_v40 = vshll.u32 %v3966_v16, 16  ;;  %v3971_v41 = vld [vmem:[#allocation2 + $0x5c] sm:$0xf]  ;;  %v4021_v54 = vrot.slane %v4019_v24, 4  ;;  %v4094_v24 = vshll.u32 %v3976_v22, 16 }
 0x130   : > { %9501 = vmatprep.subr.bf16.mxu0 %v10248_v44  ;;  %v8390_v53 = vcombine.low %v3436_v59, %v3445_v60  ;;  %v3458_v3 = vsel %vm10616_vm2, %v8365_v50, %v3457_v63  ;;  %v4052_v38 = vshll.u32 %v3971_v41, 16  ;;  %v4056_v60 = vshrl.u32 %v3971_v41, 16 }
 0x131   : > { %v4038_v50 = vshll.u32 %v3969_v52, 16  ;;  %v4069_v17 = vrot.slane %v4067_v62, 4 }
 0x132   : > { %9482 = vmatmul.mubr.bf16.gmra.mrb[8].mxu0 %v8387_v8  ;;  %v4008_v8 = vshrl.u32 %v3965_v10, 16  ;;  %v10277_v10 = vld [vmem:[%s12311_s5 + $0x238] sm:$0xff]  }
 0x133   : > { %9502 = vmatpush3.bf16.msra.mxu0 %v10248_v44  ;;  %9485 = vmatprep.mubr.bf16.mxu0 %v8388_v1  ;;  %v8391_v44 = vcombine.low %v3458_v3, %v3467_v51  ;;  %v3970_v1 = vld [vmem:[#allocation2 + $0x58] sm:$0xf]  ;;  %v4076_v3 = vshll.u32 %v3974_v34, 16  ;;  %v4080_v51 = vshrl.u32 %v3974_v34, 16  ;;  %v3983_v34 = vld [vmem:[#allocation2 + $0xac] sm:$0xf] }
 0x134   : > { %9503 = vmatprep.subr.bf16.mxu0 %v10249_v31  ;;  %v4010_v7 = vrot.slane %v4008_v8, 4  ;;  %v4043_v43 = vshrl.u32 %v3970_v1, 16  ;;  %v4046_v58 = vshll.u32 %v3970_v1, 16  ;;  %v3977_v8 = vld [vmem:[#allocation2 + $0x84] sm:$0xf] }
 0x135   : > { %v4100_v1 = vshll.u32 %v3977_v8, 16 }
 0x136   : > { %v4048_v63 = vrot.slane %v4046_v58, 5  ;;  %v3978_v58 = vld [vmem:[#allocation2 + $0x88] sm:$0x1] }
 0x137   : > { %9504 = vmatpush3.bf16.msra.mxu0 %v10249_v31  ;;  %v4032_v31 = vshrl.u32 %v3968_v48, 16 }
 0x138   : > { %9505 = vmatprep.subr.bf16.mxu0 %v10250_v57 }
 0x139   : > { %v4034_v59 = vrot.slane %v4032_v31, 4 }
 0x13a   : > { %9486 = vmatmul.mubr.bf16.gmra.mrb[12].mxu0 %v8389_v39  ;;  %v4016_v39 = vrot.slane %v4014_v40, 5 }
 0x13b   : > { %9489 = vmatprep.mubr.bf16.mxu0 %v8390_v53  ;;  %9506 = vmatpush3.bf16.msra.mxu0 %v10250_v57  ;;  %v4011_v57 = vor.u32 %v4010_v7, %v11357_v21  ;;  %v4045_v53 = vrot.slane %v4043_v43, 4  ;;  %v4104_v7 = vshrl.u32 %v3977_v8, 16 }
 0x13c   : > { %9507 = vmatprep.subr.bf16.mxu0 %v10251_v20 }
 0x13f   : > { %9508 = vmatpush3.bf16.msra.mxu0 %v10251_v20  ;;  %v4070_v20 = vshll.u32 %v3973_v55, 16  ;;  %v4096_v55 = vrot.slane %v4094_v24, 5 }
 0x140   : > { %9529 = vmatprep.subr.bf16.mxu0 %v10254_v5 }
 0x141   : > { %v4072_v15 = vrot.slane %v4070_v20, 5  ;;  %v4110_v20 = vshll.u32 %v3978_v58, 16 }
 0x142   : > { %9490 = vmatmul.mubr.bf16.gmra.mrb[16].mxu0 %v8391_v44  ;;  %v4012_v44 = vrot.slane %v4011_v57, 4  ;;  %v3982_v57 = vld [vmem:[#allocation2 + $0xa8] sm:$0xf] }
 0x143   : > { %9509 = vmatprep.mubr.bf16.mxu0 %v8416_v9  ;;  %v4025_v9 = vor.u32 %v4024_v14, %v4021_v54  ;;  %v4073_v29 = vor.u32 %v4072_v15, %v4069_v17  ;;  %v4093_v54 = vrot.slane %v4091_v42, 4  ;;  %v11401_v14 = vrot.slane %v4100_v1, 5 }
 0x144   : > { %v4017_v36 = vsel %vm10716_vm5, %v4012_v44, %v4016_v39  ;;  %v4112_v15 = vrot.slane %v4110_v20, 5 }
 0x145   : > { %v4026_v35 = vrot.slane %v4025_v9, 4 }
 0x147   : > { %v4031_v41 = vsel %vm10716_vm5, %v4026_v35, %v11367_v30 }
 0x14a   : > { %9510 = vmatmul.mubr.bf16.vlgmr.msra.gmra.mrb[0].mxu0 %v8417_v11  ;;  %v4035_v11 = vor.u32 %v4034_v59, %v11367_v30 }
 0x14b   : > { %9530 = vmatpush3.bf16.msra.mxu0 %v10254_v5  ;;  %9513 = vmatprep.mubr.bf16.mxu0 %v8418_v12  ;;  %v4002_v5 = vrot.slane %v4001_v49, 4  ;;  %v8423_v12 = vcombine.low %v11270_v18, %v11272_v23  ;;  %v11384_v18 = vrot.slane %v4076_v3, 5  ;;  %v4082_v23 = vrot.slane %v4080_v51, 4 }
 0x14c   : > { %9531 = vmatprep.subr.bf16.mxu0 %v10255_v46  ;;  %v4036_v48 = vrot.slane %v4035_v11, 4  ;;  %v4148_v3 = vshll.u32 %v3983_v34, 16  ;;  %v4152_v51 = vshrl.u32 %v3983_v34, 16 }
 0x14d   : > { %v4007_v0 = vsel %vm10716_vm5, %v4002_v5, %v11357_v21  ;;  %v4083_v21 = vor.u32 %v4082_v23, %v11384_v18  ;;  %v4097_v5 = vor.u32 %v4096_v55, %v4093_v54 }
 0x14e   : > { %v8450_v40 = vcombine.low %v4007_v0, %v4017_v36  ;;  %v11416_v23 = vrot.slane %v4148_v3, 5  ;;  %v4154_v8 = vrot.slane %v4152_v51, 4  ;;  %v3985_v0 = vld [vmem:[#allocation2 + $0xbc] sm:$0xf]  ;;  %v3990_v51 = vld [vmem:[#allocation2 + $0xd8] sm:$0x1] }
 0x14f   : > { %9532 = vmatpush3.bf16.msra.mxu0 %v10255_v46  ;;  %v11375_v46 = vrot.slane %v4052_v38, 5  ;;  %v4074_v38 = vrot.slane %v4073_v29, 4  ;;  %v4098_v36 = vrot.slane %v4097_v5, 4  ;;  %v4163_v1 = vshrl.u32 %v3985_v0, 16 }
 0x150   : > { %9533 = vmatprep.subr.bf16.mxu0 %v10260_v26  ;;  %v4155_v29 = vor.u32 %v4154_v8, %v11416_v23 }
 0x152   : > { %9514 = vmatmul.mubr.bf16.gmra.mrb[4].mxu0 %v8419_v61  ;;  %v11382_v61 = vrot.slane %v4038_v50, 5 }
 0x153   : > { %9534 = vmatpush3.bf16.msra.mxu0 %v10260_v26  ;;  %9517 = vmatprep.mubr.bf16.mxu0 %v8420_v4  ;;  %v4058_v26 = vrot.slane %v4056_v60, 4  ;;  %v3972_v4 = vld [vmem:[#allocation2 + $0x60] sm:$0x1]  ;;  %v4084_v60 = vrot.slane %v4083_v21, 4  ;;  %v4166_v21 = vshll.u32 %v3985_v0, 16 }
 0x154   : > { %9535 = vmatprep.subr.bf16.mxu0 %v10263_v19  ;;  %v4062_v56 = vshll.u32 %v3972_v4, 16  ;;  %v4041_v43 = vsel %vm10716_vm5, %v4036_v48, %v11382_v61  ;;  %v3984_v4 = vld [vmem:[#allocation2 + $0xb0] sm:$0x1] }
 0x155   : > { %v4059_v16 = vor.u32 %v4058_v26, %v11375_v46  ;;  %v4158_v24 = vshll.u32 %v3984_v4, 16  ;;  %v4168_v34 = vrot.slane %v4166_v21, 5  ;;  %v4206_v4 = vshll.u32 %v3990_v51, 16 }
 0x156   : > { %v4064_v52 = vrot.slane %v4062_v56, 5 }
 0x157   : > { %9536 = vmatpush3.bf16.msra.mxu0 %v10263_v19  ;;  %v4049_v19 = vor.u32 %v4048_v63, %v4045_v53  ;;  %v4060_v49 = vrot.slane %v4059_v16, 4  ;;  %v4139_v63 = vshrl.u32 %v3982_v57, 16 }
 0x158   : > { %9537 = vmatprep.subr.bf16.mxu0 %v10266_v45 }
 0x159   : > { %v4050_v13 = vrot.slane %v4049_v19, 4  ;;  %v4065_v62 = vsel %vm10716_vm5, %v4060_v49, %v4064_v52  ;;  %v4141_v19 = vrot.slane %v4139_v63, 4 }
 0x15a   : > { %9518 = vmatmul.mubr.bf16.gmra.mrb[8].mxu0 %v8421_v37  ;;  %v3979_v37 = vld [vmem:[#allocation2 + $0x94] sm:$0xf] }
 0x15b   : > { %9538 = vmatpush3.bf16.msra.mxu0 %v10266_v45  ;;  %9521 = vmatprep.mubr.bf16.mxu0 %v8422_v27  ;;  %v3975_v45 = vld [vmem:[#allocation2 + $0x74] sm:$0x1]  ;;  %v8425_v27 = vcombine.low %v11301_v6, %v11305_v25  ;;  %v4106_v6 = vrot.slane %v4104_v7, 4  ;;  %v4115_v25 = vshrl.u32 %v3979_v37, 16  ;;  %v4118_v59 = vshll.u32 %v3979_v37, 16 }
 0x15c   : > { %9539 = vmatprep.subr.bf16.mxu0 %v10270_v47  ;;  %v4086_v31 = vshll.u32 %v3975_v45, 16  ;;  %v4055_v30 = vsel %vm10716_vm5, %v4050_v13, %v11375_v46  ;;  %v4079_v46 = vsel %vm10716_vm5, %v4074_v38, %v11384_v18  ;;  %v3986_v45 = vld [vmem:[#allocation2 + $0xc0] sm:$0xf]  ;;  %v3988_v7 = vld [vmem:[#allocation2 + $0xd0] sm:$0xf] }
 0x15d   : > { %v4107_v44 = vor.u32 %v4106_v6, %v11401_v14  ;;  %v4117_v9 = vrot.slane %v4115_v25, 4  ;;  %v4120_v11 = vrot.slane %v4118_v59, 5  ;;  %v8452_v17 = vcombine.low %v4055_v30, %v4065_v62  ;;  %v3989_v13 = vld [vmem:[#allocation2 + $0xd4] sm:$0xf]  ;;  %v3987_v59 = vld [vmem:[#allocation2 + $0xc4] sm:$0x1] }
 0x15e   : > { %v4088_v39 = vrot.slane %v4086_v31, 5  ;;  %v4172_v31 = vshll.u32 %v3986_v45, 16  ;;  %v4176_v37 = vshrl.u32 %v3986_v45, 16  ;;  %v4187_v58 = vshrl.u32 %v3988_v7, 16 }
 0x15f   : > { %9540 = vmatpush3.bf16.msra.mxu0 %v10270_v47  ;;  %v3980_v47 = vld [vmem:[#allocation2 + $0x98] sm:$0xf]  ;;  %v4108_v35 = vrot.slane %v4107_v44, 4  ;;  %v4121_v48 = vor.u32 %v4120_v11, %v4117_v9  ;;  %v4196_v49 = vshll.u32 %v3989_v13, 16  ;;  %v4200_v52 = vshrl.u32 %v3989_v13, 16 }
 0x160   : > { %9541 = vmatprep.subr.bf16.mxu0 %v10273_v2  ;;  %v4124_v50 = vshll.u32 %v3980_v47, 16  ;;  %v4128_v53 = vshrl.u32 %v3980_v47, 16  ;;  %v4089_v26 = vsel %vm10716_vm5, %v4084_v60, %v4088_v39  ;;  %v4190_v47 = vshll.u32 %v3988_v7, 16 }
 0x161   : > { %v8453_v16 = vcombine.low %v4079_v46, %v4089_v26  ;;  %v4165_v6 = vrot.slane %v4163_v1, 4  ;;  %v4156_v25 = vrot.slane %v4155_v29, 4  ;;  %v4174_v30 = vrot.slane %v4172_v31, 5 }
 0x162   : > { %9522 = vmatmul.mubr.bf16.gmra.mrb[12].mxu0 %v8423_v12  ;;  %v8451_v12 = vcombine.low %v4031_v41, %v4041_v43  ;;  %v4130_v61 = vrot.slane %v4128_v53, 4  ;;  %v4122_v41 = vrot.slane %v4121_v48, 4  ;;  %v4178_v38 = vrot.slane %v4176_v37, 4 }
 0x163   : > { %9525 = vmatprep.mubr.bf16.mxu0 %v8424_v32  ;;  %9542 = vmatpush3.bf16.msra.mxu0 %v10273_v2  ;;  %v4142_v2 = vshll.u32 %v3982_v57, 16  ;;  %v3981_v32 = vld [vmem:[#allocation2 + $0x9c] sm:$0x1]  ;;  %v4160_v57 = vrot.slane %v4158_v24, 5  ;;  %v4189_v39 = vrot.slane %v4187_v58, 4  ;;  %v4198_v53 = vrot.slane %v4196_v49, 5 }
 0x164   : > { %9543 = vmatprep.subr.bf16.mxu0 %v10277_v10  ;;  %v4134_v18 = vshll.u32 %v3981_v32, 16  ;;  %v4202_v63 = vrot.slane %v4200_v52, 4  ;;  %v4182_v3 = vshll.u32 %v3987_v59, 16  ;;  %v4169_v9 = vor.u32 %v4168_v34, %v4165_v6 }
 0x165   : > { %v4144_v22 = vrot.slane %v4142_v2, 5  ;;  %v3992_v2 = vld [vmem:[#allocation2 + $0xe8] sm:$0xf]  ;;  %v4161_v44 = vsel %vm10716_vm5, %v4156_v25, %v4160_v57  ;;  %v4179_v11 = vor.u32 %v4178_v38, %v4174_v30  ;;  %v4208_v45 = vrot.slane %v4206_v4, 5 }
 0x166   : > { %v4136_v43 = vrot.slane %v4134_v18, 5  ;;  %v4220_v26 = vshll.u32 %v3992_v2, 16  ;;  %v4224_v32 = vshrl.u32 %v3992_v2, 16  ;;  %v4184_v8 = vrot.slane %v4182_v3, 5  ;;  %v11468_v3 = vld [vmem:[%s12312_s6] ss:$0 sm:$0xff] }
 0x167   : > { %9544 = vmatpush3.bf16.msra.mxu0 %v10277_v10  ;;  %v11414_v10 = vrot.slane %v4124_v50, 5  ;;  %v4145_v42 = vor.u32 %v4144_v22, %v4141_v19  ;;  %v4192_v50 = vrot.slane %v4190_v47, 5 }
 0x169   : > { %v4131_v56 = vor.u32 %v4130_v61, %v11414_v10  ;;  %v4146_v55 = vrot.slane %v4145_v42, 4  ;;  %v4127_v62 = vsel %vm10716_vm5, %v4122_v41, %v11414_v10  ;;  %v4193_v10 = vor.u32 %v4192_v50, %v4189_v39 }
 0x16a   : > { %9526 = vmatmul.mubr.bf16.gmra.mrb[16].mxu0 %v8425_v27  ;;  %v4103_v27 = vsel %vm10716_vm5, %v4098_v36, %v11401_v14  ;;  %v3991_v14 = vld [vmem:[#allocation2 + $0xe4] sm:$0xf]  ;;  %v4203_v61 = vor.u32 %v4202_v63, %v4198_v53  ;;  %v4222_v36 = vrot.slane %v4220_v26, 5 }
 0x16b   : > { %9545 = vmatprep.mubr.bf16.mxu0 %v8450_v40  ;;  %v4113_v40 = vsel %vm10716_vm5, %v4108_v35, %v4112_v15  ;;  %v4132_v54 = vrot.slane %v4131_v56, 4  ;;  %v4151_v5 = vsel %vm10716_vm5, %v4146_v55, %v11416_v23  ;;  %v4214_v46 = vshll.u32 %v3991_v14, 16 }
 0x16c   : > { %v8454_v60 = vcombine.low %v4103_v27, %v4113_v40  ;;  %v8456_v22 = vcombine.low %v4151_v5, %v4161_v44  ;;  %v4180_v15 = vrot.slane %v4179_v11, 4  ;;  %v4226_v35 = vrot.slane %v4224_v32, 4 }
 0x16d   : > { %v4137_v20 = vsel %vm10716_vm5, %v4132_v54, %v4136_v43  ;;  %v4216_v23 = vrot.slane %v4214_v46, 5  ;;  %v4194_v48 = vrot.slane %v4193_v10, 4  ;;  %v4204_v18 = vrot.slane %v4203_v61, 4 }
 0x16e   : > { %v8455_v19 = vcombine.low %v4127_v62, %v4137_v20  ;;  %v4185_v42 = vsel %vm10716_vm5, %v4180_v15, %v4184_v8  ;;  %v4227_v1 = vor.u32 %v4226_v35, %v4222_v36 }
 0x16f   : > { %v4199_v13 = vsel %vm10716_vm5, %v4194_v48, %v4198_v53  ;;  %v4209_v29 = vsel %vm10716_vm5, %v4204_v18, %v4208_v45 }
 0x170   : > { %v8458_v31 = vcombine.low %v4199_v13, %v4209_v29  ;;  %v4228_v27 = vrot.slane %v4227_v1, 4 }
 0x172   : > { %9546 = vmatmul.mubr.bf16.vlgmr.msra.gmra.mrb[0].mxu0 %v8451_v12  ;;  %v4211_v12 = vshrl.u32 %v3991_v14, 16 }
 0x173   : > { %9549 = vmatprep.mubr.bf16.mxu0 %v8452_v17  ;;  %v4170_v17 = vrot.slane %v4169_v9, 4 }
 0x174   : > { %v4213_v0 = vrot.slane %v4211_v12, 4 }
 0x175   : > { %v4175_v56 = vsel %vm10716_vm5, %v4170_v17, %v4174_v30 }
 0x176   : > { %v4217_v24 = vor.u32 %v4216_v23, %v4213_v0  ;;  %v8457_v21 = vcombine.low %v4175_v56, %v4185_v42 }
 0x178   : > { %v4218_v37 = vrot.slane %v4217_v24, 4 }
 0x17a   : > { %9550 = vmatmul.mubr.bf16.gmra.mrb[4].mxu0 %v8453_v16  ;;  %v3993_v16 = vld [vmem:[#allocation2 + $0xec] sm:$0x1]  ;;  %v4223_v41 = vsel %vm10716_vm5, %v4218_v37, %v4222_v36 }
 0x17b   : > { %9553 = vmatprep.mubr.bf16.mxu0 %v8454_v60  ;;  %v4230_v7 = vshll.u32 %v3993_v16, 16 }
 0x17d   : > { %v4232_v40 = vrot.slane %v4230_v7, 5 }
 0x17f   : > { %v4233_v43 = vsel %vm10716_vm5, %v4228_v27, %v4232_v40 }
 0x180   : > { %v8459_v58 = vcombine.low %v4223_v41, %v4233_v43 }
 0x182   : > { %9554 = vmatmul.mubr.bf16.gmra.mrb[8].mxu0 %v8455_v19 }
 0x183   : > { %9557 = vmatprep.mubr.bf16.mxu0 %v8456_v22 }
 0x18a   : > { %9558 = vmatmul.mubr.bf16.gmra.mrb[12].mxu0 %v8457_v21 }
 0x18b   : > { %9561 = vmatprep.mubr.bf16.mxu0 %v8458_v31 }
 0x192   : > { %9562 = vmatmul.mubr.bf16.gmra.mrb[16].mxu0 %v8459_v58 }
 0x1cc   : > { %v9259_v47 = vpop.f32.mrb[0].mxu1 }
 0x1cd   : > { %v1173_v49 = vpop.f32.mrb[1].mxu1 }
 0x1ce   : > { %v9260_v52 = vpop.f32.mrb[2].mxu1 }
 0x1cf   : > { %v1176_v54 = vpop.f32.mrb[3].mxu1 }
 0x1d5   : > { %v9263_v55 = vpop.f32.mrb[4].mxu1 }
 0x1d6   : > { %v1189_v57 = vpop.f32.mrb[5].mxu1 }
 0x1d7   : > { %v9264_v6 = vpop.f32.mrb[6].mxu1 }
 0x1d8   : > { %v1192_v25 = vpop.f32.mrb[7].mxu1 }
 0x1dd   : > { %v9267_v59 = vpop.f32.mrb[8].mxu1 }
 0x1de   : > { %v1205_v34 = vpop.f32.mrb[9].mxu1 }
 0x1df   : > { %v9268_v30 = vpop.f32.mrb[10].mxu1 }
 0x1e0   : > { %v11447_v38 = vpop.f32.mrb[11].mxu1 }
 0x1f1   : > { %v11449_v60 = vpop.f32.mrb[12].mxu1 }
 0x1f2   : > { %v11451_v14 = vpop.f32.mrb[13].mxu1 }
 0x1f3   : > { %v11453_v39 = vpop.f32.mrb[14].mxu1 }
 0x1f4   : > { %v11455_v50 = vpop.f32.mrb[15].mxu1 }
 0x1f9   : > { %v11457_v53 = vpop.f32.mrb[16].mxu1 }
 0x1fa   : > { %v11459_v63 = vpop.f32.mrb[17].mxu1 }
 0x1fb   : > { %v11461_v2 = vpop.f32.mrb[18].mxu1 }
 0x1fc   : > { %v11463_v62 = vpop.f32.mrb[19].mxu1 }
 0x245   : > { %v9547_v20 = vpop.f32.mrb[0].mxu0 }
 0x246   : > { %v9853_v51 = vadd.f32 %v9547_v20, %v9259_v47  ;;  %v4373_v5 = vpop.f32.mrb[1].mxu0 }
 0x247   : > { %v9854_v44 = vadd.f32 %v4373_v5, %v1173_v49  ;;  %v9548_v9 = vpop.f32.mrb[2].mxu0 }
 0x248   : > { %v4481_v11 = vadd.f32 %v9853_v51, %v11468_v3  ;;  %v9855_v12 = vadd.f32 %v9548_v9, %v9260_v52  ;;  %v4376_v46 = vpop.f32.mrb[3].mxu0 }
 0x249   : > { %v4479_v26 = vadd.f32 %v9854_v44, %v11468_v3  ;;  %v9856_v32 = vadd.f32 %v4376_v46, %v1176_v54 }
 0x24a   : > { %v4501_v10 = vmax.f32 %v4481_v11, 0.0  ;;  %v4482_v61 = vadd.f32 %v9855_v12, %v11468_v3 }
 0x24b   : > { %v4480_v4 = vadd.f32 %v9856_v32, %v11468_v3  ;;  %v4499_v17 = vmax.f32 %v4479_v26, 0.0 }
 0x24c   : > { %v8824_v19 = vpack.c.bf16 %v4501_v10, %v4501_v10  ;;  %v4502_v22 = vmax.f32 %v4482_v61, 0.0 }
 0x24d   : > { %v4500_v15 = vmax.f32 %v4480_v4, 0.0  ;;  %v9551_v8 = vpop.f32.mrb[4].mxu0 }
 0x24e   : > { %4601 = vst [vmem:[#allocation3 + $0x1c] sm:$0xf] %v8824_v19  ;;  %v8825_v0 = vpack.c.bf16 %v4502_v22, %v4502_v22  ;;  %v9857_v23 = vadd.f32 %v9551_v8, %v9263_v55  ;;  %v4389_v36 = vpop.f32.mrb[5].mxu0 }
 0x24f   : > { %v8861_v35 = vpack.c.bf16 %v4500_v15, %v4499_v17  ;;  %v9858_v48 = vadd.f32 %v4389_v36, %v1189_v57  ;;  %v9552_v18 = vpop.f32.mrb[6].mxu0 }
 0x250   : > { %4602 = vst [vmem:[#allocation3 + $0x20] sm:$0xf] %v8825_v0  ;;  %v4485_v45 = vadd.f32 %v9857_v23, %v11468_v3  ;;  %v9859_v16 = vadd.f32 %v9552_v18, %v9264_v6  ;;  %v4392_v56 = vpop.f32.mrb[7].mxu0 }
 0x251   : > { %8923 = vst [vmem:[#allocation3 + $0x8] sm:$0xff] %v8861_v35   ;;  %v4483_v42 = vadd.f32 %v9858_v48, %v11468_v3  ;;  %v9860_v24 = vadd.f32 %v4392_v56, %v1192_v25 }
 0x252   : > { %v4505_v1 = vmax.f32 %v4485_v45, 0.0  ;;  %v4486_v7 = vadd.f32 %v9859_v16, %v11468_v3 }
 0x253   : > { %v4484_v13 = vadd.f32 %v9860_v24, %v11468_v3  ;;  %v4503_v31 = vmax.f32 %v4483_v42, 0.0 }
 0x254   : > { %v8828_v29 = vpack.c.bf16 %v4505_v1, %v4505_v1  ;;  %v4506_v21 = vmax.f32 %v4486_v7, 0.0 }
 0x255   : > { %v4504_v37 = vmax.f32 %v4484_v13, 0.0  ;;  %v9555_v27 = vpop.f32.mrb[8].mxu0 }
 0x256   : > { %4605 = vst [vmem:[#allocation3 + $0x44] sm:$0xf] %v8828_v29  ;;  %v8829_v40 = vpack.c.bf16 %v4506_v21, %v4506_v21  ;;  %v9861_v41 = vadd.f32 %v9555_v27, %v9267_v59  ;;  %v4405_v43 = vpop.f32.mrb[9].mxu0 }
 0x257   : > { %v8866_v58 = vpack.c.bf16 %v4504_v37, %v4503_v31  ;;  %v9862_v47 = vadd.f32 %v4405_v43, %v1205_v34  ;;  %v9556_v49 = vpop.f32.mrb[10].mxu0 }
 0x258   : > { %4606 = vst [vmem:[#allocation3 + $0x48] sm:$0xf] %v8829_v40  ;;  %v4489_v52 = vadd.f32 %v9861_v41, %v11468_v3  ;;  %v9863_v54 = vadd.f32 %v9556_v49, %v9268_v30  ;;  %v4408_v55 = vpop.f32.mrb[11].mxu0 }
 0x259   : > { %8924 = vst [vmem:[#allocation3 + $0x30] sm:$0xff] %v8866_v58   ;;  %v4487_v57 = vadd.f32 %v9862_v47, %v11468_v3  ;;  %v9864_v6 = vadd.f32 %v4408_v55, %v11447_v38 }
 0x25a   : > { %v4509_v25 = vmax.f32 %v4489_v52, 0.0  ;;  %v4490_v20 = vadd.f32 %v9863_v54, %v11468_v3 }
 0x25b   : > { %v4488_v51 = vadd.f32 %v9864_v6, %v11468_v3  ;;  %v4507_v44 = vmax.f32 %v4487_v57, 0.0 }
 0x25c   : > { %v8832_v59 = vpack.c.bf16 %v4509_v25, %v4509_v25  ;;  %v4510_v5 = vmax.f32 %v4490_v20, 0.0 }
 0x25d   : > { %v4508_v34 = vmax.f32 %v4488_v51, 0.0  ;;  %v9559_v9 = vpop.f32.mrb[12].mxu0 }
 0x25e   : > { %4609 = vst [vmem:[#allocation3 + $0x6c] sm:$0xf] %v8832_v59  ;;  %v8833_v11 = vpack.c.bf16 %v4510_v5, %v4510_v5  ;;  %v9865_v30 = vadd.f32 %v9559_v9, %v11449_v60  ;;  %v4421_v12 = vpop.f32.mrb[13].mxu0 }
 0x25f   : > { %v8871_v46 = vpack.c.bf16 %v4508_v34, %v4507_v44  ;;  %v9866_v26 = vadd.f32 %v4421_v12, %v11451_v14  ;;  %v9560_v32 = vpop.f32.mrb[14].mxu0 }
 0x260   : > { %4610 = vst [vmem:[#allocation3 + $0x70] sm:$0xf] %v8833_v11  ;;  %v4493_v38 = vadd.f32 %v9865_v30, %v11468_v3  ;;  %v9867_v10 = vadd.f32 %v9560_v32, %v11453_v39  ;;  %v4424_v61 = vpop.f32.mrb[15].mxu0 }
 0x261   : > { %8925 = vst [vmem:[#allocation3 + $0x58] sm:$0xff] %v8871_v46   ;;  %v4491_v4 = vadd.f32 %v9866_v26, %v11468_v3  ;;  %v9868_v19 = vadd.f32 %v4424_v61, %v11455_v50 }
 0x262   : > { %v4513_v22 = vmax.f32 %v4493_v38, 0.0  ;;  %v4494_v17 = vadd.f32 %v9867_v10, %v11468_v3 }
 0x263   : > { %v4492_v60 = vadd.f32 %v9868_v19, %v11468_v3  ;;  %v4511_v14 = vmax.f32 %v4491_v4, 0.0 }
 0x264   : > { %v8836_v15 = vpack.c.bf16 %v4513_v22, %v4513_v22  ;;  %v4514_v8 = vmax.f32 %v4494_v17, 0.0 }
 0x265   : > { %v4512_v0 = vmax.f32 %v4492_v60, 0.0  ;;  %v9563_v23 = vpop.f32.mrb[16].mxu0 }
 0x266   : > { %4613 = vst [vmem:[#allocation3 + $0x94] sm:$0xf] %v8836_v15  ;;  %v8837_v36 = vpack.c.bf16 %v4514_v8, %v4514_v8  ;;  %v9869_v39 = vadd.f32 %v9563_v23, %v11457_v53  ;;  %v4437_v35 = vpop.f32.mrb[17].mxu0 }
 0x267   : > { %v8876_v48 = vpack.c.bf16 %v4512_v0, %v4511_v14  ;;  %v9870_v18 = vadd.f32 %v4437_v35, %v11459_v63  ;;  %v9564_v45 = vpop.f32.mrb[18].mxu0 }
 0x268   : > { %4614 = vst [vmem:[#allocation3 + $0x98] sm:$0xf] %v8837_v36  ;;  %v4497_v50 = vadd.f32 %v9869_v39, %v11468_v3  ;;  %v9871_v16 = vadd.f32 %v9564_v45, %v11461_v2  ;;  %v4440_v56 = vpop.f32.mrb[19].mxu0  ;;  %v10447_v2 = vmov (!%p8146_p13), 0  }
 0x269   : > { %8926 = vst [vmem:[#allocation3 + $0x80] sm:$0xff] %v8876_v48   ;;  %v4495_v42 = vadd.f32 %v9870_v18, %v11468_v3  ;;  %v9872_v24 = vadd.f32 %v4440_v56, %v11463_v62  ;;  %4622 = vst [vmem:[#allocation3 + $0x8] sm:$0xf] (!%p8146_p13), %v10447_v2 }
 0x26a   : > { %v4517_v1 = vmax.f32 %v4497_v50, 0.0  ;;  %v4498_v7 = vadd.f32 %v9871_v16, %v11468_v3  ;;  %4623 = vst [vmem:[#allocation3 + $0xc] sm:$0xf] (!%p8146_p13), %v10447_v2 }
 0x26b   : > { %v4496_v53 = vadd.f32 %v9872_v24, %v11468_v3  ;;  %v4515_v63 = vmax.f32 %v4495_v42, 0.0  ;;  %4621 = sbr.rel (%p8146_p13) target bundleno = 626 (0x272), region = 68 }
 0x26c   : > { %v8840_v13 = vpack.c.bf16 %v4517_v1, %v4517_v1  ;;  %v4518_v29 = vmax.f32 %v4498_v7, 0.0 }
 0x26d   : > { %v4516_v21 = vmax.f32 %v4496_v53, 0.0 }
 0x26e   : > { %4617 = vst [vmem:[#allocation3 + $0xbc] sm:$0xf] %v8840_v13  ;;  %v8841_v31 = vpack.c.bf16 %v4518_v29, %v4518_v29 }
 0x26f   : > { %v8881_v37 = vpack.c.bf16 %v4516_v21, %v4515_v63 }
 0x270   : > { %4618 = vst [vmem:[#allocation3 + $0xc0] sm:$0xf] %v8841_v31 }
 0x271   : > { %8927 = vst [vmem:[#allocation3 + $0xa8] sm:$0xff] %v8881_v37  }
 0x272 PF: > { %4626 = sbr.rel (%p8147_p0) target bundleno = 633 (0x279), region = 72  ;;  %v10448_v62 = vmov (!%p8147_p0), 0  }
 0x273   : > { %4628 = vst [vmem:[#allocation3 + $0xbc] sm:$0xf] (!%p8147_p0), %v10448_v62  ;;  %4629 = vst [vmem:[#allocation3 + $0xc0] sm:$0xf] (!%p8147_p0), %v10448_v62 }
 0x279 PF: > { %v10308_v3 = vld [vmem:[%s12313_s7 + $0x40] sm:$0xff]   ;;  %v10309_v27 = vld [vmem:[%s12313_s7 + $0x48] sm:$0xff]   ;;  %v10310_v40 = vld [vmem:[%s12313_s7 + $0x50] sm:$0xff]  }
 0x27a   : > { %9565 = vmatprep.subr.bf16.mxu1 %v10308_v3  ;;  %v10311_v41 = vld [vmem:[%s12313_s7 + $0x58] sm:$0xff]   ;;  %v10312_v49 = vld [vmem:[%s12313_s7 + $0x60] sm:$0xff]   ;;  %v10313_v52 = vld [vmem:[%s12313_s7 + $0x68] sm:$0xff]  }
 0x27b   : > { %9566 = vmatpush3.bf16.msra.mxu1 %v10308_v3  ;;  %v11515_v43 = vld [vmem:[#allocation3 + $0x8] sm:$0xf]  ;;  %v11517_v58 = vld [vmem:[#allocation3 + $0xc] sm:$0xf]  ;;  %v10314_v54 = vld [vmem:[%s12313_s7 + $0x70] sm:$0xff]  }
 0x27c   : > { %9567 = vmatprep.subr.bf16.mxu1 %v10309_v27  ;;  %v8515_v47 = vcombine.low %v11515_v43, %v11517_v58  ;;  %v10315_v55 = vld [vmem:[%s12313_s7 + $0x78] sm:$0xff]   ;;  %v4634_v57 = vld [vmem:[#allocation3 + $0x1c] sm:$0xf]  ;;  %v4635_v6 = vld [vmem:[#allocation3 + $0x20] sm:$0xf]  ;;  %v4660_v34 = vshrl.u32 %v11515_v43, 16 }
 0x27d   : > { %v10318_v25 = vld [vmem:[%s12313_s7] sm:$0xff]   ;;  %v8516_v59 = vcombine.low %v4634_v57, %v4635_v6  ;;  %v10319_v44 = vld [vmem:[%s12313_s7 + $0x8] sm:$0xff]   ;;  %v4669_v9 = vshrl.u32 %v11517_v58, 16  ;;  %v4682_v30 = vshrl.u32 %v4634_v57, 16  ;;  %v11547_v12 = vld [vmem:[#allocation3 + $0x44] sm:$0xf] }
 0x27e   : > { %9581 = vmatprep.mubr.bf16.mxu1 %v8515_v47  ;;  %v11536_v20 = vld [vmem:[#allocation3 + $0x30] sm:$0xf]  ;;  %v11538_v51 = vld [vmem:[#allocation3 + $0x34] sm:$0xf]  ;;  %v4633_v11 = vld [vmem:[#allocation3 + $0x18] sm:$0x8] }
 0x27f   : > { %9568 = vmatpush3.bf16.msra.mxu1 %v10309_v27  ;;  %v8517_v5 = vcombine.low %v11536_v20, %v11538_v51  ;;  %v10322_v46 = vld [vmem:[%s12313_s7 + $0x10] sm:$0xff]   ;;  %v11552_v26 = vld [vmem:[#allocation3 + $0x48] sm:$0xf]  ;;  %v11554_v32 = vld [vmem:[#allocation3 + $0x58] sm:$0xf]  ;;  %v4691_v10 = vshrl.u32 %v4635_v6, 16 }
 0x280   : > { %9569 = vmatprep.subr.bf16.mxu1 %v10310_v40  ;;  %v11556_v38 = vld [vmem:[#allocation3 + $0x5c] sm:$0xf]  ;;  %v4677_v61 = vshrl.u32 %v4633_v11, 16  ;;  %v11558_v4 = vrot.slane %v4682_v30, 7  ;;  %v8518_v19 = vcombine.low %v11547_v12, %v11552_v26  ;;  %v4663_v22 = vshll.u32 %v11515_v43, 16  ;;  %v10323_v0 = vld [vmem:[%s12313_s7 + $0x18] sm:$0xff]  }
 0x281   : > { %v4672_v17 = vshll.u32 %v11517_v58, 16  ;;  %v8519_v60 = vcombine.low %v11554_v32, %v11556_v38  ;;  %v11566_v15 = vrot.slane %v4660_v34, 7  ;;  %v4671_v8 = vrot.slane %v4669_v9, 7  ;;  %v4630_v39 = vld [vmem:[#allocation3 + $0x4] sm:$0x8]  ;;  %v10326_v7 = vld [vmem:[%s12313_s7 + $0x20] sm:$0xff]  }
 0x282   : > { %v4685_v14 = vshll.u32 %v4634_v57, 16  ;;  %v4693_v23 = vrot.slane %v4691_v10, 7  ;;  %v4694_v36 = vshll.u32 %v4635_v6, 16  ;;  %v11571_v35 = vrot.slane %v4677_v61, 11  ;;  %v11575_v45 = vld [vmem:[#allocation3 + $0x6c] sm:$0xf] }
 0x283   : > { %9570 = vmatpush3.bf16.msra.mxu1 %v10310_v40  ;;  %v4689_v48 = vrot.slane %v11558_v4, 4  ;;  %v4704_v18 = vshrl.u32 %v11536_v20, 16  ;;  %v11577_v50 = vld [vmem:[#allocation3 + $0x70] sm:$0xf]  ;;  %v11579_v16 = vld [vmem:[#allocation3 + $0x80] sm:$0xf]  ;;  %v4665_v42 = vor.u32 %v4663_v22, %v11566_v15  ;;  %v4674_v24 = vor.u32 %v4672_v17, %v4671_v8 }
 0x284   : > { %9571 = vmatprep.subr.bf16.mxu1 %v10311_v41  ;;  %v11581_v56 = vld [vmem:[#allocation3 + $0x84] sm:$0xf]  ;;  %v11585_v1 = vor.u32 %v4685_v14, %v11558_v4  ;;  %v4655_v53 = vshrl.u32 %v4630_v39, 16  ;;  %v4696_v13 = vor.u32 %v4694_v36, %v4693_v23  ;;  %v4707_v29 = vshll.u32 %v11536_v20, 16  ;;  %v4636_v43 = vld [vmem:[#allocation3 + $0x2c] sm:$0x8] }
 0x285   : > { %v4713_v63 = vshrl.u32 %v11538_v51, 16  ;;  %v4716_v21 = vshll.u32 %v11538_v51, 16  ;;  %v4726_v31 = vshrl.u32 %v11547_v12, 16  ;;  %v4729_v37 = vshll.u32 %v11547_v12, 16  ;;  %v11611_v6 = vld [vmem:[#allocation3 + $0x94] sm:$0xf] }
 0x286   : > { %v4735_v2 = vshrl.u32 %v11552_v26, 16  ;;  %v8520_v62 = vcombine.low %v11575_v45, %v11577_v50  ;;  %v4738_v3 = vshll.u32 %v11552_v26, 16  ;;  %v4748_v27 = vshrl.u32 %v11554_v32, 16  ;;  %v4642_v12 = vld [vmem:[#allocation3 + $0x54] sm:$0x8]  ;;  %v10330_v10 = vld [vmem:[%s12313_s7 + $0x30] sm:$0xff]  }
 0x287   : > { %9572 = vmatpush3.bf16.msra.mxu1 %v10311_v41  ;;  %v4751_v40 = vshll.u32 %v11554_v32, 16  ;;  %v8521_v41 = vcombine.low %v11579_v16, %v11581_v56  ;;  %v4757_v58 = vshrl.u32 %v11556_v38, 16  ;;  %v4760_v47 = vshll.u32 %v11556_v38, 16  ;;  %v10390_v33 = vld [vmem:[%s12313_s7 + $0x200] sm:$0xff]  }
 0x288   : > { %9573 = vmatprep.subr.bf16.mxu1 %v10312_v49  ;;  %v4773_v57 = vshll.u32 %v11575_v45, 16  ;;  %v4715_v20 = vrot.slane %v4713_v63, 7  ;;  %v4779_v51 = vshrl.u32 %v11577_v50, 16  ;;  %v4688_v34 = vsel %vm10616_vm2, %v11571_v35, %v11585_v1 }
 0x289   : > { %v4697_v9 = vsel %vm10616_vm2, %v4689_v48, %v4696_v13  ;;  %v4782_v11 = vshll.u32 %v11577_v50, 16  ;;  %v4792_v30 = vshrl.u32 %v11579_v16, 16  ;;  %v4743_v23 = vshrl.u32 %v4642_v12, 16 }
 0x28a   : > { %v4801_v36 = vshrl.u32 %v11581_v56, 16  ;;  %v4804_v39 = vshll.u32 %v11581_v56, 16  ;;  %v4750_v48 = vrot.slane %v4748_v27, 7  ;;  %v4781_v32 = vrot.slane %v4779_v51, 7  ;;  %v10333_v51 = vld [vmem:[%s12313_s7 + $0x88] sm:$0xff]  }
 0x28b   : > { %9574 = vmatpush3.bf16.msra.mxu1 %v10312_v49  ;;  %v10327_v49 = vld [vmem:[%s12313_s7 + $0x28] sm:$0xff]   ;;  %v8495_v27 = vrot.slane %v4743_v23, 11 }
 0x28c   : > { %9575 = vmatprep.subr.bf16.mxu1 %v10313_v52 }
 0x28f   : > { %9576 = vmatpush3.bf16.msra.mxu1 %v10313_v52  ;;  %v8491_v52 = vrot.slane %v4655_v53, 11  ;;  %v4759_v53 = vrot.slane %v4757_v58, 7  ;;  %v5233_v58 = vld [vmem:[#allocation3 + $0x8] sm:$0xf] }
 0x290   : > { %9577 = vmatprep.subr.bf16.mxu1 %v10314_v54  ;;  %v5261_v38 = vshll.u32 %v5233_v58, 16 }
 0x291   : > { %v4666_v61 = vsel %vm10616_vm2, %v8491_v52, %v4665_v42  ;;  %v4814_v42 = vshrl.u32 %v11611_v6, 16  ;;  %v4755_v52 = vrot.slane %v4750_v48, 4 }
 0x293   : > { %9578 = vmatpush3.bf16.msra.mxu1 %v10314_v54  ;;  %v4667_v54 = vrot.slane %v11566_v15, 4 }
 0x294   : > { %9579 = vmatprep.subr.bf16.mxu1 %v10315_v55 }
 0x295   : > { %v4675_v4 = vsel %vm10616_vm2, %v4667_v54, %v4674_v24  ;;  %v4817_v24 = vshll.u32 %v11611_v6, 16  ;;  %v4762_v54 = vor.u32 %v4760_v47, %v4759_v53 }
 0x296   : > { %v8531_v35 = vcombine.low %v4666_v61, %v4675_v4 }
 0x297   : > { %9580 = vmatpush3.bf16.msra.mxu1 %v10315_v55  ;;  %v4770_v55 = vshrl.u32 %v11575_v45, 16  ;;  %v4763_v61 = vsel %vm10616_vm2, %v4755_v52, %v4762_v54 }
 0x298   : > { %9597 = vmatprep.subr.bf16.mxu1 %v10318_v25 }
 0x29a   : > { %9582 = vmatmul.mubr.bf16.vlgmr.msra.gmra.mrb[20].mxu1 %v8516_v59  ;;  %v11614_v59 = vld [vmem:[#allocation3 + $0x98] sm:$0xf] }
 0x29b   : > { %9598 = vmatpush3.bf16.msra.mxu1 %v10318_v25  ;;  %9585 = vmatprep.mubr.bf16.mxu1 %v8517_v5  ;;  %v4706_v25 = vrot.slane %v4704_v18, 7  ;;  %v4699_v5 = vshrl.u32 %v4636_v43, 16  ;;  %v8522_v22 = vcombine.low %v11611_v6, %v11614_v59  ;;  %v4645_v18 = vld [vmem:[#allocation3 + $0x68] sm:$0x8]  ;;  %v4823_v1 = vshrl.u32 %v11614_v59, 16 }
 0x29c   : > { %9599 = vmatprep.subr.bf16.mxu1 %v10319_v44  ;;  %v4753_v43 = vor.u32 %v4751_v40, %v4750_v48  ;;  %v4826_v26 = vshll.u32 %v11614_v59, 16  ;;  %v5236_v48 = vld [vmem:[#allocation3 + $0x1c] sm:$0xf] }
 0x29d   : > { %v4711_v17 = vrot.slane %v4706_v25, 4  ;;  %v8493_v8 = vrot.slane %v4699_v5, 11  ;;  %v4709_v14 = vor.u32 %v4707_v29, %v4706_v25  ;;  %v4772_v25 = vrot.slane %v4770_v55, 7 }
 0x29e   : > { %v4754_v47 = vsel %vm10616_vm2, %v8495_v27, %v4753_v43  ;;  %v10335_v27 = vld [vmem:[%s12313_s7 + $0x98] sm:$0xff]  }
 0x29f   : > { %9600 = vmatpush3.bf16.msra.mxu1 %v10319_v44  ;;  %v4639_v44 = vld [vmem:[#allocation3 + $0x40] sm:$0x8]  ;;  %v11673_v4 = vor.u32 %v4773_v57, %v4772_v25 }
 0x2a0   : > { %9601 = vmatprep.subr.bf16.mxu1 %v10322_v46  ;;  %v4721_v15 = vshrl.u32 %v4639_v44, 16 }
 0x2a2   : > { %9586 = vmatmul.mubr.bf16.gmra.mrb[24].mxu1 %v8518_v19  ;;  %v4728_v19 = vrot.slane %v4726_v31, 7  ;;  %v8494_v29 = vrot.slane %v4721_v15, 11  ;;  %v10332_v31 = vld [vmem:[%s12313_s7 + $0x80] sm:$0xff]  }
 0x2a3   : > { %9602 = vmatpush3.bf16.msra.mxu1 %v10322_v46  ;;  %9589 = vmatprep.mubr.bf16.mxu1 %v8519_v60  ;;  %v4795_v46 = vshll.u32 %v11579_v16, 16  ;;  %v4718_v60 = vor.u32 %v4716_v21, %v4715_v20  ;;  %v5234_v20 = vld [vmem:[#allocation3 + $0xc] sm:$0xf]  ;;  %v4825_v16 = vrot.slane %v4823_v1, 7 }
 0x2a4   : > { %9603 = vmatprep.subr.bf16.mxu1 %v10323_v0  ;;  %v4731_v63 = vor.u32 %v4729_v37, %v4728_v19  ;;  %v4733_v21 = vrot.slane %v4728_v19, 4  ;;  %v4648_v37 = vld [vmem:[#allocation3 + $0x7c] sm:$0x8]  ;;  %v5267_v12 = vshll.u32 %v5234_v20, 16  ;;  %v4794_v19 = vrot.slane %v4792_v30, 7  ;;  %v10334_v30 = vld [vmem:[%s12313_s7 + $0x90] sm:$0xff]  }
 0x2a5   : > { %v4719_v13 = vsel %vm10616_vm2, %v4711_v17, %v4718_v60  ;;  %v4787_v55 = vshrl.u32 %v4648_v37, 16  ;;  %v4777_v17 = vrot.slane %v4772_v25, 4  ;;  %v4784_v60 = vor.u32 %v4782_v11, %v4781_v32 }
 0x2a6   : > { %v4732_v5 = vsel %vm10616_vm2, %v8494_v29, %v4731_v63  ;;  %v11679_v45 = vrot.slane %v5267_v12, 5  ;;  %v4816_v29 = vrot.slane %v4814_v42, 7  ;;  %v4828_v32 = vor.u32 %v4826_v26, %v4825_v16  ;;  %v5238_v12 = vld [vmem:[#allocation3 + $0x24] sm:$0x1] }
 0x2a7   : > { %9604 = vmatpush3.bf16.msra.mxu1 %v10323_v0  ;;  %v4737_v0 = vrot.slane %v4735_v2, 7  ;;  %v4710_v2 = vsel %vm10616_vm2, %v8493_v8, %v4709_v14  ;;  %v5235_v8 = vld [vmem:[#allocation3 + $0x10] sm:$0x1]  ;;  %v8497_v11 = vrot.slane %v4787_v55, 11  ;;  %v4785_v53 = vsel %vm10616_vm2, %v4777_v17, %v4784_v60 }
 0x2a8   : > { %9605 = vmatprep.subr.bf16.mxu1 %v10326_v7  ;;  %v5277_v63 = vshll.u32 %v5235_v8, 16  ;;  %v4821_v54 = vrot.slane %v4816_v29, 4 }
 0x2aa   : > { %9590 = vmatmul.mubr.bf16.gmra.mrb[28].mxu1 %v8520_v62  ;;  %v4740_v62 = vor.u32 %v4738_v3, %v4737_v0  ;;  %v8533_v3 = vcombine.low %v4710_v2, %v4719_v13  ;;  %v5263_v0 = vrot.slane %v5261_v38, 5  ;;  %v5279_v25 = vrot.slane %v5277_v63, 5 }
 0x2ab   : > { %9606 = vmatpush3.bf16.msra.mxu1 %v10326_v7  ;;  %9593 = vmatprep.mubr.bf16.mxu1 %v8521_v41  ;;  %v10331_v7 = vld [vmem:[%s12313_s7 + $0x38] sm:$0xff]   ;;  %v4765_v41 = vshrl.u32 %v4645_v18, 16  ;;  %v4799_v18 = vrot.slane %v4794_v19, 4 }
 0x2ac   : > { %9607 = vmatprep.subr.bf16.mxu1 %v10327_v49  ;;  %v4741_v40 = vsel %vm10616_vm2, %v4733_v21, %v4740_v62  ;;  %v5239_v21 = vld [vmem:[#allocation3 + $0x30] sm:$0xf]  ;;  %v5282_v62 = vshrl.u32 %v5236_v48, 16 }
 0x2ad   : > { %v11662_v44 = vrot.slane %v4765_v41, 11  ;;  %v8534_v23 = vcombine.low %v4732_v5, %v4741_v40  ;;  %v5306_v43 = vshrl.u32 %v5239_v21, 16  ;;  %v5309_v37 = vshll.u32 %v5239_v21, 16 }
 0x2ae   : > { %v4819_v5 = vor.u32 %v4817_v24, %v4816_v29  ;;  %v5241_v24 = vld [vmem:[#allocation3 + $0x38] sm:$0x1] }
 0x2af   : > { %9608 = vmatpush3.bf16.msra.mxu1 %v10327_v49  ;;  %v8532_v49 = vcombine.low %v4688_v34, %v4697_v9  ;;  %v4651_v34 = vld [vmem:[#allocation3 + $0x90] sm:$0x8]  ;;  %v5258_v9 = vshrl.u32 %v5233_v58, 16  ;;  %v4776_v50 = vsel %vm10616_vm2, %v11662_v44, %v11673_v4  ;;  %v5284_v44 = vrot.slane %v5282_v62, 4 }
 0x2b0   : > { %9609 = vmatprep.subr.bf16.mxu1 %v10330_v10  ;;  %v4809_v15 = vshrl.u32 %v4651_v34, 16  ;;  %v5243_v34 = vld [vmem:[#allocation3 + $0x48] sm:$0xf] }
 0x2b1   : > { %v5260_v14 = vrot.slane %v5258_v9, 4  ;;  %v5339_v4 = vshll.u32 %v5243_v34, 16 }
 0x2b2   : > { %9594 = vmatmul.mubr.bf16.gmra.mrb[32].mxu1 %v8522_v22  ;;  %v4803_v22 = vrot.slane %v4801_v36, 7  ;;  %v4797_v36 = vor.u32 %v4795_v46, %v4794_v19  ;;  %v11696_v2 = vrot.slane %v4809_v15, 11  ;;  %v5343_v19 = vshrl.u32 %v5243_v34, 16 }
 0x2b3   : > { %9610 = vmatpush3.bf16.msra.mxu1 %v10330_v10  ;;  %9613 = vmatprep.mubr.bf16.mxu1 %v8531_v35  ;;  %v5271_v10 = vshrl.u32 %v5234_v20, 16  ;;  %v8535_v35 = vcombine.low %v4754_v47, %v4763_v61  ;;  %v5264_v46 = vor.u32 %v5263_v0, %v5260_v14  ;;  %v5242_v20 = vld [vmem:[#allocation3 + $0x44] sm:$0xf]  ;;  %v4829_v15 = vsel %vm10616_vm2, %v4821_v54, %v4828_v32  ;;  %v5251_v54 = vld [vmem:[#allocation3 + $0x80] sm:$0xf] }
 0x2b4   : > { %9611 = vmatprep.subr.bf16.mxu1 %v10331_v7  ;;  %v4806_v13 = vor.u32 %v4804_v39, %v4803_v22  ;;  %v5285_v39 = vshll.u32 %v5236_v48, 16  ;;  %v4798_v1 = vsel %vm10616_vm2, %v8497_v11, %v4797_v36  ;;  %v5330_v59 = vshrl.u32 %v5242_v20, 16  ;;  %v10337_v48 = vld [vmem:[%s12313_s7 + $0xa8] sm:$0xff]  }
 0x2b5   : > { %v5273_v57 = vrot.slane %v5271_v10, 4  ;;  %v5265_v40 = vrot.slane %v5264_v46, 4  ;;  %v5308_v10 = vrot.slane %v5306_v43, 4  ;;  %v5333_v26 = vshll.u32 %v5242_v20, 16  ;;  %v5249_v43 = vld [vmem:[#allocation3 + $0x70] sm:$0xf] }
 0x2b6   : > { %v4807_v52 = vsel %vm10616_vm2, %v4799_v18, %v4806_v13  ;;  %v5287_v38 = vrot.slane %v5285_v39, 5  ;;  %v8536_v22 = vcombine.low %v4776_v50, %v4785_v53  ;;  %v4820_v60 = vsel %vm10616_vm2, %v11696_v2, %v4819_v5  ;;  %v5244_v18 = vld [vmem:[#allocation3 + $0x4c] sm:$0x1]  ;;  %v10338_v2 = vld [vmem:[%s12313_s7 + $0xb0] sm:$0xff]  }
 0x2b7   : > { %9612 = vmatpush3.bf16.msra.mxu1 %v10331_v7  ;;  %v5237_v7 = vld [vmem:[#allocation3 + $0x20] sm:$0xf]  ;;  %v5274_v56 = vor.u32 %v5273_v57, %v11679_v45  ;;  %v8537_v17 = vcombine.low %v4798_v1, %v4807_v52  ;;  %v5270_v8 = vsel %vm10716_vm5, %v5265_v40, %v11679_v45  ;;  %v5246_v57 = vld [vmem:[#allocation3 + $0x5c] sm:$0xf]  ;;  %v5325_v36 = vshll.u32 %v5241_v24, 16  ;;  %v10339_v20 = vld [vmem:[%s12313_s7 + $0xb8] sm:$0xff]  }
 0x2b8   : > { %9629 = vmatprep.subr.bf16.mxu1 %v10332_v31  ;;  %v5291_v41 = vshll.u32 %v5237_v7, 16  ;;  %v5295_v42 = vshrl.u32 %v5237_v7, 16  ;;  %v5288_v14 = vor.u32 %v5287_v38, %v5284_v44  ;;  %v5332_v45 = vrot.slane %v5330_v59, 4  ;;  %v5247_v52 = vld [vmem:[#allocation3 + $0x60] sm:$0x1] }
 0x2b9   : > { %v5275_v9 = vrot.slane %v5274_v56, 4  ;;  %v5335_v7 = vrot.slane %v5333_v26, 5  ;;  %v11734_v53 = vrot.slane %v5339_v4, 5  ;;  %v5345_v13 = vrot.slane %v5343_v19, 4 }
 0x2ba   : > { %9614 = vmatmul.mubr.bf16.vlgmr.msra.gmra.mrb[20].mxu1 %v8532_v49  ;;  %v11715_v47 = vrot.slane %v5291_v41, 5  ;;  %v5297_v55 = vrot.slane %v5295_v42, 4  ;;  %v5363_v21 = vshll.u32 %v5246_v57, 16  ;;  %v5289_v16 = vrot.slane %v5288_v14, 4  ;;  %v5248_v42 = vld [vmem:[#allocation3 + $0x6c] sm:$0xf] }
 0x2bb   : > { %9630 = vmatpush3.bf16.msra.mxu1 %v10332_v31  ;;  %9617 = vmatprep.mubr.bf16.mxu1 %v8533_v3  ;;  %v5240_v31 = vld [vmem:[#allocation3 + $0x34] sm:$0xf]  ;;  %v5327_v41 = vrot.slane %v5325_v36, 5  ;;  %v5349_v1 = vshll.u32 %v5244_v18, 16  ;;  %v5378_v44 = vshrl.u32 %v5248_v42, 16  ;;  %v5381_v34 = vshll.u32 %v5248_v42, 16 }
 0x2bc   : > { %9631 = vmatprep.subr.bf16.mxu1 %v10333_v51  ;;  %v5315_v58 = vshll.u32 %v5240_v31, 16  ;;  %v5319_v49 = vshrl.u32 %v5240_v31, 16  ;;  %v10336_v3 = vld [vmem:[%s12313_s7 + $0xa0] sm:$0xff]   ;;  %v5298_v0 = vor.u32 %v5297_v55, %v11715_v47  ;;  %v5367_v31 = vshrl.u32 %v5246_v57, 16 }
 0x2bd   : > { %v11743_v32 = vrot.slane %v5363_v21, 5  ;;  %v5391_v38 = vshrl.u32 %v5249_v43, 16  ;;  %v5294_v55 = vsel %vm10716_vm5, %v5289_v16, %v11715_v47  ;;  %v11757_v19 = vrot.slane %v5349_v1, 5 }
 0x2be   : > { %v11717_v61 = vrot.slane %v5315_v58, 5  ;;  %v5321_v6 = vrot.slane %v5319_v49, 4  ;;  %v5299_v46 = vrot.slane %v5298_v0, 4  ;;  %v5336_v58 = vor.u32 %v5335_v7, %v5332_v45 }
 0x2bf   : > { %9632 = vmatpush3.bf16.msra.mxu1 %v10333_v51  ;;  %v5311_v51 = vrot.slane %v5309_v37, 5  ;;  %v5346_v49 = vor.u32 %v5345_v13, %v11734_v53  ;;  %v5369_v40 = vrot.slane %v5367_v31, 4  ;;  %v5383_v14 = vrot.slane %v5381_v34, 5  ;;  %v5255_v13 = vld [vmem:[#allocation3 + $0x98] sm:$0xf] }
 0x2c0   : > { %9633 = vmatprep.subr.bf16.mxu1 %v10334_v30  ;;  %v5322_v11 = vor.u32 %v5321_v6, %v11717_v61  ;;  %v11755_v4 = vrot.slane %v5336_v58, 4  ;;  %v11782_v58 = vld [vmem:[#allocation3 + $0x1c] sm:$0xf] }
 0x2c1   : > { %v5312_v50 = vor.u32 %v5311_v51, %v5308_v10  ;;  %v5402_v10 = vshrl.u32 %v5251_v54, 16  ;;  %v5405_v51 = vshll.u32 %v5251_v54, 16 }
 0x2c2   : > { %9618 = vmatmul.mubr.bf16.gmra.mrb[24].mxu1 %v8534_v23  ;;  %v5301_v23 = vshll.u32 %v5238_v12, 16  ;;  %v5323_v37 = vrot.slane %v5322_v11, 4  ;;  %v5254_v11 = vld [vmem:[#allocation3 + $0x94] sm:$0xf]  ;;  %v5342_v42 = vsel %vm10716_vm5, %v11755_v4, %v11734_v53 }
 0x2c3   : > { %9634 = vmatpush3.bf16.msra.mxu1 %v10334_v30  ;;  %9621 = vmatprep.mubr.bf16.mxu1 %v8535_v35  ;;  %v5245_v35 = vld [vmem:[#allocation3 + $0x58] sm:$0xf]  ;;  %v5280_v30 = vsel %vm10716_vm5, %v5275_v9, %v5279_v25  ;;  %v5313_v39 = vrot.slane %v5312_v50, 4  ;;  %v5252_v25 = vld [vmem:[#allocation3 + $0x84] sm:$0xf]  ;;  %v5387_v9 = vshll.u32 %v5249_v43, 16 }
 0x2c4   : > { %9635 = vmatprep.subr.bf16.mxu1 %v10335_v27  ;;  %v5354_v29 = vshrl.u32 %v5245_v35, 16  ;;  %v5357_v63 = vshll.u32 %v5245_v35, 16  ;;  %v5303_v62 = vrot.slane %v5301_v23, 5  ;;  %v8563_v56 = vcombine.low %v5270_v8, %v5280_v30  ;;  %v5253_v35 = vld [vmem:[#allocation3 + $0x88] sm:$0x1] }
 0x2c5   : > { %v5318_v6 = vsel %vm10716_vm5, %v5313_v39, %v11717_v61  ;;  %v5328_v24 = vsel %vm10716_vm5, %v5323_v37, %v5327_v41  ;;  %v5411_v59 = vshll.u32 %v5252_v25, 16  ;;  %v5415_v26 = vshrl.u32 %v5252_v25, 16  ;;  %v10342_v37 = vld [vmem:[%s12313_s7 + $0xd0] sm:$0xff]   ;;  %v5256_v25 = vld [vmem:[#allocation3 + $0x9c] sm:$0x1] }
 0x2c6   : > { %v5359_v5 = vrot.slane %v5357_v63, 5  ;;  %v5304_v12 = vsel %vm10716_vm5, %v5299_v46, %v5303_v62  ;;  %v5370_v61 = vor.u32 %v5369_v40, %v11743_v32  ;;  %v5380_v8 = vrot.slane %v5378_v44, 4 }
 0x2c7   : > { %9636 = vmatpush3.bf16.msra.mxu1 %v10335_v27  ;;  %v8538_v27 = vcombine.low %v4820_v60, %v4829_v15  ;;  %v5347_v60 = vrot.slane %v5346_v49, 4  ;;  %v5250_v15 = vld [vmem:[#allocation3 + $0x74] sm:$0x1]  ;;  %v11763_v0 = vrot.slane %v5387_v9, 5  ;;  %v5393_v23 = vrot.slane %v5391_v38, 4 }
 0x2c8   : > { %9637 = vmatprep.subr.bf16.mxu1 %v10336_v3  ;;  %v5404_v57 = vrot.slane %v5402_v10, 4  ;;  %v11765_v30 = vrot.slane %v5411_v59, 5  ;;  %v5417_v50 = vrot.slane %v5415_v26, 4  ;;  %v8564_v36 = vcombine.low %v5294_v55, %v5304_v12  ;;  %v11784_v49 = vld [vmem:[#allocation3 + $0x20] sm:$0xf] }
 0x2c9   : > { %v8565_v18 = vcombine.low %v5318_v6, %v5328_v24  ;;  %v5371_v63 = vrot.slane %v5370_v61, 4  ;;  %v5384_v21 = vor.u32 %v5383_v14, %v5380_v8  ;;  %v5397_v31 = vshll.u32 %v5250_v15, 16  ;;  %v11798_v24 = vld [vmem:[#allocation3 + $0x30] sm:$0xf]  ;;  %v11800_v59 = vld [vmem:[#allocation3 + $0x34] sm:$0xf] }
 0x2ca   : > { %9622 = vmatmul.mubr.bf16.gmra.mrb[28].mxu1 %v8536_v22  ;;  %v5373_v22 = vshll.u32 %v5247_v52, 16  ;;  %v5394_v16 = vor.u32 %v5393_v23, %v11763_v0  ;;  %v5426_v62 = vshrl.u32 %v5254_v11, 16  ;;  %v5435_v39 = vshll.u32 %v5255_v13, 16 }
 0x2cb   : > { %9638 = vmatpush3.bf16.msra.mxu1 %v10336_v3  ;;  %9625 = vmatprep.mubr.bf16.mxu1 %v8537_v17  ;;  %v5356_v3 = vrot.slane %v5354_v29, 4  ;;  %v10340_v17 = vld [vmem:[%s12313_s7 + $0xc0] sm:$0xff]   ;;  %v10341_v29 = vld [vmem:[%s12313_s7 + $0xc8] sm:$0xff]   ;;  %v5439_v41 = vshrl.u32 %v5255_v13, 16  ;;  %v5352_v43 = vsel %vm10716_vm5, %v5347_v60, %v11757_v19  ;;  %v5385_v52 = vrot.slane %v5384_v21, 4 }
 0x2cc   : > { %9639 = vmatprep.subr.bf16.mxu1 %v10337_v48  ;;  %v5375_v7 = vrot.slane %v5373_v22, 5  ;;  %v5399_v54 = vrot.slane %v5397_v31, 5  ;;  %v5428_v44 = vrot.slane %v5426_v62, 4  ;;  %v11791_v38 = vrot.slane %v5435_v39, 5  ;;  %v5663_v22 = vld [vmem:[#allocation3 + $0x2c] sm:$0x8] }
 0x2cd   : > { %v5360_v47 = vor.u32 %v5359_v5, %v5356_v3  ;;  %v5395_v3 = vrot.slane %v5394_v16, 4  ;;  %v5441_v55 = vrot.slane %v5439_v41, 4  ;;  %v8566_v12 = vcombine.low %v5342_v42, %v5352_v43 }
 0x2ce   : > { %v5376_v53 = vsel %vm10716_vm5, %v5371_v63, %v5375_v7  ;;  %v5690_v10 = vshrl.u32 %v11782_v58, 16  ;;  %v5390_v26 = vsel %vm10716_vm5, %v5385_v52, %v11763_v0  ;;  %v5445_v19 = vshll.u32 %v5256_v25, 16 }
 0x2cf   : > { %9640 = vmatpush3.bf16.msra.mxu1 %v10337_v48  ;;  %v5407_v48 = vrot.slane %v5405_v51, 5  ;;  %v5361_v45 = vrot.slane %v5360_v47, 4  ;;  %v5699_v51 = vshrl.u32 %v11784_v49, 16  ;;  %v5400_v4 = vsel %vm10716_vm5, %v5395_v3, %v5399_v54 }
 0x2d0   : > { %9641 = vmatprep.subr.bf16.mxu1 %v10338_v2  ;;  %v5442_v61 = vor.u32 %v5441_v55, %v11791_v38  ;;  %v5693_v15 = vshll.u32 %v11782_v58, 16  ;;  %v5692_v14 = vrot.slane %v5690_v10, 7  ;;  %v5702_v23 = vshll.u32 %v11784_v49, 16 }
 0x2d1   : > { %v5408_v46 = vor.u32 %v5407_v48, %v5404_v57  ;;  %v5366_v1 = vsel %vm10716_vm5, %v5361_v45, %v11743_v32  ;;  %v10343_v32 = vld [vmem:[%s12313_s7 + $0xd8] sm:$0xff]   ;;  %v5701_v0 = vrot.slane %v5699_v51, 7  ;;  %v5721_v57 = vshrl.u32 %v11800_v59, 16 }
 0x2d2   : > { %9626 = vmatmul.mubr.bf16.gmra.mrb[32].mxu1 %v8538_v27  ;;  %v5429_v27 = vshll.u32 %v5254_v11, 16  ;;  %v8567_v6 = vcombine.low %v5366_v1, %v5376_v53  ;;  %v8568_v48 = vcombine.low %v5390_v26, %v5400_v4  ;;  %v11820_v11 = vld [vmem:[#allocation3 + $0x44] sm:$0xf]  ;;  %v5707_v13 = vshrl.u32 %v5663_v22, 16 }
 0x2d3   : > { %9642 = vmatpush3.bf16.msra.mxu1 %v10338_v2  ;;  %9645 = vmatprep.mubr.bf16.mxu1 %v8563_v56  ;;  %v5421_v2 = vshll.u32 %v5253_v35, 16  ;;  %v5418_v56 = vor.u32 %v5417_v50, %v11765_v30  ;;  %v5409_v5 = vrot.slane %v5408_v46, 4  ;;  %v5712_v35 = vshrl.u32 %v11798_v24, 16  ;;  %v10346_v53 = vld [vmem:[%s12313_s7 + $0xf0] sm:$0xff]  }
 0x2d4   : > { %9643 = vmatprep.subr.bf16.mxu1 %v10339_v20  ;;  %v5431_v9 = vrot.slane %v5429_v27, 5  ;;  %v5447_v50 = vrot.slane %v5445_v19, 5  ;;  %v5695_v63 = vor.u32 %v5693_v15, %v5692_v14  ;;  %v5697_v21 = vrot.slane %v5692_v14, 4  ;;  %v10347_v15 = vld [vmem:[%s12313_s7 + $0xf8] sm:$0xff]  }
 0x2d5   : > { %v5423_v40 = vrot.slane %v5421_v2, 5  ;;  %v5419_v34 = vrot.slane %v5418_v56, 4  ;;  %v5704_v31 = vor.u32 %v5702_v23, %v5701_v0  ;;  %v5666_v2 = vld [vmem:[#allocation3 + $0x40] sm:$0x8]  ;;  %v5714_v16 = vrot.slane %v5712_v35, 7  ;;  %v10345_v56 = vld [vmem:[%s12313_s7 + $0xe8] sm:$0xff]  }
 0x2d6   : > { %v5432_v60 = vor.u32 %v5431_v9, %v5428_v44  ;;  %v5715_v46 = vshll.u32 %v11798_v24, 16  ;;  %v5723_v62 = vrot.slane %v5721_v57, 7  ;;  %v5724_v27 = vshll.u32 %v11800_v59, 16  ;;  %v11850_v9 = vld [vmem:[#allocation3 + $0x70] sm:$0xf] }
 0x2d7   : > { %9644 = vmatpush3.bf16.msra.mxu1 %v10339_v20  ;;  %v5660_v20 = vld [vmem:[#allocation3 + $0x18] sm:$0x8]  ;;  %v5424_v8 = vsel %vm10716_vm5, %v5419_v34, %v5423_v40  ;;  %v5734_v39 = vshrl.u32 %v11820_v11, 16  ;;  %v8580_v43 = vrot.slane %v5707_v13, 11  ;;  %v5705_v54 = vsel %vm10616_vm2, %v5697_v21, %v5704_v31  ;;  %v11848_v34 = vld [vmem:[#allocation3 + $0x6c] sm:$0xf] }
 0x2d8   : > { %9661 = vmatprep.subr.bf16.mxu1 %v10340_v17  ;;  %v5685_v47 = vshrl.u32 %v5660_v20, 16  ;;  %v5433_v45 = vrot.slane %v5432_v60, 4  ;;  %v5729_v25 = vshrl.u32 %v5666_v2, 16  ;;  %v11845_v20 = vld [vmem:[#allocation3 + $0x5c] sm:$0xf]  ;;  %v5717_v3 = vor.u32 %v5715_v46, %v5714_v16  ;;  %v10348_v13 = vld [vmem:[%s12313_s7 + $0x100] sm:$0xff]  }
 0x2d9   : > { %v5726_v40 = vor.u32 %v5724_v27, %v5723_v62  ;;  %v5737_v44 = vshll.u32 %v11820_v11, 16  ;;  %v5765_v51 = vshrl.u32 %v11845_v20, 16  ;;  %v5778_v19 = vshrl.u32 %v11848_v34, 16  ;;  %v11873_v21 = vld [vmem:[#allocation3 + $0x84] sm:$0xf] }
 0x2da   : > { %9646 = vmatmul.mubr.bf16.vlgmr.msra.gmra.mrb[20].mxu1 %v8564_v36  ;;  %v11822_v36 = vld [vmem:[#allocation3 + $0x48] sm:$0xf]  ;;  %v8579_v7 = vrot.slane %v5685_v47, 11  ;;  %v5438_v42 = vsel %vm10716_vm5, %v5433_v45, %v11791_v38  ;;  %v5736_v38 = vrot.slane %v5734_v39, 7  ;;  %v5787_v47 = vshrl.u32 %v11850_v9, 16 }
 0x2db   : > { %9662 = vmatpush3.bf16.msra.mxu1 %v10340_v17  ;;  %9649 = vmatprep.mubr.bf16.mxu1 %v8565_v18  ;;  %v5414_v17 = vsel %vm10716_vm5, %v5409_v5, %v11765_v30  ;;  %v10344_v30 = vld [vmem:[%s12313_s7 + $0xe0] sm:$0xff]   ;;  %v5743_v41 = vshrl.u32 %v11822_v36, 16  ;;  %v5719_v5 = vrot.slane %v5714_v16, 4  ;;  %v5718_v22 = vsel %vm10616_vm2, %v8580_v43, %v5717_v3  ;;  %v11881_v62 = vld [vmem:[#allocation3 + $0x98] sm:$0xf] }
 0x2dc   : > { %9663 = vmatprep.subr.bf16.mxu1 %v10341_v29  ;;  %v8569_v18 = vcombine.low %v5414_v17, %v5424_v8  ;;  %v5696_v52 = vsel %vm10616_vm2, %v8579_v7, %v5695_v63  ;;  %v8581_v60 = vrot.slane %v5729_v25, 11  ;;  %v5739_v8 = vor.u32 %v5737_v44, %v5736_v38  ;;  %v11871_v63 = vld [vmem:[#allocation3 + $0x80] sm:$0xf]  ;;  %v11879_v46 = vld [vmem:[#allocation3 + $0x94] sm:$0xf] }
 0x2dd   : > { %v5745_v55 = vrot.slane %v5743_v41, 7  ;;  %v8603_v4 = vcombine.low %v5696_v52, %v5705_v54  ;;  %v5727_v17 = vsel %vm10616_vm2, %v5719_v5, %v5726_v40  ;;  %v5741_v14 = vrot.slane %v5736_v38, 4  ;;  %v10349_v5 = vld [vmem:[%s12313_s7 + $0x108] sm:$0xff]   ;;  %v5678_v40 = vld [vmem:[#allocation3 + $0x90] sm:$0x8] }
 0x2de   : > { %v5767_v57 = vrot.slane %v5765_v51, 7  ;;  %v5789_v45 = vrot.slane %v5787_v47, 7  ;;  %v5790_v7 = vshll.u32 %v11850_v9, 16  ;;  %v8604_v31 = vcombine.low %v5718_v22, %v5727_v17  ;;  %v11905_v47 = vld [vmem:[#allocation3 + $0xac] sm:$0xf] }
 0x2df   : > { %9664 = vmatpush3.bf16.msra.mxu1 %v10341_v29  ;;  %v5443_v29 = vrot.slane %v5442_v61, 4  ;;  %v5740_v2 = vsel %vm10616_vm2, %v8581_v60, %v5739_v8  ;;  %v5800_v52 = vshrl.u32 %v11871_v63, 16  ;;  %v5809_v25 = vshrl.u32 %v11873_v21, 16 }
 0x2e0   : > { %9665 = vmatprep.subr.bf16.mxu1 %v10342_v37  ;;  %v5822_v3 = vshrl.u32 %v11879_v46, 16  ;;  %v5831_v44 = vshrl.u32 %v11881_v62, 16  ;;  %v5817_v17 = vshrl.u32 %v5678_v40, 16  ;;  %v5834_v8 = vshll.u32 %v11881_v62, 16 }
 0x2e1   : > { %v5448_v1 = vsel %vm10716_vm5, %v5443_v29, %v5447_v50  ;;  %v5780_v50 = vrot.slane %v5778_v19, 7  ;;  %v11903_v19 = vld [vmem:[#allocation3 + $0xa8] sm:$0xf]  ;;  %v5811_v22 = vrot.slane %v5809_v25, 7 }
 0x2e2   : > { %9650 = vmatmul.mubr.bf16.gmra.mrb[24].mxu1 %v8566_v12  ;;  %v5746_v12 = vshll.u32 %v11822_v36, 16  ;;  %v8570_v26 = vcombine.low %v5438_v42, %v5448_v1  ;;  %v5792_v1 = vor.u32 %v5790_v7, %v5789_v45  ;;  %v5824_v60 = vrot.slane %v5822_v3, 7  ;;  %v10351_v45 = vld [vmem:[%s12313_s7 + $0x118] sm:$0xff]  }
 0x2e3   : > { %9666 = vmatpush3.bf16.msra.mxu1 %v10342_v37  ;;  %9653 = vmatprep.mubr.bf16.mxu1 %v8567_v6  ;;  %v11834_v37 = vld [vmem:[#allocation3 + $0x58] sm:$0xf]  ;;  %v5672_v6 = vld [vmem:[#allocation3 + $0x68] sm:$0x8]  ;;  %v5785_v43 = vrot.slane %v5780_v50, 4  ;;  %v8585_v7 = vrot.slane %v5817_v17, 11 }
 0x2e4   : > { %9667 = vmatprep.subr.bf16.mxu1 %v10343_v32  ;;  %v5756_v10 = vshrl.u32 %v11834_v37, 16  ;;  %v5748_v0 = vor.u32 %v5746_v12, %v5745_v55  ;;  %v5759_v35 = vshll.u32 %v11834_v37, 16  ;;  %v6299_v17 = vld [vmem:[#allocation3 + $0x30] sm:$0xf] }
 0x2e6   : > { %v5758_v23 = vrot.slane %v5756_v10, 7  ;;  %v5749_v16 = vsel %vm10616_vm2, %v5741_v14, %v5748_v0  ;;  %v10350_v10 = vld [vmem:[%s12313_s7 + $0x110] sm:$0xff]  }
 0x2e7   : > { %9668 = vmatpush3.bf16.msra.mxu1 %v10343_v32  ;;  %v5669_v32 = vld [vmem:[#allocation3 + $0x54] sm:$0x8]  ;;  %v8605_v54 = vcombine.low %v5740_v2, %v5749_v16 }
 0x2e8   : > { %9669 = vmatprep.subr.bf16.mxu1 %v10344_v30  ;;  %v5751_v61 = vshrl.u32 %v5669_v32, 16  ;;  %v5761_v27 = vor.u32 %v5759_v35, %v5758_v23  ;;  %v5803_v32 = vshll.u32 %v11871_v63, 16  ;;  %v5844_v35 = vshrl.u32 %v11903_v19, 16 }
 0x2ea   : > { %9654 = vmatmul.mubr.bf16.gmra.mrb[28].mxu1 %v8568_v48  ;;  %v5768_v48 = vshll.u32 %v11845_v20, 16  ;;  %v8582_v29 = vrot.slane %v5751_v61, 11  ;;  %v5825_v61 = vshll.u32 %v11879_v46, 16  ;;  %v5846_v16 = vrot.slane %v5844_v35, 7  ;;  %v6301_v35 = vld [vmem:[#allocation3 + $0x38] sm:$0x1] }
 0x2eb   : > { %9670 = vmatpush3.bf16.msra.mxu1 %v10344_v30  ;;  %9657 = vmatprep.mubr.bf16.mxu1 %v8569_v18  ;;  %v5773_v30 = vshrl.u32 %v5672_v6, 16  ;;  %v5781_v18 = vshll.u32 %v11848_v34, 16  ;;  %v5793_v6 = vsel %vm10616_vm2, %v5785_v43, %v5792_v1  ;;  %v10352_v43 = vld [vmem:[%s12313_s7 + $0x120] sm:$0xff]  }
 0x2ec   : > { %9671 = vmatprep.subr.bf16.mxu1 %v10345_v56  ;;  %v5770_v39 = vor.u32 %v5768_v48, %v5767_v57  ;;  %v5762_v38 = vsel %vm10616_vm2, %v8582_v29, %v5761_v27  ;;  %v5829_v29 = vrot.slane %v5824_v60, 4  ;;  %v5847_v27 = vshll.u32 %v11903_v19, 16 }
 0x2ed   : > { %v8583_v41 = vrot.slane %v5773_v30, 11  ;;  %v5783_v42 = vor.u32 %v5781_v18, %v5780_v50  ;;  %v5681_v50 = vld [vmem:[#allocation3 + $0xa4] sm:$0x8]  ;;  %v5853_v18 = vshrl.u32 %v11905_v47, 16 }
 0x2ee   : > { %v5839_v2 = vshrl.u32 %v5681_v50, 16  ;;  %v5849_v3 = vor.u32 %v5847_v27, %v5846_v16 }
 0x2ef   : > { %9672 = vmatpush3.bf16.msra.mxu1 %v10345_v56  ;;  %v5763_v56 = vrot.slane %v5758_v23, 4  ;;  %v5784_v51 = vsel %vm10616_vm2, %v8583_v41, %v5783_v42  ;;  %v5855_v41 = vrot.slane %v5853_v18, 7  ;;  %v5856_v42 = vshll.u32 %v11905_v47, 16 }
 0x2f0   : > { %9673 = vmatprep.subr.bf16.mxu1 %v10346_v53  ;;  %v8607_v0 = vcombine.low %v5784_v51, %v5793_v6  ;;  %v10355_v51 = vld [vmem:[%s12313_s7 + $0x138] sm:$0xff]   ;;  %v10358_v6 = vld [vmem:[%s12313_s7 + $0x140] sm:$0xff]   ;;  %v8638_v18 = vcombine.low %v11834_v37, %v11845_v20 }
 0x2f1   : > { %v5771_v55 = vsel %vm10616_vm2, %v5763_v56, %v5770_v39  ;;  %v5858_v40 = vor.u32 %v5856_v42, %v5855_v41  ;;  %v6364_v41 = vshll.u32 %v6301_v35, 16 }
 0x2f2   : > { %9658 = vmatmul.mubr.bf16.gmra.mrb[32].mxu1 %v8570_v26  ;;  %v5802_v26 = vrot.slane %v5800_v52, 7  ;;  %v8606_v14 = vcombine.low %v5762_v38, %v5771_v55 }
 0x2f3   : > { %9674 = vmatpush3.bf16.msra.mxu1 %v10346_v53  ;;  %9677 = vmatprep.mubr.bf16.mxu1 %v8603_v4  ;;  %v5675_v53 = vld [vmem:[#allocation3 + $0x7c] sm:$0x8]  ;;  %v5812_v4 = vshll.u32 %v11873_v21, 16 }
 0x2f4   : > { %9675 = vmatprep.subr.bf16.mxu1 %v10347_v15  ;;  %v5795_v12 = vshrl.u32 %v5675_v53, 16  ;;  %v5805_v57 = vor.u32 %v5803_v32, %v5802_v26  ;;  %v5807_v48 = vrot.slane %v5802_v26, 4  ;;  %v6296_v26 = vld [vmem:[#allocation3 + $0x1c] sm:$0xf] }
 0x2f5   : > { %v5814_v30 = vor.u32 %v5812_v4, %v5811_v22  ;;  %v8636_v4 = vcombine.low %v11798_v24, %v11800_v59  ;;  %v6297_v22 = vld [vmem:[#allocation3 + $0x20] sm:$0xf]  ;;  %v6298_v59 = vld [vmem:[#allocation3 + $0x24] sm:$0x1] }
 0x2f6   : > { %v8584_v23 = vrot.slane %v5795_v12, 11  ;;  %v10354_v12 = vld [vmem:[%s12313_s7 + $0x130] sm:$0xff]  }
 0x2f7   : > { %9676 = vmatpush3.bf16.msra.mxu1 %v10347_v15  ;;  %v5833_v15 = vrot.slane %v5831_v44, 7  ;;  %v5815_v39 = vsel %vm10616_vm2, %v5807_v48, %v5814_v30  ;;  %v10353_v44 = vld [vmem:[%s12313_s7 + $0x128] sm:$0xff]   ;;  %v10362_v24 = vld [vmem:[%s12313_s7 + $0x150] sm:$0xff]  }
 0x2f8   : > { %9693 = vmatprep.subr.bf16.mxu1 %v10348_v13  ;;  %v5806_v56 = vsel %vm10616_vm2, %v8584_v23, %v5805_v57  ;;  %v6348_v23 = vshll.u32 %v6299_v17, 16 }
 0x2f9   : > { %v8608_v52 = vcombine.low %v5806_v56, %v5815_v39  ;;  %v6340_v39 = vshll.u32 %v6298_v59, 16 }
 0x2fa   : > { %9678 = vmatmul.mubr.bf16.vlgmr.msra.gmra.mrb[20].mxu1 %v8604_v31  ;;  %v5836_v31 = vor.u32 %v5834_v8, %v5833_v15  ;;  %v6324_v15 = vshll.u32 %v6296_v26, 16  ;;  %v6330_v8 = vshll.u32 %v6297_v22, 16 }
 0x2fb   : > { %9694 = vmatpush3.bf16.msra.mxu1 %v10348_v13  ;;  %9681 = vmatprep.mubr.bf16.mxu1 %v8605_v54  ;;  %v5827_v13 = vor.u32 %v5825_v61, %v5824_v60  ;;  %v8586_v54 = vrot.slane %v5839_v2, 11  ;;  %v6300_v60 = vld [vmem:[#allocation3 + $0x34] sm:$0xf]  ;;  %v6321_v61 = vshrl.u32 %v6296_v26, 16  ;;  %v6303_v2 = vld [vmem:[#allocation3 + $0x48] sm:$0xf] }
 0x2fc   : > { %9695 = vmatprep.subr.bf16.mxu1 %v10349_v5  ;;  %v5837_v53 = vsel %vm10616_vm2, %v5829_v29, %v5836_v31  ;;  %v6326_v48 = vrot.slane %v6324_v15, 5  ;;  %v11955_v30 = vrot.slane %v6330_v8, 5  ;;  %v8639_v29 = vcombine.low %v11848_v34, %v11850_v9  ;;  %v6302_v31 = vld [vmem:[#allocation3 + $0x44] sm:$0xf]  ;;  %v10366_v34 = vld [vmem:[%s12313_s7 + $0x160] sm:$0xff]  }
 0x2fd   : > { %v5828_v1 = vsel %vm10616_vm2, %v8585_v7, %v5827_v13  ;;  %v5850_v38 = vsel %vm10616_vm2, %v8586_v54, %v5849_v3  ;;  %v6323_v57 = vrot.slane %v6321_v61, 4  ;;  %v6350_v13 = vrot.slane %v6348_v23, 5  ;;  %v6309_v26 = vld [vmem:[#allocation3 + $0x70] sm:$0xf] }
 0x2fe   : > { %v8609_v25 = vcombine.low %v5828_v1, %v5837_v53  ;;  %v6369_v37 = vshrl.u32 %v6302_v31, 16  ;;  %v6372_v20 = vshll.u32 %v6302_v31, 16  ;;  %v6382_v1 = vshrl.u32 %v6303_v2, 16  ;;  %v6311_v31 = vld [vmem:[#allocation3 + $0x80] sm:$0xf] }
 0x2ff   : > { %9696 = vmatpush3.bf16.msra.mxu1 %v10349_v5  ;;  %v5851_v5 = vrot.slane %v5846_v16, 4  ;;  %v6327_v56 = vor.u32 %v6326_v48, %v6323_v57  ;;  %v6342_v54 = vrot.slane %v6340_v39, 5  ;;  %v8640_v3 = vcombine.low %v11871_v63, %v11873_v21  ;;  %v6307_v57 = vld [vmem:[#allocation3 + $0x60] sm:$0x1]  ;;  %v6312_v39 = vld [vmem:[#allocation3 + $0x84] sm:$0xf] }
 0x300   : > { %9697 = vmatprep.subr.bf16.mxu1 %v10350_v10  ;;  %v6426_v61 = vshll.u32 %v6309_v26, 16  ;;  %v6430_v15 = vshrl.u32 %v6309_v26, 16 }
 0x301   : > { %v5859_v55 = vsel %vm10616_vm2, %v5851_v5, %v5858_v40  ;;  %v10367_v5 = vld [vmem:[%s12313_s7 + $0x168] sm:$0xff]   ;;  %v8641_v40 = vcombine.low %v11879_v46, %v11881_v62 }
 0x302   : > { %9682 = vmatmul.mubr.bf16.gmra.mrb[24].mxu1 %v8606_v14  ;;  %v8610_v32 = vcombine.low %v5850_v38, %v5859_v55  ;;  %v6334_v14 = vshrl.u32 %v6297_v22, 16  ;;  %v6374_v38 = vrot.slane %v6372_v20, 5  ;;  %v6306_v55 = vld [vmem:[#allocation3 + $0x5c] sm:$0xf] }
 0x303   : > { %9698 = vmatpush3.bf16.msra.mxu1 %v10350_v10  ;;  %9685 = vmatprep.mubr.bf16.mxu1 %v8607_v0  ;;  %v8635_v10 = vcombine.low %v11782_v58, %v11784_v49  ;;  %v10359_v58 = vld [vmem:[%s12313_s7 + $0x148] sm:$0xff]   ;;  %v8637_v49 = vcombine.low %v11820_v11, %v11822_v36  ;;  %v6345_v0 = vshrl.u32 %v6299_v17, 16  ;;  %v6354_v11 = vshll.u32 %v6300_v60, 16 }
 0x304   : > { %9699 = vmatprep.subr.bf16.mxu1 %v10351_v45  ;;  %v6358_v36 = vshrl.u32 %v6300_v60, 16  ;;  %v6336_v50 = vrot.slane %v6334_v14, 4  ;;  %v6406_v17 = vshrl.u32 %v6306_v55, 16 }
 0x305   : > { %v6347_v7 = vrot.slane %v6345_v0, 4  ;;  %v11964_v16 = vrot.slane %v6354_v11, 5 }
 0x306   : > { %v6360_v27 = vrot.slane %v6358_v36, 4  ;;  %v6337_v42 = vor.u32 %v6336_v50, %v11955_v30 }
 0x307   : > { %9700 = vmatpush3.bf16.msra.mxu1 %v10351_v45  ;;  %v10363_v45 = vld [vmem:[%s12313_s7 + $0x158] sm:$0xff]   ;;  %v6351_v9 = vor.u32 %v6350_v13, %v6347_v7  ;;  %v11998_v13 = vrot.slane %v6426_v61, 5  ;;  %v10373_v61 = vld [vmem:[%s12313_s7 + $0x188] sm:$0xff]  }
 0x308   : > { %9701 = vmatprep.subr.bf16.mxu1 %v10352_v43  ;;  %v6361_v53 = vor.u32 %v6360_v27, %v11964_v16 }
 0x309   : > { %v6352_v63 = vrot.slane %v6351_v9, 4  ;;  %v6315_v9 = vld [vmem:[#allocation3 + $0x98] sm:$0xf] }
 0x30a   : > { %9686 = vmatmul.mubr.bf16.gmra.mrb[28].mxu1 %v8608_v52  ;;  %v6328_v52 = vrot.slane %v6327_v56, 4  ;;  %v6362_v21 = vrot.slane %v6361_v53, 4  ;;  %v6310_v56 = vld [vmem:[#allocation3 + $0x74] sm:$0x1] }
 0x30b   : > { %9702 = vmatpush3.bf16.msra.mxu1 %v10352_v43  ;;  %9689 = vmatprep.mubr.bf16.mxu1 %v8609_v25  ;;  %v6378_v43 = vshll.u32 %v6303_v2, 16  ;;  %v6305_v25 = vld [vmem:[#allocation3 + $0x58] sm:$0xf]  ;;  %v6357_v59 = vsel %vm10716_vm5, %v6352_v63, %v11964_v16 }
 0x30c   : > { %9703 = vmatprep.subr.bf16.mxu1 %v10353_v44  ;;  %v6393_v22 = vshrl.u32 %v6305_v25, 16  ;;  %v6333_v8 = vsel %vm10716_vm5, %v6328_v52, %v11955_v30  ;;  %v6408_v30 = vrot.slane %v6406_v17, 4  ;;  %v6436_v52 = vshll.u32 %v6310_v56, 16  ;;  %v12037_v56 = vld [vmem:[#allocation3 + $0x34] sm:$0xf] }
 0x30e   : > { %v6395_v11 = vrot.slane %v6393_v22, 4  ;;  %v6313_v22 = vld [vmem:[#allocation3 + $0x88] sm:$0x1] }
 0x30f   : > { %9704 = vmatpush3.bf16.msra.mxu1 %v10353_v44  ;;  %v6371_v44 = vrot.slane %v6369_v37, 4 }
 0x310   : > { %9705 = vmatprep.subr.bf16.mxu1 %v10354_v12 }
 0x311   : > { %v6375_v60 = vor.u32 %v6374_v38, %v6371_v44  ;;  %v10372_v38 = vld [vmem:[%s12313_s7 + $0x180] sm:$0xff]  }
 0x312   : > { %9690 = vmatmul.mubr.bf16.gmra.mrb[32].mxu1 %v8610_v32  ;;  %v6338_v32 = vrot.slane %v6337_v42, 4  ;;  %v6412_v42 = vshll.u32 %v6307_v57, 16 }
 0x313   : > { %9706 = vmatpush3.bf16.msra.mxu1 %v10354_v12  ;;  %9709 = vmatprep.mubr.bf16.mxu1 %v8635_v10  ;;  %v6308_v12 = vld [vmem:[#allocation3 + $0x6c] sm:$0xf]  ;;  %v6366_v10 = vrot.slane %v6364_v41, 5  ;;  %v6376_v7 = vrot.slane %v6375_v60, 4  ;;  %v6317_v60 = vld [vmem:[#allocation3 + $0xa8] sm:$0xf] }
 0x314   : > { %9707 = vmatprep.subr.bf16.mxu1 %v10355_v51  ;;  %v6417_v46 = vshrl.u32 %v6308_v12, 16  ;;  %v6420_v62 = vshll.u32 %v6308_v12, 16  ;;  %v6343_v14 = vsel %vm10716_vm5, %v6338_v32, %v6342_v54  ;;  %v10371_v41 = vld [vmem:[%s12313_s7 + $0x178] sm:$0xff]   ;;  %v6450_v54 = vshll.u32 %v6312_v39, 16 }
 0x315   : > { %v6367_v35 = vsel %vm10716_vm5, %v6362_v21, %v6366_v10  ;;  %v8667_v2 = vcombine.low %v6333_v8, %v6343_v14  ;;  %v6414_v12 = vrot.slane %v6412_v42, 5  ;;  %v6474_v32 = vshll.u32 %v6315_v9, 16 }
 0x316   : > { %v6419_v50 = vrot.slane %v6417_v46, 4  ;;  %v8668_v37 = vcombine.low %v6357_v59, %v6367_v35  ;;  %v6478_v10 = vshrl.u32 %v6315_v9, 16  ;;  %v6460_v35 = vshll.u32 %v6313_v22, 16  ;;  %v10375_v9 = vld [vmem:[%s12313_s7 + $0x198] sm:$0xff]  }
 0x317   : > { %9708 = vmatpush3.bf16.msra.mxu1 %v10355_v51  ;;  %v11978_v51 = vrot.slane %v6378_v43, 5  ;;  %v12021_v8 = vrot.slane %v6474_v32, 5 }
 0x318   : > { %9725 = vmatprep.subr.bf16.mxu1 %v10358_v6  ;;  %v6480_v14 = vrot.slane %v6478_v10, 4 }
 0x31a   : > { %9710 = vmatmul.mubr.bf16.vlgmr.msra.gmra.mrb[20].mxu1 %v8636_v4  ;;  %v6304_v4 = vld [vmem:[#allocation3 + $0x4c] sm:$0x1] }
 0x31b   : > { %9726 = vmatpush3.bf16.msra.mxu1 %v10358_v6  ;;  %9713 = vmatprep.mubr.bf16.mxu1 %v8637_v49  ;;  %v6384_v6 = vrot.slane %v6382_v1, 4  ;;  %v6402_v49 = vshll.u32 %v6306_v55, 16  ;;  %v6388_v23 = vshll.u32 %v6304_v4, 16  ;;  %v6441_v1 = vshrl.u32 %v6311_v31, 16 }
 0x31c   : > { %9727 = vmatprep.subr.bf16.mxu1 %v10359_v58 }
 0x31d   : > { %v6385_v0 = vor.u32 %v6384_v6, %v11978_v51  ;;  %v11994_v48 = vrot.slane %v6402_v49, 5  ;;  %v6390_v27 = vrot.slane %v6388_v23, 5  ;;  %v6443_v63 = vrot.slane %v6441_v1, 4  ;;  %v6723_v1 = vld [vmem:[#allocation3 + $0x2c] sm:$0x8] }
 0x31f   : > { %9728 = vmatpush3.bf16.msra.mxu1 %v10359_v58  ;;  %v6396_v58 = vshll.u32 %v6305_v25, 16  ;;  %v6386_v16 = vrot.slane %v6385_v0, 4  ;;  %v6454_v25 = vshrl.u32 %v6312_v39, 16  ;;  %v6318_v0 = vld [vmem:[#allocation3 + $0xac] sm:$0xf] }
 0x320   : > { %9729 = vmatprep.subr.bf16.mxu1 %v10362_v24 }
 0x321   : > { %v6398_v36 = vrot.slane %v6396_v58, 5  ;;  %v12013_v58 = vrot.slane %v6450_v54, 5  ;;  %v6456_v49 = vrot.slane %v6454_v25, 4  ;;  %v6762_v54 = vshrl.u32 %v12037_v56, 16 }
 0x322   : > { %9714 = vmatmul.mubr.bf16.gmra.mrb[24].mxu1 %v8638_v18  ;;  %v6422_v18 = vrot.slane %v6420_v62, 5 }
 0x323   : > { %9730 = vmatpush3.bf16.msra.mxu1 %v10362_v24  ;;  %9717 = vmatprep.mubr.bf16.mxu1 %v8639_v29  ;;  %v10370_v24 = vld [vmem:[%s12313_s7 + $0x170] sm:$0xff]   ;;  %v6432_v29 = vrot.slane %v6430_v15, 4  ;;  %v6399_v20 = vor.u32 %v6398_v36, %v6395_v11  ;;  %v6316_v11 = vld [vmem:[#allocation3 + $0x9c] sm:$0x1]  ;;  %v6457_v57 = vor.u32 %v6456_v49, %v12013_v58  ;;  %v6764_v22 = vrot.slane %v6762_v54, 7 }
 0x324   : > { %9731 = vmatprep.subr.bf16.mxu1 %v10363_v45  ;;  %v6423_v43 = vor.u32 %v6422_v18, %v6419_v50  ;;  %v6498_v18 = vshll.u32 %v6318_v0, 16 }
 0x325   : > { %v6433_v53 = vor.u32 %v6432_v29, %v11998_v13  ;;  %v6400_v55 = vrot.slane %v6399_v20, 4  ;;  %v6484_v29 = vshll.u32 %v6316_v11, 16  ;;  %v10377_v11 = vld [vmem:[%s12313_s7 + $0x1a8] sm:$0xff]  }
 0x326   : > { %v6424_v26 = vrot.slane %v6423_v43, 4 }
 0x327   : > { %9732 = vmatpush3.bf16.msra.mxu1 %v10363_v45  ;;  %v8642_v45 = vcombine.low %v11903_v19, %v11905_v47  ;;  %v6314_v19 = vld [vmem:[#allocation3 + $0x94] sm:$0xf]  ;;  %v6409_v47 = vor.u32 %v6408_v30, %v11994_v48  ;;  %v6434_v4 = vrot.slane %v6433_v53, 4  ;;  %v6405_v15 = vsel %vm10716_vm5, %v6400_v55, %v11994_v48  ;;  %v12053_v55 = vld [vmem:[#allocation3 + $0x48] sm:$0xf] }
 0x328   : > { %9733 = vmatprep.subr.bf16.mxu1 %v10366_v34  ;;  %v6468_v44 = vshll.u32 %v6314_v19, 16  ;;  %v6489_v48 = vshrl.u32 %v6317_v60, 16  ;;  %v6492_v30 = vshll.u32 %v6317_v60, 16 }
 0x329   : > { %v6410_v6 = vrot.slane %v6409_v47, 4  ;;  %v12039_v47 = vrot.slane %v6498_v18, 5 }
 0x32a   : > { %9718 = vmatmul.mubr.bf16.gmra.mrb[28].mxu1 %v8640_v3  ;;  %v6381_v3 = vsel %vm10716_vm5, %v6376_v7, %v11978_v51  ;;  %v6438_v51 = vrot.slane %v6436_v52, 5  ;;  %v6470_v62 = vrot.slane %v6468_v44, 5  ;;  %v10374_v7 = vld [vmem:[%s12313_s7 + $0x190] sm:$0xff]   ;;  %v6491_v20 = vrot.slane %v6489_v48, 4 }
 0x32b   : > { %9734 = vmatpush3.bf16.msra.mxu1 %v10366_v34  ;;  %9721 = vmatprep.mubr.bf16.mxu1 %v8641_v40  ;;  %v6444_v34 = vshll.u32 %v6311_v31, 16  ;;  %v6465_v40 = vshrl.u32 %v6314_v19, 16  ;;  %v6415_v23 = vsel %vm10716_vm5, %v6410_v6, %v6414_v12  ;;  %v12035_v31 = vld [vmem:[#allocation3 + $0x30] sm:$0xf]  ;;  %v6494_v42 = vrot.slane %v6492_v30, 5 }
 0x32c   : > { %9735 = vmatprep.subr.bf16.mxu1 %v10367_v5  ;;  %v6439_v36 = vsel %vm10716_vm5, %v6434_v4, %v6438_v51  ;;  %v6486_v52 = vrot.slane %v6484_v29, 5  ;;  %v12055_v12 = vld [vmem:[#allocation3 + $0x58] sm:$0xf]  ;;  %v10376_v4 = vld [vmem:[%s12313_s7 + $0x1a0] sm:$0xff]   ;;  %v6787_v30 = vshll.u32 %v12053_v55, 16 }
 0x32d   : > { %v6446_v21 = vrot.slane %v6444_v34, 5  ;;  %v6467_v46 = vrot.slane %v6465_v40, 4  ;;  %v6753_v34 = vshrl.u32 %v12035_v31, 16  ;;  %v6495_v44 = vor.u32 %v6494_v42, %v6491_v20 }
 0x32e   : > { %v6797_v60 = vshrl.u32 %v12055_v12, 16 }
 0x32f   : > { %9736 = vmatpush3.bf16.msra.mxu1 %v10367_v5  ;;  %v6391_v5 = vsel %vm10716_vm5, %v6386_v16, %v6390_v27  ;;  %v6447_v59 = vor.u32 %v6446_v21, %v6443_v63  ;;  %v6471_v50 = vor.u32 %v6470_v62, %v6467_v46  ;;  %v6462_v27 = vrot.slane %v6460_v35, 5  ;;  %v6726_v63 = vld [vmem:[#allocation3 + $0x40] sm:$0x8]  ;;  %v12062_v21 = vld [vmem:[#allocation3 + $0x5c] sm:$0xf] }
 0x330   : > { %9737 = vmatprep.subr.bf16.mxu1 %v10370_v24  ;;  %v8669_v17 = vcombine.low %v6381_v3, %v6391_v5  ;;  %v12046_v3 = vld [vmem:[#allocation3 + $0x44] sm:$0xf]  ;;  %v6755_v6 = vrot.slane %v6753_v34, 7  ;;  %v6784_v62 = vshrl.u32 %v12053_v55, 16  ;;  %v6809_v29 = vshll.u32 %v12062_v21, 16 }
 0x331   : > { %v6448_v39 = vrot.slane %v6447_v59, 4  ;;  %v6472_v19 = vrot.slane %v6471_v50, 4  ;;  %v6775_v49 = vshrl.u32 %v12046_v3, 16  ;;  %v6778_v48 = vshll.u32 %v12046_v3, 16 }
 0x332   : > { %9722 = vmatmul.mubr.bf16.gmra.mrb[32].mxu1 %v8642_v45  ;;  %v6502_v45 = vshrl.u32 %v6318_v0, 16  ;;  %v6806_v0 = vshrl.u32 %v12062_v21, 16  ;;  %v6760_v35 = vrot.slane %v6755_v6, 4  ;;  %v6786_v50 = vrot.slane %v6784_v62, 7 }
 0x333   : > { %9738 = vmatpush3.bf16.msra.mxu1 %v10370_v24  ;;  %9741 = vmatprep.mubr.bf16.mxu1 %v8667_v2  ;;  %v6429_v24 = vsel %vm10716_vm5, %v6424_v26, %v11998_v13  ;;  %v6481_v13 = vor.u32 %v6480_v14, %v12021_v8  ;;  %v8670_v2 = vcombine.low %v6405_v15, %v6415_v23  ;;  %v6756_v26 = vshll.u32 %v12035_v31, 16  ;;  %v6729_v14 = vld [vmem:[#allocation3 + $0x54] sm:$0x8] }
 0x334   : > { %9739 = vmatprep.subr.bf16.mxu1 %v10371_v41  ;;  %v8671_v16 = vcombine.low %v6429_v24, %v6439_v36  ;;  %v6504_v43 = vrot.slane %v6502_v45, 4  ;;  %v6453_v5 = vsel %vm10716_vm5, %v6448_v39, %v12013_v58  ;;  %v6477_v32 = vsel %vm10716_vm5, %v6472_v19, %v12021_v8 }
 0x335   : > { %v6482_v53 = vrot.slane %v6481_v13, 4  ;;  %v6765_v58 = vshll.u32 %v12037_v56, 16  ;;  %v6770_v8 = vshrl.u32 %v6726_v63, 16  ;;  %v6758_v59 = vor.u32 %v6756_v26, %v6755_v6  ;;  %v10379_v26 = vld [vmem:[%s12313_s7 + $0x1b8] sm:$0xff]  }
 0x336   : > { %v6505_v10 = vor.u32 %v6504_v43, %v12039_v47  ;;  %v6792_v18 = vshrl.u32 %v6729_v14, 16  ;;  %v6799_v45 = vrot.slane %v6797_v60, 7  ;;  %v6808_v13 = vrot.slane %v6806_v0, 7 }
 0x337   : > { %9740 = vmatpush3.bf16.msra.mxu1 %v10371_v41  ;;  %v6458_v41 = vrot.slane %v6457_v57, 4  ;;  %v6487_v51 = vsel %vm10716_vm5, %v6482_v53, %v6486_v52  ;;  %v6767_v36 = vor.u32 %v6765_v58, %v6764_v22  ;;  %v6777_v57 = vrot.slane %v6775_v49, 7  ;;  %v6732_v52 = vld [vmem:[#allocation3 + $0x68] sm:$0x8] }
 0x338   : > { %9757 = vmatprep.subr.bf16.mxu1 %v10372_v38  ;;  %v8673_v23 = vcombine.low %v6477_v32, %v6487_v51  ;;  %v6506_v24 = vrot.slane %v6505_v10, 4  ;;  %v8684_v39 = vrot.slane %v6770_v8, 11  ;;  %v6789_v34 = vor.u32 %v6787_v30, %v6786_v50  ;;  %v6735_v32 = vld [vmem:[#allocation3 + $0x7c] sm:$0x8] }
 0x339   : > { %v6463_v40 = vsel %vm10716_vm5, %v6458_v41, %v6462_v27  ;;  %v12088_v41 = vld [vmem:[#allocation3 + $0x70] sm:$0xf]  ;;  %v6768_v42 = vsel %vm10616_vm2, %v6760_v35, %v6767_v36  ;;  %v6780_v19 = vor.u32 %v6778_v48, %v6777_v57  ;;  %v6782_v43 = vrot.slane %v6777_v57, 4  ;;  %v12127_v57 = vld [vmem:[#allocation3 + $0xa8] sm:$0xf] }
 0x33a   : > { %9742 = vmatmul.mubr.bf16.vlgmr.msra.gmra.mrb[20].mxu1 %v8668_v37  ;;  %v6319_v37 = vld [vmem:[#allocation3 + $0xb0] sm:$0x1]  ;;  %v6831_v62 = vshll.u32 %v12088_v41, 16  ;;  %v6836_v60 = vshrl.u32 %v6735_v32, 16  ;;  %v12129_v48 = vld [vmem:[#allocation3 + $0xac] sm:$0xf] }
 0x33b   : > { %9758 = vmatpush3.bf16.msra.mxu1 %v10372_v38  ;;  %9745 = vmatprep.mubr.bf16.mxu1 %v8669_v17  ;;  %v6508_v25 = vshll.u32 %v6319_v37, 16  ;;  %v6748_v38 = vshrl.u32 %v6723_v1, 16  ;;  %v8672_v17 = vcombine.low %v6453_v5, %v6463_v40  ;;  %v10378_v37 = vld [vmem:[%s12313_s7 + $0x1b0] sm:$0xff]   ;;  %v6804_v5 = vrot.slane %v6799_v45, 4 }
 0x33c   : > { %9759 = vmatprep.subr.bf16.mxu1 %v10373_v61  ;;  %v12099_v1 = vld [vmem:[#allocation3 + $0x84] sm:$0xf]  ;;  %v6811_v40 = vor.u32 %v6809_v29, %v6808_v13  ;;  %v6781_v63 = vsel %vm10616_vm2, %v8684_v39, %v6780_v19  ;;  %v6790_v51 = vsel %vm10616_vm2, %v6782_v43, %v6789_v34  ;;  %v8687_v50 = vrot.slane %v6836_v60, 11  ;;  %v10381_v39 = vld [vmem:[%s12313_s7 + $0x1c8] sm:$0xff]  }
 0x33d   : > { %v6510_v46 = vrot.slane %v6508_v25, 5  ;;  %v8683_v15 = vrot.slane %v6748_v38, 11  ;;  %v6850_v6 = vshrl.u32 %v12099_v1, 16  ;;  %v6853_v0 = vshll.u32 %v12099_v1, 16 }
 0x33f   : > { %9760 = vmatpush3.bf16.msra.mxu1 %v10373_v61  ;;  %v6496_v61 = vrot.slane %v6495_v44, 4  ;;  %v6511_v27 = vsel %vm10716_vm5, %v6506_v24, %v6510_v46  ;;  %v6759_v20 = vsel %vm10616_vm2, %v8683_v15, %v6758_v59  ;;  %v6828_v44 = vshrl.u32 %v12088_v41, 16  ;;  %v10380_v24 = vld [vmem:[%s12313_s7 + $0x1c0] sm:$0xff]  }
 0x340   : > { %9761 = vmatprep.subr.bf16.mxu1 %v10374_v7  ;;  %v8707_v38 = vcombine.low %v6759_v20, %v6768_v42  ;;  %v6852_v14 = vrot.slane %v6850_v6, 7  ;;  %v8708_v59 = vcombine.low %v6781_v63, %v6790_v51  ;;  %v6885_v20 = vshrl.u32 %v12127_v57, 16  ;;  %v12155_v63 = vld [vmem:[#allocation3 + $0xc0] sm:$0xf] }
 0x341   : > { %v6830_v46 = vrot.slane %v6828_v44, 7  ;;  %v6894_v42 = vshrl.u32 %v12129_v48, 16  ;;  %v6916_v60 = vshrl.u32 %v12155_v63, 16 }
 0x342   : > { %9746 = vmatmul.mubr.bf16.gmra.mrb[24].mxu1 %v8670_v2  ;;  %v12081_v2 = vld [vmem:[#allocation3 + $0x6c] sm:$0xf]  ;;  %v6887_v32 = vrot.slane %v6885_v20, 7 }
 0x343   : > { %9762 = vmatpush3.bf16.msra.mxu1 %v10374_v7  ;;  %9749 = vmatprep.mubr.bf16.mxu1 %v8671_v16  ;;  %v6800_v7 = vshll.u32 %v12055_v12, 16  ;;  %v6501_v16 = vsel %vm10716_vm5, %v6496_v61, %v12039_v47  ;;  %v12097_v47 = vld [vmem:[#allocation3 + $0x80] sm:$0xf]  ;;  %v6819_v54 = vshrl.u32 %v12081_v2, 16  ;;  %v6822_v49 = vshll.u32 %v12081_v2, 16 }
 0x344   : > { %9763 = vmatprep.subr.bf16.mxu1 %v10375_v9  ;;  %v8674_v25 = vcombine.low %v6501_v16, %v6511_v27  ;;  %v6841_v10 = vshrl.u32 %v12097_v47, 16  ;;  %v12118_v61 = vld [vmem:[#allocation3 + $0x94] sm:$0xf]  ;;  %v6844_v8 = vshll.u32 %v12097_v47, 16  ;;  %v6833_v13 = vor.u32 %v6831_v62, %v6830_v46  ;;  %v6744_v46 = vld [vmem:[#allocation3 + $0xb8] sm:$0x8] }
 0x345   : > { %v6802_v53 = vor.u32 %v6800_v7, %v6799_v45  ;;  %v6821_v58 = vrot.slane %v6819_v54, 7  ;;  %v6863_v45 = vshrl.u32 %v12118_v61, 16  ;;  %v6855_v27 = vor.u32 %v6853_v0, %v6852_v14 }
 0x346   : > { %v6843_v15 = vrot.slane %v6841_v10, 7  ;;  %v6888_v10 = vshll.u32 %v12127_v57, 16  ;;  %v6896_v6 = vrot.slane %v6894_v42, 7  ;;  %v6892_v0 = vrot.slane %v6887_v32, 4  ;;  %v10385_v42 = vld [vmem:[%s12313_s7 + $0x1e8] sm:$0xff]  }
 0x347   : > { %9764 = vmatpush3.bf16.msra.mxu1 %v10375_v9  ;;  %v8685_v9 = vrot.slane %v6792_v18, 11  ;;  %v6826_v36 = vrot.slane %v6821_v58, 4  ;;  %v6738_v18 = vld [vmem:[#allocation3 + $0x90] sm:$0x8]  ;;  %v6865_v34 = vrot.slane %v6863_v45, 7 }
 0x348   : > { %9765 = vmatprep.subr.bf16.mxu1 %v10376_v4  ;;  %v6846_v29 = vor.u32 %v6844_v8, %v6843_v15  ;;  %v6848_v16 = vrot.slane %v6843_v15, 4  ;;  %v6858_v43 = vshrl.u32 %v6738_v18, 16  ;;  %v10383_v15 = vld [vmem:[%s12313_s7 + $0x1d8] sm:$0xff]   ;;  %v6890_v14 = vor.u32 %v6888_v10, %v6887_v32  ;;  %v10384_v45 = vld [vmem:[%s12313_s7 + $0x1e0] sm:$0xff]   ;;  %v7362_v32 = vld [vmem:[#allocation3 + $0x44] sm:$0xf] }
 0x349   : > { %v6803_v22 = vsel %vm10616_vm2, %v8685_v9, %v6802_v53  ;;  %v6866_v9 = vshll.u32 %v12118_v61, 16  ;;  %v6834_v54 = vsel %vm10616_vm2, %v6826_v36, %v6833_v13  ;;  %v6919_v18 = vshll.u32 %v12155_v63, 16  ;;  %v7363_v10 = vld [vmem:[#allocation3 + $0x48] sm:$0xf] }
 0x34a   : > { %9750 = vmatmul.mubr.bf16.gmra.mrb[28].mxu1 %v8672_v17  ;;  %v6812_v17 = vsel %vm10616_vm2, %v6804_v5, %v6811_v40  ;;  %v6847_v5 = vsel %vm10616_vm2, %v8687_v50, %v6846_v29  ;;  %v6856_v40 = vsel %vm10616_vm2, %v6848_v16, %v6855_v27  ;;  %v6918_v50 = vrot.slane %v6916_v60, 7 }
 0x34b   : > { %9766 = vmatpush3.bf16.msra.mxu1 %v10376_v4  ;;  %9753 = vmatprep.mubr.bf16.mxu1 %v8673_v23  ;;  %v6814_v4 = vshrl.u32 %v6732_v52, 16  ;;  %v12122_v23 = vld [vmem:[#allocation3 + $0x98] sm:$0xf]  ;;  %v8709_v30 = vcombine.low %v6803_v22, %v6812_v17  ;;  %v6868_v22 = vor.u32 %v6866_v9, %v6865_v34  ;;  %v8711_v17 = vcombine.low %v6847_v5, %v6856_v40 }
 0x34c   : > { %9767 = vmatprep.subr.bf16.mxu1 %v10377_v11  ;;  %v6872_v7 = vshrl.u32 %v12122_v23, 16  ;;  %v6875_v52 = vshll.u32 %v12122_v23, 16  ;;  %v6921_v20 = vor.u32 %v6919_v18, %v6918_v50  ;;  %v10391_v5 = vld [vmem:[%s12313_s7 + $0x208] sm:$0xff]   ;;  %v10398_v50 = vld [vmem:[%s12313_s7 + $0x220] sm:$0xff]  }
 0x34d   : > { %v8686_v35 = vrot.slane %v6814_v4, 11  ;;  %v8688_v4 = vrot.slane %v6858_v43, 11 }
 0x34e   : > { %v6874_v53 = vrot.slane %v6872_v7, 7 }
 0x34f   : > { %9768 = vmatpush3.bf16.msra.mxu1 %v10377_v11  ;;  %v6824_v11 = vor.u32 %v6822_v49, %v6821_v58  ;;  %v6870_v58 = vrot.slane %v6865_v34, 4  ;;  %v10386_v34 = vld [vmem:[%s12313_s7 + $0x1f0] sm:$0xff]  }
 0x350   : > { %9769 = vmatprep.subr.bf16.mxu1 %v10378_v37  ;;  %v6877_v49 = vor.u32 %v6875_v52, %v6874_v53  ;;  %v8739_v53 = vcombine.low %v12035_v31, %v12037_v56  ;;  %v10387_v52 = vld [vmem:[%s12313_s7 + $0x1f8] sm:$0xff]   ;;  %v8741_v31 = vcombine.low %v12055_v12, %v12062_v21  ;;  %v7360_v56 = vld [vmem:[#allocation3 + $0x34] sm:$0xf]  ;;  %v10394_v12 = vld [vmem:[%s12313_s7 + $0x210] sm:$0xff]  }
 0x351   : > { %v6825_v19 = vsel %vm10616_vm2, %v8686_v35, %v6824_v11  ;;  %v6902_v11 = vshrl.u32 %v6744_v46, 16  ;;  %v8743_v46 = vcombine.low %v12097_v47, %v12099_v1 }
 0x352   : > { %9754 = vmatmul.mubr.bf16.gmra.mrb[32].mxu1 %v8674_v25  ;;  %v10382_v25 = vld [vmem:[%s12313_s7 + $0x1d0] sm:$0xff]   ;;  %v8710_v51 = vcombine.low %v6825_v19, %v6834_v54  ;;  %v6878_v35 = vsel %vm10616_vm2, %v6870_v58, %v6877_v49  ;;  %v7359_v54 = vld [vmem:[#allocation3 + $0x30] sm:$0xf]  ;;  %v8742_v58 = vcombine.low %v12081_v2, %v12088_v41  ;;  %v7366_v41 = vld [vmem:[#allocation3 + $0x5c] sm:$0xf] }
 0x353   : > { %9770 = vmatpush3.bf16.msra.mxu1 %v10378_v37  ;;  %9773 = vmatprep.mubr.bf16.mxu1 %v8707_v38  ;;  %v6741_v37 = vld [vmem:[#allocation3 + $0xa4] sm:$0x8]  ;;  %v12151_v38 = vld [vmem:[#allocation3 + $0xbc] sm:$0xf]  ;;  %v8690_v16 = vrot.slane %v6902_v11, 11  ;;  %v7384_v40 = vshrl.u32 %v7359_v54, 16 }
 0x354   : > { %9771 = vmatprep.subr.bf16.mxu1 %v10379_v26  ;;  %v6880_v44 = vshrl.u32 %v6741_v37, 16  ;;  %v6907_v62 = vshrl.u32 %v12151_v38, 16 }
 0x355   : > { %v7386_v21 = vrot.slane %v7384_v40, 4 }
 0x356   : > { %v8689_v8 = vrot.slane %v6880_v44, 11  ;;  %v6909_v36 = vrot.slane %v6907_v62, 7  ;;  %v7387_v44 = vshll.u32 %v7359_v54, 16  ;;  %v7361_v62 = vld [vmem:[#allocation3 + $0x38] sm:$0x1] }
 0x357   : > { %9772 = vmatpush3.bf16.msra.mxu1 %v10379_v26  ;;  %v6897_v26 = vshll.u32 %v12129_v48, 16  ;;  %v7403_v11 = vshll.u32 %v7361_v62, 16 }
 0x358   : > { %9789 = vmatprep.subr.bf16.mxu1 %v10380_v24  ;;  %v6891_v7 = vsel %vm10616_vm2, %v8689_v8, %v6890_v14  ;;  %v6914_v37 = vrot.slane %v6909_v36, 4  ;;  %v10395_v8 = vld [vmem:[%s12313_s7 + $0x218] sm:$0xff]  }
 0x35a   : > { %9774 = vmatmul.mubr.bf16.vlgmr.msra.gmra.mrb[20].mxu1 %v8708_v59  ;;  %v6869_v59 = vsel %vm10616_vm2, %v8688_v4, %v6868_v22  ;;  %v6922_v43 = vsel %vm10616_vm2, %v6914_v37, %v6921_v20  ;;  %v7389_v4 = vrot.slane %v7387_v44, 5  ;;  %v7421_v22 = vshrl.u32 %v7363_v10, 16 }
 0x35b   : > { %9790 = vmatpush3.bf16.msra.mxu1 %v10380_v24  ;;  %9777 = vmatprep.mubr.bf16.mxu1 %v8709_v30  ;;  %v6899_v24 = vor.u32 %v6897_v26, %v6896_v6  ;;  %v6910_v30 = vshll.u32 %v12151_v38, 16  ;;  %v8712_v29 = vcombine.low %v6869_v59, %v6878_v35  ;;  %v7393_v6 = vshll.u32 %v7360_v56, 16  ;;  %v7364_v59 = vld [vmem:[#allocation3 + $0x4c] sm:$0x1] }
 0x35c   : > { %9791 = vmatprep.subr.bf16.mxu1 %v10381_v39  ;;  %v7397_v26 = vshrl.u32 %v7360_v56, 16  ;;  %v7390_v14 = vor.u32 %v7389_v4, %v7386_v21  ;;  %v7423_v2 = vrot.slane %v7421_v22, 4  ;;  %v7405_v20 = vrot.slane %v7403_v11, 5  ;;  %v10402_v4 = vld [vmem:[%s12313_s7 + $0x230] sm:$0xff]  }
 0x35d   : > { %v6900_v13 = vsel %vm10616_vm2, %v6892_v0, %v6899_v24  ;;  %v12205_v49 = vrot.slane %v7393_v6, 5  ;;  %v8746_v21 = vcombine.low %v12151_v38, %v12155_v63 }
 0x35e   : > { %v8713_v27 = vcombine.low %v6891_v7, %v6900_v13  ;;  %v7391_v18 = vrot.slane %v7390_v14, 4  ;;  %v7427_v13 = vshll.u32 %v7364_v59, 16  ;;  %v7374_v14 = vld [vmem:[#allocation3 + $0x94] sm:$0xf]  ;;  %v7375_v59 = vld [vmem:[#allocation3 + $0x98] sm:$0xf] }
 0x35f   : > { %9792 = vmatpush3.bf16.msra.mxu1 %v10381_v39  ;;  %v6912_v39 = vor.u32 %v6910_v30, %v6909_v36  ;;  %v7441_v36 = vshll.u32 %v7366_v41, 16  ;;  %v7445_v30 = vshrl.u32 %v7366_v41, 16 }
 0x360   : > { %9793 = vmatprep.subr.bf16.mxu1 %v10382_v25  ;;  %v7429_v54 = vrot.slane %v7427_v13, 5  ;;  %v7513_v13 = vshll.u32 %v7375_v59, 16 }
 0x361   : > { %v6913_v19 = vsel %vm10616_vm2, %v8690_v16, %v6912_v39  ;;  %v8744_v16 = vcombine.low %v12118_v61, %v12122_v23  ;;  %v7369_v39 = vld [vmem:[#allocation3 + $0x70] sm:$0xf]  ;;  %v10399_v61 = vld [vmem:[%s12313_s7 + $0x228] sm:$0xff]   ;;  %v7396_v23 = vsel %vm10716_vm5, %v7391_v18, %v12205_v49  ;;  %v7378_v18 = vld [vmem:[#allocation3 + $0xac] sm:$0xf] }
 0x362   : > { %9778 = vmatmul.mubr.bf16.gmra.mrb[24].mxu1 %v8710_v51  ;;  %v8714_v9 = vcombine.low %v6913_v19, %v6922_v43  ;;  %v7417_v51 = vshll.u32 %v7363_v10, 16  ;;  %v7371_v43 = vld [vmem:[#allocation3 + $0x80] sm:$0xf]  ;;  %v7469_v56 = vshrl.u32 %v7369_v39, 16 }
 0x363   : > { %9794 = vmatpush3.bf16.msra.mxu1 %v10382_v25  ;;  %9781 = vmatprep.mubr.bf16.mxu1 %v8711_v17  ;;  %v8740_v25 = vcombine.low %v12046_v3, %v12053_v55  ;;  %v7408_v3 = vshrl.u32 %v7362_v32, 16  ;;  %v7411_v55 = vshll.u32 %v7362_v32, 16  ;;  %v7399_v17 = vrot.slane %v7397_v26, 4 }
 0x364   : > { %9795 = vmatprep.subr.bf16.mxu1 %v10383_v15  ;;  %v12212_v24 = vrot.slane %v7417_v51, 5  ;;  %v7483_v40 = vshll.u32 %v7371_v43, 16 }
 0x365   : > { %v7410_v60 = vrot.slane %v7408_v3, 4  ;;  %v7413_v0 = vrot.slane %v7411_v55, 5  ;;  %v7400_v35 = vor.u32 %v7399_v17, %v12205_v49  ;;  %v7471_v17 = vrot.slane %v7469_v56, 4 }
 0x366   : > { %v7424_v7 = vor.u32 %v7423_v2, %v12212_v24 }
 0x367   : > { %9796 = vmatpush3.bf16.msra.mxu1 %v10383_v15  ;;  %v7365_v15 = vld [vmem:[#allocation3 + $0x58] sm:$0xf]  ;;  %v7401_v37 = vrot.slane %v7400_v35, 4  ;;  %v10403_v35 = vld [vmem:[%s12313_s7 + $0x238] sm:$0xff]  }
 0x368   : > { %9797 = vmatprep.subr.bf16.mxu1 %v10384_v45  ;;  %v7432_v47 = vshrl.u32 %v7365_v15, 16  ;;  %v7435_v1 = vshll.u32 %v7365_v15, 16 }
 0x369   : > { %v7406_v44 = vsel %vm10716_vm5, %v7401_v37, %v7405_v20 }
 0x36a   : > { %9782 = vmatmul.mubr.bf16.gmra.mrb[28].mxu1 %v8712_v29  ;;  %v7368_v29 = vld [vmem:[#allocation3 + $0x6c] sm:$0xf]  ;;  %v7437_v19 = vrot.slane %v7435_v1, 5  ;;  %v8771_v15 = vcombine.low %v7396_v23, %v7406_v44  ;;  %v7376_v23 = vld [vmem:[#allocation3 + $0x9c] sm:$0x1] }
 0x36b   : > { %9798 = vmatpush3.bf16.msra.mxu1 %v10384_v45  ;;  %9785 = vmatprep.mubr.bf16.mxu1 %v8713_v27  ;;  %v7414_v45 = vor.u32 %v7413_v0, %v7410_v60  ;;  %v8745_v27 = vcombine.low %v12127_v57, %v12129_v48  ;;  %v7425_v48 = vrot.slane %v7424_v7, 4  ;;  %v7485_v60 = vrot.slane %v7483_v40, 5  ;;  %v7381_v44 = vld [vmem:[#allocation3 + $0xc0] sm:$0xf] }
 0x36c   : > { %9799 = vmatprep.subr.bf16.mxu1 %v10385_v42  ;;  %v7507_v7 = vshll.u32 %v7374_v14, 16 }
 0x36d   : > { %v7415_v57 = vrot.slane %v7414_v45, 4  ;;  %v7430_v22 = vsel %vm10716_vm5, %v7425_v48, %v7429_v54  ;;  %v7515_v48 = vrot.slane %v7513_v13, 5 }
 0x36f   : > { %9800 = vmatpush3.bf16.msra.mxu1 %v10385_v42  ;;  %v7434_v42 = vrot.slane %v7432_v47, 4  ;;  %v7420_v51 = vsel %vm10716_vm5, %v7415_v57, %v12212_v24  ;;  %v7509_v57 = vrot.slane %v7507_v7, 5 }
 0x370   : > { %9801 = vmatprep.subr.bf16.mxu1 %v10386_v34  ;;  %v8772_v11 = vcombine.low %v7420_v51, %v7430_v22  ;;  %v7561_v22 = vshll.u32 %v7381_v44, 16 }
 0x371   : > { %v7438_v32 = vor.u32 %v7437_v19, %v7434_v42  ;;  %v7537_v19 = vshll.u32 %v7378_v18, 16 }
 0x372   : > { %9786 = vmatmul.mubr.bf16.gmra.mrb[32].mxu1 %v8714_v9  ;;  %v7447_v9 = vrot.slane %v7445_v30, 4  ;;  %v7504_v30 = vshrl.u32 %v7374_v14, 16 }
 0x373   : > { %9802 = vmatpush3.bf16.msra.mxu1 %v10386_v34  ;;  %9805 = vmatprep.mubr.bf16.mxu1 %v8739_v53  ;;  %v12223_v34 = vrot.slane %v7441_v36, 5  ;;  %v7456_v53 = vshrl.u32 %v7368_v29, 16  ;;  %v7439_v38 = vrot.slane %v7438_v32, 4 }
 0x374   : > { %9803 = vmatprep.subr.bf16.mxu1 %v10387_v52 }
 0x375   : > { %v7448_v26 = vor.u32 %v7447_v9, %v12223_v34  ;;  %v7458_v55 = vrot.slane %v7456_v53, 4 }
 0x377   : > { %9804 = vmatpush3.bf16.msra.mxu1 %v10387_v52  ;;  %v7459_v52 = vshll.u32 %v7368_v29, 16  ;;  %v7449_v0 = vrot.slane %v7448_v26, 4  ;;  %v7517_v29 = vshrl.u32 %v7375_v59, 16  ;;  %v7379_v26 = vld [vmem:[#allocation3 + $0xb0] sm:$0x1] }
 0x378   : > { %9821 = vmatprep.subr.bf16.mxu1 %v10390_v33 }
 0x379   : > { %v7519_v54 = vrot.slane %v7517_v29, 4 }
 0x37a   : > { %9806 = vmatmul.mubr.bf16.vlgmr.msra.gmra.mrb[20].mxu1 %v8740_v25  ;;  %v7367_v25 = vld [vmem:[#allocation3 + $0x60] sm:$0x1] }
 0x37b   : > { %9822 = vmatpush3.bf16.msra.mxu1 %v10390_v33  ;;  %9809 = vmatprep.mubr.bf16.mxu1 %v8741_v31  ;;  %v7372_v33 = vld [vmem:[#allocation3 + $0x84] sm:$0xf]  ;;  %v7465_v31 = vshll.u32 %v7369_v39, 16  ;;  %v7451_v3 = vshll.u32 %v7367_v25, 16  ;;  %v7380_v25 = vld [vmem:[#allocation3 + $0xbc] sm:$0xf] }
 0x37c   : > { %9823 = vmatprep.subr.bf16.mxu1 %v10391_v5  ;;  %v7489_v10 = vshll.u32 %v7372_v33, 16  ;;  %v7493_v6 = vshrl.u32 %v7372_v33, 16  ;;  %v7506_v33 = vrot.slane %v7504_v30, 4  ;;  %v7555_v51 = vshll.u32 %v7380_v25, 16 }
 0x37d   : > { %v12244_v49 = vrot.slane %v7465_v31, 5  ;;  %v7453_v2 = vrot.slane %v7451_v3, 5 }
 0x37e   : > { %v12246_v63 = vrot.slane %v7489_v10, 5 }
 0x37f   : > { %9824 = vmatpush3.bf16.msra.mxu1 %v10391_v5  ;;  %v7480_v5 = vshrl.u32 %v7371_v43, 16  ;;  %v7472_v47 = vor.u32 %v7471_v17, %v12244_v49  ;;  %v7541_v43 = vshrl.u32 %v7378_v18, 16 }
 0x380   : > { %9825 = vmatprep.subr.bf16.mxu1 %v10394_v12 }
 0x381   : > { %v7482_v62 = vrot.slane %v7480_v5, 4  ;;  %v7473_v9 = vrot.slane %v7472_v47, 4  ;;  %v7539_v5 = vrot.slane %v7537_v19, 5  ;;  %v7543_v40 = vrot.slane %v7541_v43, 4 }
 0x382   : > { %9810 = vmatmul.mubr.bf16.gmra.mrb[24].mxu1 %v8742_v58  ;;  %v7370_v58 = vld [vmem:[#allocation3 + $0x74] sm:$0x1] }
 0x383   : > { %9826 = vmatpush3.bf16.msra.mxu1 %v10394_v12  ;;  %9813 = vmatprep.mubr.bf16.mxu1 %v8743_v46  ;;  %v7461_v12 = vrot.slane %v7459_v52, 5  ;;  %v7373_v46 = vld [vmem:[#allocation3 + $0x88] sm:$0x1]  ;;  %v7475_v41 = vshll.u32 %v7370_v58, 16  ;;  %v7486_v1 = vor.u32 %v7485_v60, %v7482_v62  ;;  %v7565_v58 = vshrl.u32 %v7381_v44, 16 }
 0x384   : > { %9827 = vmatprep.subr.bf16.mxu1 %v10395_v8  ;;  %v7499_v36 = vshll.u32 %v7373_v46, 16  ;;  %v7544_v17 = vor.u32 %v7543_v40, %v7539_v5  ;;  %v7547_v46 = vshll.u32 %v7379_v26, 16 }
 0x385   : > { %v7462_v24 = vor.u32 %v7461_v12, %v7458_v55  ;;  %v7477_v37 = vrot.slane %v7475_v41, 5  ;;  %v7487_v53 = vrot.slane %v7486_v1, 4  ;;  %v7510_v12 = vor.u32 %v7509_v57, %v7506_v33 }
 0x386   : > { %v7501_v52 = vrot.slane %v7499_v36, 5  ;;  %v7545_v41 = vrot.slane %v7544_v17, 4  ;;  %v7549_v59 = vrot.slane %v7547_v46, 5 }
 0x387   : > { %9828 = vmatpush3.bf16.msra.mxu1 %v10395_v8  ;;  %v7495_v8 = vrot.slane %v7493_v6, 4  ;;  %v7463_v39 = vrot.slane %v7462_v24, 4  ;;  %v7478_v10 = vsel %vm10716_vm5, %v7473_v9, %v7477_v37  ;;  %v7523_v6 = vshll.u32 %v7376_v23, 16 }
 0x388   : > { %9829 = vmatprep.subr.bf16.mxu1 %v10398_v50  ;;  %v7492_v3 = vsel %vm10716_vm5, %v7487_v53, %v12246_v63  ;;  %v7550_v18 = vsel %vm10716_vm5, %v7545_v41, %v7549_v59 }
 0x389   : > { %v7496_v45 = vor.u32 %v7495_v8, %v12246_v63  ;;  %v7468_v32 = vsel %vm10716_vm5, %v7463_v39, %v12244_v49  ;;  %v7525_v8 = vrot.slane %v7523_v6, 5  ;;  %v7557_v63 = vrot.slane %v7555_v51, 5 }
 0x38a   : > { %9814 = vmatmul.mubr.bf16.gmra.mrb[28].mxu1 %v8744_v16  ;;  %v7444_v16 = vsel %vm10716_vm5, %v7439_v38, %v12223_v34  ;;  %v8774_v62 = vcombine.low %v7468_v32, %v7478_v10 }
 0x38b   : > { %9830 = vmatpush3.bf16.msra.mxu1 %v10398_v50  ;;  %9817 = vmatprep.mubr.bf16.mxu1 %v8745_v27  ;;  %v7377_v50 = vld [vmem:[#allocation3 + $0xa8] sm:$0xf]  ;;  %v7454_v27 = vsel %vm10716_vm5, %v7449_v0, %v7453_v2  ;;  %v7563_v0 = vrot.slane %v7561_v22, 5  ;;  %v7567_v2 = vrot.slane %v7565_v58, 4 }
 0x38c   : > { %9831 = vmatprep.subr.bf16.mxu1 %v10399_v61  ;;  %v7528_v20 = vshrl.u32 %v7377_v50, 16  ;;  %v7531_v42 = vshll.u32 %v7377_v50, 16  ;;  %v8773_v34 = vcombine.low %v7444_v16, %v7454_v27 }
 0x38d   : > { %v7568_v36 = vor.u32 %v7567_v2, %v7563_v0 }
 0x38e   : > { %v7530_v31 = vrot.slane %v7528_v20, 4  ;;  %v7533_v56 = vrot.slane %v7531_v42, 5  ;;  %v8787_v20 = vld [vmem:[%s12314_s8] ss:$0 sm:$0xff] }
 0x38f   : > { %9832 = vmatpush3.bf16.msra.mxu1 %v10399_v61  ;;  %v7497_v61 = vrot.slane %v7496_v45, 4  ;;  %v7569_v29 = vrot.slane %v7568_v36, 4 }
 0x390   : > { %9833 = vmatprep.subr.bf16.mxu1 %v10402_v4  ;;  %v7534_v49 = vor.u32 %v7533_v56, %v7530_v31 }
 0x391   : > { %v7502_v55 = vsel %vm10716_vm5, %v7497_v61, %v7501_v52 }
 0x392   : > { %9818 = vmatmul.mubr.bf16.gmra.mrb[32].mxu1 %v8746_v21  ;;  %v7520_v21 = vor.u32 %v7519_v54, %v7515_v48  ;;  %v8775_v60 = vcombine.low %v7492_v3, %v7502_v55  ;;  %v7535_v24 = vrot.slane %v7534_v49, 4 }
 0x393   : > { %9834 = vmatpush3.bf16.msra.mxu1 %v10402_v4  ;;  %9837 = vmatprep.mubr.bf16.mxu1 %v8771_v15  ;;  %v7552_v4 = vshrl.u32 %v7380_v25, 16  ;;  %v7511_v15 = vrot.slane %v7510_v12, 4 }
 0x394   : > { %9835 = vmatprep.subr.bf16.mxu1 %v10403_v35  ;;  %v7521_v38 = vrot.slane %v7520_v21, 4  ;;  %v7540_v50 = vsel %vm10716_vm5, %v7535_v24, %v7539_v5 }
 0x395   : > { %v7554_v14 = vrot.slane %v7552_v4, 4  ;;  %v8777_v7 = vcombine.low %v7540_v50, %v7550_v18 }
 0x396   : > { %v7526_v47 = vsel %vm10716_vm5, %v7521_v38, %v7525_v8 }
 0x397   : > { %9836 = vmatpush3.bf16.msra.mxu1 %v10403_v35  ;;  %v7382_v35 = vld [vmem:[#allocation3 + $0xc4] sm:$0x1]  ;;  %v7558_v1 = vor.u32 %v7557_v63, %v7554_v14 }
 0x398   : > { %v7571_v30 = vshll.u32 %v7382_v35, 16 }
 0x399   : > { %v7559_v13 = vrot.slane %v7558_v1, 4 }
 0x39a   : > { %9838 = vmatmul.mubr.bf16.vlgmr.msra.gmra.mrb[20].mxu1 %v8772_v11  ;;  %v7516_v11 = vsel %vm10716_vm5, %v7511_v15, %v7515_v48  ;;  %v7573_v16 = vrot.slane %v7571_v30, 5 }
 0x39b   : > { %9841 = vmatprep.mubr.bf16.mxu1 %v8773_v34  ;;  %v8776_v45 = vcombine.low %v7516_v11, %v7526_v47  ;;  %v7564_v27 = vsel %vm10716_vm5, %v7559_v13, %v7563_v0 }
 0x39c   : > { %v7574_v39 = vsel %vm10716_vm5, %v7569_v29, %v7573_v16 }
 0x39d   : > { %v8778_v37 = vcombine.low %v7564_v27, %v7574_v39 }
 0x3a2   : > { %9842 = vmatmul.mubr.bf16.gmra.mrb[24].mxu1 %v8774_v62 }
 0x3a3   : > { %9845 = vmatprep.mubr.bf16.mxu1 %v8775_v60 }
 0x3aa   : > { %9846 = vmatmul.mubr.bf16.gmra.mrb[28].mxu1 %v8776_v45 }
 0x3ab   : > { %9849 = vmatprep.mubr.bf16.mxu1 %v8777_v7 }
 0x3b2   : > { %9850 = vmatmul.mubr.bf16.gmra.mrb[32].mxu1 %v8778_v37 }
 0x46d   : > { %v9839_v42 = vpop.f32.mrb[20].mxu1 }
 0x46e   : > { %v7794_v19 = vadd.f32 %v9839_v42, %v8787_v20  ;;  %v7706_v43 = vpop.f32.mrb[21].mxu1 }
 0x46f   : > { %v7792_v9 = vadd.f32 %v8787_v20, %v7706_v43  ;;  %v9840_v53 = vpop.f32.mrb[22].mxu1 }
 0x470   : > { %v7795_v52 = vadd.f32 %v9840_v53, %v8787_v20  ;;  %v7709_v33 = vpop.f32.mrb[23].mxu1  ;;  %v7810_v23 = vmax.f32 %v7794_v19, 0.0 }
 0x471   : > { %v7793_v61 = vadd.f32 %v8787_v20, %v7709_v33  ;;  %v7808_v28 = vmax.f32 %v7792_v9, 0.0 }
 0x472   : > { %v7811_v57 = vmax.f32 %v7795_v52, 0.0 }
 0x473   : > { %v7809_v48 = vmax.f32 %v7793_v61, 0.0 }
 0x474   : > { %v8891_v54 = vpack.c.bf16 %v7811_v57, %v7810_v23 }
 0x475   : > { %v8886_v34 = vpack.c.bf16 %v7809_v48, %v7808_v28  ;;  %v9843_v25 = vpop.f32.mrb[24].mxu1 }
 0x476   : > { %8928 = vst [vmem:[%s10560_s29 + $0x8] sm:$0xff] %v8891_v54   ;;  %v7798_v31 = vadd.f32 %v9843_v25, %v8787_v20  ;;  %v7722_v56 = vpop.f32.mrb[25].mxu1 }
 0x477   : > { %8887 = vst [vmem:[%s10560_s29] sm:$0xff] %v8886_v34   ;;  %v7796_v5 = vadd.f32 %v8787_v20, %v7722_v56  ;;  %v9844_v40 = vpop.f32.mrb[26].mxu1 }
 0x478   : > { %v7799_v44 = vadd.f32 %v9844_v40, %v8787_v20  ;;  %v7725_v32 = vpop.f32.mrb[27].mxu1  ;;  %v7814_v6 = vmax.f32 %v7798_v31, 0.0 }
 0x479   : > { %v7797_v10 = vadd.f32 %v8787_v20, %v7725_v32  ;;  %v7812_v3 = vmax.f32 %v7796_v5, 0.0 }
 0x47a   : > { %v7815_v26 = vmax.f32 %v7799_v44, 0.0 }
 0x47b   : > { %v7813_v55 = vmax.f32 %v7797_v10, 0.0 }
 0x47c   : > { %v8901_v12 = vpack.c.bf16 %v7815_v26, %v7814_v6 }
 0x47d   : > { %v8896_v21 = vpack.c.bf16 %v7813_v55, %v7812_v3  ;;  %v9847_v4 = vpop.f32.mrb[28].mxu1 }
 0x47e   : > { %8930 = vst [vmem:[%s10560_s29 + $0x18] sm:$0xff] %v8901_v12   ;;  %v7802_v51 = vadd.f32 %v9847_v4, %v8787_v20  ;;  %v7738_v22 = vpop.f32.mrb[29].mxu1 }
 0x47f   : > { %8929 = vst [vmem:[%s10560_s29 + $0x10] sm:$0xff] %v8896_v21   ;;  %v7800_v58 = vadd.f32 %v8787_v20, %v7738_v22  ;;  %v9848_v49 = vpop.f32.mrb[30].mxu1 }
 0x480   : > { %v7803_v17 = vadd.f32 %v9848_v49, %v8787_v20  ;;  %v7741_v46 = vpop.f32.mrb[31].mxu1  ;;  %v7818_v60 = vmax.f32 %v7802_v51, 0.0 }
 0x481   : > { %v7801_v62 = vadd.f32 %v8787_v20, %v7741_v46  ;;  %v7816_v38 = vmax.f32 %v7800_v58, 0.0 }
 0x482   : > { %v7819_v15 = vmax.f32 %v7803_v17, 0.0 }
 0x483   : > { %v7817_v8 = vmax.f32 %v7801_v62, 0.0 }
 0x484   : > { %v8911_v14 = vpack.c.bf16 %v7819_v15, %v7818_v60 }
 0x485   : > { %v8906_v63 = vpack.c.bf16 %v7817_v8, %v7816_v38  ;;  %v9851_v0 = vpop.f32.mrb[32].mxu1 }
 0x486   : > { %8932 = vst [vmem:[%s10560_s29 + $0x28] sm:$0xff] %v8911_v14   ;;  %v7806_v2 = vadd.f32 %v9851_v0, %v8787_v20  ;;  %v7754_v24 = vpop.f32.mrb[33].mxu1 }
 0x487   : > { %8931 = vst [vmem:[%s10560_s29 + $0x20] sm:$0xff] %v8906_v63   ;;  %v7804_v41 = vadd.f32 %v8787_v20, %v7754_v24  ;;  %v9852_v59 = vpop.f32.mrb[34].mxu1 }
 0x488   : > { %v7807_v35 = vadd.f32 %v9852_v59, %v8787_v20  ;;  %v7757_v11 = vpop.f32.mrb[35].mxu1  ;;  %v7822_v1 = vmax.f32 %v7806_v2, 0.0 }
 0x489   : > { %v7805_v47 = vadd.f32 %v8787_v20, %v7757_v11  ;;  %v7820_v30 = vmax.f32 %v7804_v41, 0.0 }
 0x48a   : > { %v7823_v36 = vmax.f32 %v7807_v35, 0.0 }
 0x48b   : > { %v7821_v50 = vmax.f32 %v7805_v47, 0.0 }
 0x48c   : > { %v8921_v18 = vpack.c.bf16 %v7823_v36, %v7822_v1 }
 0x48d   : > { %v8916_v45 = vpack.c.bf16 %v7821_v50, %v7820_v30 }
 0x48e   : > { %8934 = vst [vmem:[%s10560_s29 + $0x38] sm:$0xff] %v8921_v18  }
 0x48f   : > { %8933 = vst [vmem:[%s10560_s29 + $0x30] sm:$0xff] %v8916_v45  }
 0x490 PF: > { %s19_s13 = sadd.s32 1, %s10442_s13   ;;  %s12325_s30 = smov %s10434_s11 }
 0x491   : > { %p16_p1 = scmp.ge.s32.totalorder %s19_s13, 6   ;;  %s12326_s10 = smov %s10438_s12 }
 0x492   : > { %s12327_s11 = smov %s12330_s14  ;;  %s12328_s12 = smov %s12334_s15 }
 0x493   :  { %18 = sbr.rel (!%p16_p1) target bundleno = 4 (0x4), region = 137 }

</bundles_post_ra>
